<compile_context>
chip_gen: v6e
topology: v6e:2x2x1
jax: 0.10.0
libtpu: 0.0.40
codegen_flags: <defaults>
</compile_context>

<pallas_src>
import functools

import jax
import jax.numpy as jnp
from jax.experimental import pallas as pl
from jax.experimental.pallas import tpu as pltpu

IMG_DIM = 16          # torch file uses 224; small spatial size for this runnable example
NUM_CLASSES = 10

CONFIG = dict(
    conv_blocks=2,
    init_filters=4,
    use_bn=True,
    activation="relu",
    conv_dropout=0.0,   # identity at inference
    fc_dropout=0.0,     # identity at inference
    hidden_size=32,
)


def _pad8(c):
    return max(8, ((c + 7) // 8) * 8)


def _activation(x, name):
    name = name.lower()
    if name == "gelu":
        return jax.nn.gelu(x, approximate=True)     # tanh approx (EUP-friendly in-kernel)
    if name == "silu":
        return jax.nn.silu(x)
    if name == "mish":
        return x * jnp.tanh(jax.nn.softplus(x))
    if name == "leaky_relu":
        return jnp.where(x >= 0, x, 0.1 * x)        # module uses nn.LeakyReLU(0.1)
    return jnp.maximum(x, 0.0)                      # ReLU fallback (matches _get_activation)


def _shift_src(x, delta, size):
    """result[..., p] = x[..., p + delta] (cyclic). Wrapped lanes are masked or unused."""
    shift = (-delta) % size
    if shift == 0:
        return x
    if size % 128 == 0:
        # lane-dense case: XLU lane rotation, overlaps VPU/MXU work
        return pltpu.roll(x, shift=shift, axis=1)
    # small lane dims (64 / 16): static slice + lane concat (always supported)
    return jnp.roll(x, shift, axis=1)


def _border_masks(H, W):
    """Per-tap validity masks (1, H*W) for the padding=1 halo, from lane-index iota math."""
    HW = H * W
    lane = jax.lax.broadcasted_iota(jnp.int32, (1, HW), 1)
    col = lane % W
    row_ok = {-1: lane >= W, 0: None, 1: lane < (H - 1) * W}
    col_ok = {-1: col >= 1, 0: None, 1: col <= W - 2}
    masks = {}
    for di in (-1, 0, 1):
        for dj in (-1, 0, 1):
            if di == 0 and dj == 0:
                continue
            m = row_ok[di]
            if col_ok[dj] is not None:
                m = col_ok[dj] if m is None else (m & col_ok[dj])
            masks[(di, dj)] = m
    return masks


def _conv_block(x, w_ref, shift_ref, pool_ref, H, W, masks, act):
    """x: (C_in_pad, H*W) lane-dense.  Returns (C_out_pad, (H//2)*(W//2)) lane-dense.

    Conv2d(3x3, pad=1) -> one im2col matmul; folded bias+BN add; activation;
    MaxPool2d(2) -> 4-way max via lane rolls + MXU lane-compaction matmul.
    """
    HW = H * W
    taps = []
    for di in (-1, 0, 1):
        for dj in (-1, 0, 1):
            delta = di * W + dj
            t = x if delta == 0 else _shift_src(x, delta, HW)
            m = masks.get((di, dj))
            if m is not None:
                t = jnp.where(m, t, 0.0)           # zero-padding halo, in-register
            taps.append(t)
    # channel dims are padded to 8 sublanes -> this concat is tile-aligned
    k_mat = jnp.concatenate(taps, axis=0)                                   # (9*Cin_pad, H*W)
    y = jnp.dot(w_ref[...], k_mat, preferred_element_type=jnp.float32)      # (Cout_pad, H*W)
    y = y + shift_ref[...]                          # folded conv bias + BatchNorm2d (eval)
    y = _activation(y, act)

    # MaxPool2d(2): max over (p, p+1), then over (p, p+W) -> 2x2 window max at even (r, c);
    # the selection matmul compacts those lanes into row-major pooled order on the MXU.
    m = jnp.maximum(y, _shift_src(y, 1, HW))
    m = jnp.maximum(m, _shift_src(m, W, HW))
    return jnp.dot(m, pool_ref[...], preferred_element_type=jnp.float32)    # (Cout_pad, HW//4)


def _make_kernel(block_dims, act, b_tile, c_last_real):
    """block_dims: tuple of (H, W) input spatial size per conv block."""
    n_blocks = len(block_dims)

    def kernel(*refs):
        x_ref = refs[0]
        o_ref = refs[-1]
        pr = refs[1:-1]
        conv_refs = pr[:3 * n_blocks]                 # (w, shift, pool_select) per block
        w1_ref, b1_ref, w2_ref, b2_ref = pr[3 * n_blocks:]

        # Hoist per-layer border masks out of the (unrolled) image loop.
        masks = [_border_masks(H, W) for (H, W) in block_dims]

        for b in range(b_tile):                       # unrolled over the batch tile
            y = x_ref[b].astype(jnp.float32)          # (C_pad, H*W), lane-dense
            for li, (H, W) in enumerate(block_dims):
                wc_ref, sh_ref, s_ref = conv_refs[3 * li:3 * li + 3]
                y = _conv_block(y, wc_ref, sh_ref, s_ref, H, W, masks[li], act)

            # Flatten in torch's (C, H, W) order: lane-concat of the real channel rows.
            feat = jnp.concatenate([y[c:c + 1, :] for c in range(c_last_real)], axis=1)
            h = jnp.dot(feat, w1_ref[...], preferred_element_type=jnp.float32) + b1_ref[...]
            h = jnp.maximum(h, 0.0)                   # ReLU; Dropout = identity (eval)
            logits = jnp.dot(h, w2_ref[...], preferred_element_type=jnp.float32) + b2_ref[...]
            o_ref[0, b, :] = logits[0].astype(o_ref.dtype)

    return kernel


def _pool_select(H, W):
    """0/1 matrix (H*W, (H//2)*(W//2)): column k is the one-hot of the top-left lane of
    pooled output pixel k (row-major)."""
    Ho, Wo = H // 2, W // 2
    k = jnp.arange(Ho * Wo)
    p = (k // Wo) * (2 * W) + (k % Wo) * 2
    return (jnp.arange(H * W)[:, None] == p[None, :]).astype(jnp.float32)


def _pick_batch_tile(n):
    # Keep >= 2 grid steps when possible (v7x has 2 TensorCores sharded over the parallel
    # grid axis); cap the tile so the unrolled per-step instruction stream stays small.
    if n <= 1:
        return 1
    return min(8, pl.cdiv(n, 2))


def custom_cnn_forward(x_nchw, params, config):
    N, cin, H0, W0 = x_nchw.shape
    b_tile = _pick_batch_tile(N)
    n_pad = pl.cdiv(N, b_tile) * b_tile
    num_steps = n_pad // b_tile

    cin_pad = _pad8(cin)
    hw0 = H0 * W0
    # Lane-dense input: (N, C, H*W) with H*W on the lane axis; channels padded to a full
    # sublane tile (8) so every in-kernel sublane concat / DMA is tile-aligned.
    x = x_nchw.astype(jnp.float32).reshape(N, cin, hw0)
    x = jnp.pad(x, ((0, n_pad - N), (0, cin_pad - cin), (0, 0)))

    operands = [x]
    in_specs = [pl.BlockSpec((b_tile, cin_pad, hw0), lambda n: (n, 0, 0))]

    def add_const(arr):
        operands.append(arr)
        in_specs.append(pl.BlockSpec(arr.shape, lambda n, _nd=arr.ndim: (0,) * _nd))

    # Conv blocks: fold bias + eval-BatchNorm into (weight, shift), pad channels to 8,
    # attach the per-layer maxpool lane-selection matrix.
    block_dims = []
    Hc, Wc, in_real, in_p = H0, W0, cin, cin_pad
    for p in params["conv"]:
        out_real = p["w_hwio"].shape[-1]
        out_p = _pad8(out_real)
        block_dims.append((Hc, Wc))

        scale, shift, b = p["scale"], p["shift"], p["b"]                 # (1, out_real)
        w_f = (p["w_hwio"].reshape(9 * in_real, out_real) * scale).T    # (out_real, 9*in_real)
        w_f = w_f.reshape(out_real, 9, in_real)
        w_f = jnp.pad(w_f, ((0, out_p - out_real), (0, 0), (0, in_p - in_real)))
        w_kernel = w_f.reshape(out_p, 9 * in_p)                         # K order: (kh, kw, ci)
        shift_kernel = jnp.pad((b * scale + shift).T, ((0, out_p - out_real), (0, 0)))

        add_const(w_kernel)
        add_const(shift_kernel)
        add_const(_pool_select(Hc, Wc))

        Hc, Wc = Hc // 2, Wc // 2
        in_real, in_p = out_real, out_p

    fc = params["fc"]
    for name in ("w1", "b1", "w2", "b2"):
        add_const(fc[name])

    kernel = _make_kernel(tuple(block_dims), config["activation"], b_tile, in_real)

    out = pl.pallas_call(
        kernel,
        out_shape=jax.ShapeDtypeStruct((num_steps, b_tile, NUM_CLASSES), jnp.float32),
        grid_spec=pltpu.PrefetchScalarGridSpec(
            num_scalar_prefetch=0,
            grid=(num_steps,),
            in_specs=in_specs,
            out_specs=pl.BlockSpec((1, b_tile, NUM_CLASSES), lambda n: (n, 0, 0)),
        ),
        compiler_params=pltpu.CompilerParams(
            # Batch tiles are independent -> shard grid steps across v7x's 2 TensorCores
            # (neutral on single-core v5e/v6e).  VMEM per step is a few hundred KiB, far
            # under the scoped default on every generation, so no vmem_limit_bytes override.
            dimension_semantics=("parallel",),
        ),
    )(*operands)
    return out.reshape(n_pad, NUM_CLASSES)[:N]


# ---------------------------------------------------------------------------
# Deterministic parameter construction (mirrors the nn.Module __init__ shapes).
# ---------------------------------------------------------------------------
def init_params(key, config):
    params = {"conv": [], "fc": {}}
    eps = 1e-5
    in_ch = 3
    spatial = IMG_DIM
    filters = [config["init_filters"] * 2 ** i for i in range(config["conv_blocks"])]
    for out_ch in filters:
        key, kw, kb, kg, kbe, km, kv = jax.random.split(key, 7)
        fan_in = in_ch * 9
        w_hwio = jax.random.normal(kw, (3, 3, in_ch, out_ch), jnp.float32) * (2.0 / fan_in) ** 0.5
        b = 0.01 * jax.random.normal(kb, (1, out_ch), jnp.float32)
        if config["use_bn"]:
            gamma = 1.0 + 0.1 * jax.random.normal(kg, (1, out_ch), jnp.float32)
            beta = 0.1 * jax.random.normal(kbe, (1, out_ch), jnp.float32)
            mean = 0.1 * jax.random.normal(km, (1, out_ch), jnp.float32)
            var = jnp.abs(jax.random.normal(kv, (1, out_ch), jnp.float32)) + 0.5
            scale = gamma / jnp.sqrt(var + eps)
            shift = beta - mean * scale
        else:  # nn.Identity
            scale = jnp.ones((1, out_ch), jnp.float32)
            shift = jnp.zeros((1, out_ch), jnp.float32)
        params["conv"].append(dict(w_hwio=w_hwio, b=b, scale=scale, shift=shift))
        in_ch = out_ch
        spatial //= 2

    in_features = in_ch * spatial * spatial       # same dummy-forward sizing as the module
    hid = config["hidden_size"]
    key, k1, k2, k3, k4 = jax.random.split(key, 5)
    params["fc"] = dict(
        w1=jax.random.normal(k1, (in_features, hid), jnp.float32) * (1.0 / in_features) ** 0.5,
        b1=0.01 * jax.random.normal(k2, (1, hid), jnp.float32),
        w2=jax.random.normal(k3, (hid, NUM_CLASSES), jnp.float32) * (1.0 / hid) ** 0.5,
        b2=0.01 * jax.random.normal(k4, (1, NUM_CLASSES), jnp.float32),
    )
    return params


# ---------------------------------------------------------------------------
# Pure-JAX reference (torch semantics: NCHW flatten order) for validation.
# ---------------------------------------------------------------------------
def reference_forward(x_nchw, params, config):
    hp = jax.lax.Precision.HIGHEST
    x = jnp.transpose(x_nchw, (0, 2, 3, 1)).astype(jnp.float32)
    for p in params["conv"]:
        cout = p["w_hwio"].shape[-1]
        y = jax.lax.conv_general_dilated(
            x, p["w_hwio"], window_strides=(1, 1), padding="SAME",
            dimension_numbers=("NHWC", "HWIO", "NHWC"), precision=hp)
        y = y + p["b"].reshape(1, 1, 1, cout)
        y = y * p["scale"].reshape(1, 1, 1, cout) + p["shift"].reshape(1, 1, 1, cout)
        y = _activation(y, config["activation"])
        x = jax.lax.reduce_window(y, -jnp.inf, jax.lax.max,
                                  (1, 2, 2, 1), (1, 2, 2, 1), "VALID")
    feat = jnp.transpose(x, (0, 3, 1, 2)).reshape(x.shape[0], -1)   # torch x.view(N, -1)
    fc = params["fc"]
    h = jnp.maximum(jnp.dot(feat, fc["w1"], precision=hp) + fc["b1"], 0.0)
    return jnp.dot(h, fc["w2"], precision=hp) + fc["b2"]


if __name__ == "__main__":
    key = jax.random.PRNGKey(0)
    kx, kp = jax.random.split(key)
    N = 8                                  # batch-tiled: B_TILE=4 images/step, 2 grid steps
    x = jax.random.normal(kx, (N, 3, IMG_DIM, IMG_DIM), jnp.float32)   # NCHW like PyTorch
    params = init_params(kp, CONFIG)

    fwd = jax.jit(functools.partial(custom_cnn_forward, config=CONFIG))
    out = jax.block_until_ready(fwd(x, params))
    assert out.shape == (N, NUM_CLASSES) and out.dtype == jnp.float32

    ref = jax.block_until_ready(reference_forward(x, params, CONFIG))
    assert jnp.allclose(out, ref, atol=1e-2, rtol=1e-2), (
        f"mismatch vs reference, max abs err = {jnp.max(jnp.abs(out - ref))}")

    print("KERNEL_OK")
</pallas_src>

<mosaic_0001>
module attributes {stable_mosaic.version = 11 : i64} {
  func.func @kernel(%arg0: i32, %arg1: memref<4x8x256xf32, #tpu.memory_space<vmem>>, %arg2: memref<8x72xf32, #tpu.memory_space<vmem>>, %arg3: memref<8x1xf32, #tpu.memory_space<vmem>>, %arg4: memref<256x64xf32, #tpu.memory_space<vmem>>, %arg5: memref<8x72xf32, #tpu.memory_space<vmem>>, %arg6: memref<8x1xf32, #tpu.memory_space<vmem>>, %arg7: memref<64x16xf32, #tpu.memory_space<vmem>>, %arg8: memref<128x32xf32, #tpu.memory_space<vmem>>, %arg9: memref<1x32xf32, #tpu.memory_space<vmem>>, %arg10: memref<32x10xf32, #tpu.memory_space<vmem>>, %arg11: memref<1x10xf32, #tpu.memory_space<vmem>>, %arg12: memref<1x4x10xf32, #tpu.memory_space<vmem>>) attributes {dimension_semantics = [#tpu.dimension_semantics<parallel>], iteration_bounds = array<i64: 2>, scalar_prefetch = 0 : i64, scratch_operands = 0 : i64, tpu.core_type = #tpu.core_type<tc>, window_params = [{transform_indices = @transform_0, window_bounds = array<i64: 4, 8, 256>}, {pipeline_mode = #tpu.pipeline_mode<synchronous>, transform_indices = @transform_1, window_bounds = array<i64: 8, 72>}, {pipeline_mode = #tpu.pipeline_mode<synchronous>, transform_indices = @transform_2, window_bounds = array<i64: 8, 1>}, {pipeline_mode = #tpu.pipeline_mode<synchronous>, transform_indices = @transform_3, window_bounds = array<i64: 256, 64>}, {pipeline_mode = #tpu.pipeline_mode<synchronous>, transform_indices = @transform_4, window_bounds = array<i64: 8, 72>}, {pipeline_mode = #tpu.pipeline_mode<synchronous>, transform_indices = @transform_5, window_bounds = array<i64: 8, 1>}, {pipeline_mode = #tpu.pipeline_mode<synchronous>, transform_indices = @transform_6, window_bounds = array<i64: 64, 16>}, {pipeline_mode = #tpu.pipeline_mode<synchronous>, transform_indices = @transform_7, window_bounds = array<i64: 128, 32>}, {pipeline_mode = #tpu.pipeline_mode<synchronous>, transform_indices = @transform_8, window_bounds = array<i64: 1, 32>}, {pipeline_mode = #tpu.pipeline_mode<synchronous>, transform_indices = @transform_9, window_bounds = array<i64: 32, 10>}, {pipeline_mode = #tpu.pipeline_mode<synchronous>, transform_indices = @transform_10, window_bounds = array<i64: 1, 10>}, {transform_indices = @transform_11, window_bounds = array<i64: 1, 4, 10>}]} {
    %0 = tpu.iota {dimensions = array<i32: 1>} : vector<1x256xi32>
    %c16_i32 = arith.constant 16 : i32
    %c0_i32 = arith.constant 0 : i32
    %1 = arith.cmpi eq, %c16_i32, %c0_i32 : i32
    %c1_i32 = arith.constant 1 : i32
    %2 = arith.select %1, %c1_i32, %c16_i32 : i32
    %3 = vector.broadcast %2 : i32 to vector<1x256xi32>
    %4 = arith.remsi %0, %3 : vector<1x256xi32>
    %c0_i32_0 = arith.constant 0 : i32
    %5 = vector.broadcast %c0_i32_0 : i32 to vector<1x256xi32>
    %6 = arith.cmpi ne, %4, %5 : vector<1x256xi32>
    %c0_i32_1 = arith.constant 0 : i32
    %7 = vector.broadcast %c0_i32_1 : i32 to vector<1x256xi32>
    %8 = arith.cmpi slt, %4, %7 : vector<1x256xi32>
    %c0_i32_2 = arith.constant 0 : i32
    %9 = arith.cmpi slt, %2, %c0_i32_2 : i32
    %10 = vector.broadcast %9 : i1 to vector<1x256xi1>
    %11 = vector.broadcast %10 : vector<1x256xi1> to vector<1x256xi1>
    %12 = arith.xori %8, %11 : vector<1x256xi1>
    %13 = arith.andi %12, %6 : vector<1x256xi1>
    %14 = vector.broadcast %2 : i32 to vector<1x256xi32>
    %15 = arith.addi %4, %14 : vector<1x256xi32>
    %16 = arith.select %13, %15, %4 : vector<1x256xi1>, vector<1x256xi32>
    %c16_i32_3 = arith.constant 16 : i32
    %17 = vector.broadcast %c16_i32_3 : i32 to vector<1x256xi32>
    %18 = arith.cmpi sge, %0, %17 : vector<1x256xi32>
    %c240_i32 = arith.constant 240 : i32
    %19 = vector.broadcast %c240_i32 : i32 to vector<1x256xi32>
    %20 = arith.cmpi slt, %0, %19 : vector<1x256xi32>
    %c1_i32_4 = arith.constant 1 : i32
    %21 = vector.broadcast %c1_i32_4 : i32 to vector<1x256xi32>
    %22 = arith.cmpi sge, %16, %21 : vector<1x256xi32>
    %c14_i32 = arith.constant 14 : i32
    %23 = vector.broadcast %c14_i32 : i32 to vector<1x256xi32>
    %24 = arith.cmpi sle, %16, %23 : vector<1x256xi32>
    %25 = arith.andi %18, %22 : vector<1x256xi1>
    %26 = arith.andi %18, %24 : vector<1x256xi1>
    %27 = arith.andi %20, %22 : vector<1x256xi1>
    %28 = arith.andi %20, %24 : vector<1x256xi1>
    %29 = tpu.iota {dimensions = array<i32: 1>} : vector<1x64xi32>
    %c8_i32 = arith.constant 8 : i32
    %c0_i32_5 = arith.constant 0 : i32
    %30 = arith.cmpi eq, %c8_i32, %c0_i32_5 : i32
    %c1_i32_6 = arith.constant 1 : i32
    %31 = arith.select %30, %c1_i32_6, %c8_i32 : i32
    %32 = vector.broadcast %31 : i32 to vector<1x64xi32>
    %33 = arith.remsi %29, %32 : vector<1x64xi32>
    %c0_i32_7 = arith.constant 0 : i32
    %34 = vector.broadcast %c0_i32_7 : i32 to vector<1x64xi32>
    %35 = arith.cmpi ne, %33, %34 : vector<1x64xi32>
    %c0_i32_8 = arith.constant 0 : i32
    %36 = vector.broadcast %c0_i32_8 : i32 to vector<1x64xi32>
    %37 = arith.cmpi slt, %33, %36 : vector<1x64xi32>
    %c0_i32_9 = arith.constant 0 : i32
    %38 = arith.cmpi slt, %31, %c0_i32_9 : i32
    %39 = vector.broadcast %38 : i1 to vector<1x64xi1>
    %40 = vector.broadcast %39 : vector<1x64xi1> to vector<1x64xi1>
    %41 = arith.xori %37, %40 : vector<1x64xi1>
    %42 = arith.andi %41, %35 : vector<1x64xi1>
    %43 = vector.broadcast %31 : i32 to vector<1x64xi32>
    %44 = arith.addi %33, %43 : vector<1x64xi32>
    %45 = arith.select %42, %44, %33 : vector<1x64xi1>, vector<1x64xi32>
    %c8_i32_10 = arith.constant 8 : i32
    %46 = vector.broadcast %c8_i32_10 : i32 to vector<1x64xi32>
    %47 = arith.cmpi sge, %29, %46 : vector<1x64xi32>
    %c56_i32 = arith.constant 56 : i32
    %48 = vector.broadcast %c56_i32 : i32 to vector<1x64xi32>
    %49 = arith.cmpi slt, %29, %48 : vector<1x64xi32>
    %c1_i32_11 = arith.constant 1 : i32
    %50 = vector.broadcast %c1_i32_11 : i32 to vector<1x64xi32>
    %51 = arith.cmpi sge, %45, %50 : vector<1x64xi32>
    %c6_i32 = arith.constant 6 : i32
    %52 = vector.broadcast %c6_i32 : i32 to vector<1x64xi32>
    %53 = arith.cmpi sle, %45, %52 : vector<1x64xi32>
    %54 = arith.andi %47, %51 : vector<1x64xi1>
    %55 = arith.andi %47, %53 : vector<1x64xi1>
    %56 = arith.andi %49, %51 : vector<1x64xi1>
    %57 = arith.andi %49, %53 : vector<1x64xi1>
    %c0 = arith.constant 0 : index
    %c0_12 = arith.constant 0 : index
    %c0_13 = arith.constant 0 : index
    %58 = vector.load %arg1[%c0, %c0_12, %c0_13] : memref<4x8x256xf32, #tpu.memory_space<vmem>>, vector<1x8x256xf32>
    %59 = vector.shape_cast %58 : vector<1x8x256xf32> to vector<8x256xf32>
    %c17_i32 = arith.constant 17 : i32
    %60 = tpu.dynamic_rotate %59 by %c17_i32 dim 1 : vector<8x256xf32>, i32 -> vector<8x256xf32>
    %cst = arith.constant 0.000000e+00 : f32
    %61 = vector.shape_cast %25 : vector<1x256xi1> to vector<1x256xi1>
    %62 = vector.broadcast %61 : vector<1x256xi1> to vector<8x256xi1>
    %63 = vector.broadcast %cst : f32 to vector<8x256xf32>
    %64 = arith.select %62, %60, %63 : vector<8x256xi1>, vector<8x256xf32>
    %c16_i32_14 = arith.constant 16 : i32
    %65 = tpu.dynamic_rotate %59 by %c16_i32_14 dim 1 : vector<8x256xf32>, i32 -> vector<8x256xf32>
    %cst_15 = arith.constant 0.000000e+00 : f32
    %66 = vector.shape_cast %18 : vector<1x256xi1> to vector<1x256xi1>
    %67 = vector.broadcast %66 : vector<1x256xi1> to vector<8x256xi1>
    %68 = vector.broadcast %cst_15 : f32 to vector<8x256xf32>
    %69 = arith.select %67, %65, %68 : vector<8x256xi1>, vector<8x256xf32>
    %c15_i32 = arith.constant 15 : i32
    %70 = tpu.dynamic_rotate %59 by %c15_i32 dim 1 : vector<8x256xf32>, i32 -> vector<8x256xf32>
    %cst_16 = arith.constant 0.000000e+00 : f32
    %71 = vector.shape_cast %26 : vector<1x256xi1> to vector<1x256xi1>
    %72 = vector.broadcast %71 : vector<1x256xi1> to vector<8x256xi1>
    %73 = vector.broadcast %cst_16 : f32 to vector<8x256xf32>
    %74 = arith.select %72, %70, %73 : vector<8x256xi1>, vector<8x256xf32>
    %c1_i32_17 = arith.constant 1 : i32
    %75 = tpu.dynamic_rotate %59 by %c1_i32_17 dim 1 : vector<8x256xf32>, i32 -> vector<8x256xf32>
    %cst_18 = arith.constant 0.000000e+00 : f32
    %76 = vector.shape_cast %22 : vector<1x256xi1> to vector<1x256xi1>
    %77 = vector.broadcast %76 : vector<1x256xi1> to vector<8x256xi1>
    %78 = vector.broadcast %cst_18 : f32 to vector<8x256xf32>
    %79 = arith.select %77, %75, %78 : vector<8x256xi1>, vector<8x256xf32>
    %c255_i32 = arith.constant 255 : i32
    %80 = tpu.dynamic_rotate %59 by %c255_i32 dim 1 : vector<8x256xf32>, i32 -> vector<8x256xf32>
    %cst_19 = arith.constant 0.000000e+00 : f32
    %81 = vector.shape_cast %24 : vector<1x256xi1> to vector<1x256xi1>
    %82 = vector.broadcast %81 : vector<1x256xi1> to vector<8x256xi1>
    %83 = vector.broadcast %cst_19 : f32 to vector<8x256xf32>
    %84 = arith.select %82, %80, %83 : vector<8x256xi1>, vector<8x256xf32>
    %c241_i32 = arith.constant 241 : i32
    %85 = tpu.dynamic_rotate %59 by %c241_i32 dim 1 : vector<8x256xf32>, i32 -> vector<8x256xf32>
    %cst_20 = arith.constant 0.000000e+00 : f32
    %86 = vector.shape_cast %27 : vector<1x256xi1> to vector<1x256xi1>
    %87 = vector.broadcast %86 : vector<1x256xi1> to vector<8x256xi1>
    %88 = vector.broadcast %cst_20 : f32 to vector<8x256xf32>
    %89 = arith.select %87, %85, %88 : vector<8x256xi1>, vector<8x256xf32>
    %c240_i32_21 = arith.constant 240 : i32
    %90 = tpu.dynamic_rotate %59 by %c240_i32_21 dim 1 : vector<8x256xf32>, i32 -> vector<8x256xf32>
    %cst_22 = arith.constant 0.000000e+00 : f32
    %91 = vector.shape_cast %20 : vector<1x256xi1> to vector<1x256xi1>
    %92 = vector.broadcast %91 : vector<1x256xi1> to vector<8x256xi1>
    %93 = vector.broadcast %cst_22 : f32 to vector<8x256xf32>
    %94 = arith.select %92, %90, %93 : vector<8x256xi1>, vector<8x256xf32>
    %c239_i32 = arith.constant 239 : i32
    %95 = tpu.dynamic_rotate %59 by %c239_i32 dim 1 : vector<8x256xf32>, i32 -> vector<8x256xf32>
    %cst_23 = arith.constant 0.000000e+00 : f32
    %96 = vector.shape_cast %28 : vector<1x256xi1> to vector<1x256xi1>
    %97 = vector.broadcast %96 : vector<1x256xi1> to vector<8x256xi1>
    %98 = vector.broadcast %cst_23 : f32 to vector<8x256xf32>
    %99 = arith.select %97, %95, %98 : vector<8x256xi1>, vector<8x256xf32>
    %100 = tpu.concatenate %64, %69, %74, %79, %59, %84, %89, %94, %99 in 0 : vector<8x256xf32>, vector<8x256xf32>, vector<8x256xf32>, vector<8x256xf32>, vector<8x256xf32>, vector<8x256xf32>, vector<8x256xf32>, vector<8x256xf32>, vector<8x256xf32> -> vector<72x256xf32>
    %c0_24 = arith.constant 0 : index
    %c0_25 = arith.constant 0 : index
    %101 = vector.load %arg2[%c0_24, %c0_25] : memref<8x72xf32, #tpu.memory_space<vmem>>, vector<8x72xf32>
    %cst_26 = arith.constant dense<0.000000e+00> : vector<8x256xf32>
    %102 = tpu.matmul %101, %100, %cst_26 {dimension_numbers = #tpu.dot_dimension_numbers<[1], [0], [0], [1], [0, 0, 1, 1], [], []>} : vector<8x72xf32>, vector<72x256xf32>, vector<8x256xf32> -> vector<8x256xf32>
    %c0_27 = arith.constant 0 : index
    %c0_28 = arith.constant 0 : index
    %103 = vector.load %arg3[%c0_27, %c0_28] : memref<8x1xf32, #tpu.memory_space<vmem>>, vector<8x1xf32>
    %104 = vector.broadcast %103 : vector<8x1xf32> to vector<8x256xf32>
    %105 = arith.addf %102, %104 : vector<8x256xf32>
    %cst_29 = arith.constant 0.000000e+00 : f32
    %106 = vector.broadcast %cst_29 : f32 to vector<8x256xf32>
    %107 = arith.maximumf %105, %106 : vector<8x256xf32>
    %c255_i32_30 = arith.constant 255 : i32
    %108 = tpu.dynamic_rotate %107 by %c255_i32_30 dim 1 : vector<8x256xf32>, i32 -> vector<8x256xf32>
    %109 = arith.maximumf %107, %108 : vector<8x256xf32>
    %c240_i32_31 = arith.constant 240 : i32
    %110 = tpu.dynamic_rotate %109 by %c240_i32_31 dim 1 : vector<8x256xf32>, i32 -> vector<8x256xf32>
    %111 = arith.maximumf %109, %110 : vector<8x256xf32>
    %c0_32 = arith.constant 0 : index
    %c0_33 = arith.constant 0 : index
    %112 = vector.load %arg4[%c0_32, %c0_33] : memref<256x64xf32, #tpu.memory_space<vmem>>, vector<256x64xf32>
    %cst_34 = arith.constant dense<0.000000e+00> : vector<8x64xf32>
    %113 = tpu.matmul %111, %112, %cst_34 {dimension_numbers = #tpu.dot_dimension_numbers<[1], [0], [0], [1], [0, 0, 1, 1], [], []>} : vector<8x256xf32>, vector<256x64xf32>, vector<8x64xf32> -> vector<8x64xf32>
    %114 = vector.extract_strided_slice %113 {offsets = [0, 55], sizes = [8, 9], strides = [1, 1]} : vector<8x64xf32> to vector<8x9xf32>
    %115 = vector.extract_strided_slice %113 {offsets = [0, 0], sizes = [8, 55], strides = [1, 1]} : vector<8x64xf32> to vector<8x55xf32>
    %116 = tpu.concatenate %114, %115 in 1 : vector<8x9xf32>, vector<8x55xf32> -> vector<8x64xf32>
    %cst_35 = arith.constant 0.000000e+00 : f32
    %117 = vector.shape_cast %54 : vector<1x64xi1> to vector<1x64xi1>
    %118 = vector.broadcast %117 : vector<1x64xi1> to vector<8x64xi1>
    %119 = vector.broadcast %cst_35 : f32 to vector<8x64xf32>
    %120 = arith.select %118, %116, %119 : vector<8x64xi1>, vector<8x64xf32>
    %121 = vector.extract_strided_slice %113 {offsets = [0, 56], sizes = [8, 8], strides = [1, 1]} : vector<8x64xf32> to vector<8x8xf32>
    %122 = vector.extract_strided_slice %113 {offsets = [0, 0], sizes = [8, 56], strides = [1, 1]} : vector<8x64xf32> to vector<8x56xf32>
    %123 = tpu.concatenate %121, %122 in 1 : vector<8x8xf32>, vector<8x56xf32> -> vector<8x64xf32>
    %cst_36 = arith.constant 0.000000e+00 : f32
    %124 = vector.shape_cast %47 : vector<1x64xi1> to vector<1x64xi1>
    %125 = vector.broadcast %124 : vector<1x64xi1> to vector<8x64xi1>
    %126 = vector.broadcast %cst_36 : f32 to vector<8x64xf32>
    %127 = arith.select %125, %123, %126 : vector<8x64xi1>, vector<8x64xf32>
    %128 = vector.extract_strided_slice %113 {offsets = [0, 57], sizes = [8, 7], strides = [1, 1]} : vector<8x64xf32> to vector<8x7xf32>
    %129 = vector.extract_strided_slice %113 {offsets = [0, 0], sizes = [8, 57], strides = [1, 1]} : vector<8x64xf32> to vector<8x57xf32>
    %130 = tpu.concatenate %128, %129 in 1 : vector<8x7xf32>, vector<8x57xf32> -> vector<8x64xf32>
    %cst_37 = arith.constant 0.000000e+00 : f32
    %131 = vector.shape_cast %55 : vector<1x64xi1> to vector<1x64xi1>
    %132 = vector.broadcast %131 : vector<1x64xi1> to vector<8x64xi1>
    %133 = vector.broadcast %cst_37 : f32 to vector<8x64xf32>
    %134 = arith.select %132, %130, %133 : vector<8x64xi1>, vector<8x64xf32>
    %135 = vector.extract_strided_slice %113 {offsets = [0, 63], sizes = [8, 1], strides = [1, 1]} : vector<8x64xf32> to vector<8x1xf32>
    %136 = vector.extract_strided_slice %113 {offsets = [0, 0], sizes = [8, 63], strides = [1, 1]} : vector<8x64xf32> to vector<8x63xf32>
    %137 = tpu.concatenate %135, %136 in 1 : vector<8x1xf32>, vector<8x63xf32> -> vector<8x64xf32>
    %cst_38 = arith.constant 0.000000e+00 : f32
    %138 = vector.shape_cast %51 : vector<1x64xi1> to vector<1x64xi1>
    %139 = vector.broadcast %138 : vector<1x64xi1> to vector<8x64xi1>
    %140 = vector.broadcast %cst_38 : f32 to vector<8x64xf32>
    %141 = arith.select %139, %137, %140 : vector<8x64xi1>, vector<8x64xf32>
    %142 = vector.extract_strided_slice %113 {offsets = [0, 1], sizes = [8, 63], strides = [1, 1]} : vector<8x64xf32> to vector<8x63xf32>
    %143 = vector.extract_strided_slice %113 {offsets = [0, 0], sizes = [8, 1], strides = [1, 1]} : vector<8x64xf32> to vector<8x1xf32>
    %144 = tpu.concatenate %142, %143 in 1 : vector<8x63xf32>, vector<8x1xf32> -> vector<8x64xf32>
    %cst_39 = arith.constant 0.000000e+00 : f32
    %145 = vector.shape_cast %53 : vector<1x64xi1> to vector<1x64xi1>
    %146 = vector.broadcast %145 : vector<1x64xi1> to vector<8x64xi1>
    %147 = vector.broadcast %cst_39 : f32 to vector<8x64xf32>
    %148 = arith.select %146, %144, %147 : vector<8x64xi1>, vector<8x64xf32>
    %149 = vector.extract_strided_slice %113 {offsets = [0, 7], sizes = [8, 57], strides = [1, 1]} : vector<8x64xf32> to vector<8x57xf32>
    %150 = vector.extract_strided_slice %113 {offsets = [0, 0], sizes = [8, 7], strides = [1, 1]} : vector<8x64xf32> to vector<8x7xf32>
    %151 = tpu.concatenate %149, %150 in 1 : vector<8x57xf32>, vector<8x7xf32> -> vector<8x64xf32>
    %cst_40 = arith.constant 0.000000e+00 : f32
    %152 = vector.shape_cast %56 : vector<1x64xi1> to vector<1x64xi1>
    %153 = vector.broadcast %152 : vector<1x64xi1> to vector<8x64xi1>
    %154 = vector.broadcast %cst_40 : f32 to vector<8x64xf32>
    %155 = arith.select %153, %151, %154 : vector<8x64xi1>, vector<8x64xf32>
    %156 = vector.extract_strided_slice %113 {offsets = [0, 8], sizes = [8, 56], strides = [1, 1]} : vector<8x64xf32> to vector<8x56xf32>
    %157 = vector.extract_strided_slice %113 {offsets = [0, 0], sizes = [8, 8], strides = [1, 1]} : vector<8x64xf32> to vector<8x8xf32>
    %158 = tpu.concatenate %156, %157 in 1 : vector<8x56xf32>, vector<8x8xf32> -> vector<8x64xf32>
    %cst_41 = arith.constant 0.000000e+00 : f32
    %159 = vector.shape_cast %49 : vector<1x64xi1> to vector<1x64xi1>
    %160 = vector.broadcast %159 : vector<1x64xi1> to vector<8x64xi1>
    %161 = vector.broadcast %cst_41 : f32 to vector<8x64xf32>
    %162 = arith.select %160, %158, %161 : vector<8x64xi1>, vector<8x64xf32>
    %163 = vector.extract_strided_slice %113 {offsets = [0, 9], sizes = [8, 55], strides = [1, 1]} : vector<8x64xf32> to vector<8x55xf32>
    %164 = vector.extract_strided_slice %113 {offsets = [0, 0], sizes = [8, 9], strides = [1, 1]} : vector<8x64xf32> to vector<8x9xf32>
    %165 = tpu.concatenate %163, %164 in 1 : vector<8x55xf32>, vector<8x9xf32> -> vector<8x64xf32>
    %cst_42 = arith.constant 0.000000e+00 : f32
    %166 = vector.shape_cast %57 : vector<1x64xi1> to vector<1x64xi1>
    %167 = vector.broadcast %166 : vector<1x64xi1> to vector<8x64xi1>
    %168 = vector.broadcast %cst_42 : f32 to vector<8x64xf32>
    %169 = arith.select %167, %165, %168 : vector<8x64xi1>, vector<8x64xf32>
    %170 = tpu.concatenate %120, %127, %134, %141, %113, %148, %155, %162, %169 in 0 : vector<8x64xf32>, vector<8x64xf32>, vector<8x64xf32>, vector<8x64xf32>, vector<8x64xf32>, vector<8x64xf32>, vector<8x64xf32>, vector<8x64xf32>, vector<8x64xf32> -> vector<72x64xf32>
    %c0_43 = arith.constant 0 : index
    %c0_44 = arith.constant 0 : index
    %171 = vector.load %arg5[%c0_43, %c0_44] : memref<8x72xf32, #tpu.memory_space<vmem>>, vector<8x72xf32>
    %cst_45 = arith.constant dense<0.000000e+00> : vector<8x64xf32>
    %172 = tpu.matmul %171, %170, %cst_45 {dimension_numbers = #tpu.dot_dimension_numbers<[1], [0], [0], [1], [0, 0, 1, 1], [], []>} : vector<8x72xf32>, vector<72x64xf32>, vector<8x64xf32> -> vector<8x64xf32>
    %c0_46 = arith.constant 0 : index
    %c0_47 = arith.constant 0 : index
    %173 = vector.load %arg6[%c0_46, %c0_47] : memref<8x1xf32, #tpu.memory_space<vmem>>, vector<8x1xf32>
    %174 = vector.broadcast %173 : vector<8x1xf32> to vector<8x64xf32>
    %175 = arith.addf %172, %174 : vector<8x64xf32>
    %cst_48 = arith.constant 0.000000e+00 : f32
    %176 = vector.broadcast %cst_48 : f32 to vector<8x64xf32>
    %177 = arith.maximumf %175, %176 : vector<8x64xf32>
    %178 = vector.extract_strided_slice %177 {offsets = [0, 1], sizes = [8, 63], strides = [1, 1]} : vector<8x64xf32> to vector<8x63xf32>
    %179 = vector.extract_strided_slice %177 {offsets = [0, 0], sizes = [8, 1], strides = [1, 1]} : vector<8x64xf32> to vector<8x1xf32>
    %180 = tpu.concatenate %178, %179 in 1 : vector<8x63xf32>, vector<8x1xf32> -> vector<8x64xf32>
    %181 = arith.maximumf %177, %180 : vector<8x64xf32>
    %182 = vector.extract_strided_slice %181 {offsets = [0, 8], sizes = [8, 56], strides = [1, 1]} : vector<8x64xf32> to vector<8x56xf32>
    %183 = vector.extract_strided_slice %181 {offsets = [0, 0], sizes = [8, 8], strides = [1, 1]} : vector<8x64xf32> to vector<8x8xf32>
    %184 = tpu.concatenate %182, %183 in 1 : vector<8x56xf32>, vector<8x8xf32> -> vector<8x64xf32>
    %185 = arith.maximumf %181, %184 : vector<8x64xf32>
    %c0_49 = arith.constant 0 : index
    %c0_50 = arith.constant 0 : index
    %186 = vector.load %arg7[%c0_49, %c0_50] : memref<64x16xf32, #tpu.memory_space<vmem>>, vector<64x16xf32>
    %cst_51 = arith.constant dense<0.000000e+00> : vector<8x16xf32>
    %187 = tpu.matmul %185, %186, %cst_51 {dimension_numbers = #tpu.dot_dimension_numbers<[1], [0], [0], [1], [0, 0, 1, 1], [], []>} : vector<8x64xf32>, vector<64x16xf32>, vector<8x16xf32> -> vector<8x16xf32>
    %188 = vector.extract_strided_slice %187 {offsets = [0, 0], sizes = [1, 16], strides = [1, 1]} : vector<8x16xf32> to vector<1x16xf32>
    %189 = vector.extract_strided_slice %187 {offsets = [1, 0], sizes = [1, 16], strides = [1, 1]} : vector<8x16xf32> to vector<1x16xf32>
    %190 = vector.extract_strided_slice %187 {offsets = [2, 0], sizes = [1, 16], strides = [1, 1]} : vector<8x16xf32> to vector<1x16xf32>
    %191 = vector.extract_strided_slice %187 {offsets = [3, 0], sizes = [1, 16], strides = [1, 1]} : vector<8x16xf32> to vector<1x16xf32>
    %192 = vector.extract_strided_slice %187 {offsets = [4, 0], sizes = [1, 16], strides = [1, 1]} : vector<8x16xf32> to vector<1x16xf32>
    %193 = vector.extract_strided_slice %187 {offsets = [5, 0], sizes = [1, 16], strides = [1, 1]} : vector<8x16xf32> to vector<1x16xf32>
    %194 = vector.extract_strided_slice %187 {offsets = [6, 0], sizes = [1, 16], strides = [1, 1]} : vector<8x16xf32> to vector<1x16xf32>
    %195 = vector.extract_strided_slice %187 {offsets = [7, 0], sizes = [1, 16], strides = [1, 1]} : vector<8x16xf32> to vector<1x16xf32>
    %196 = tpu.concatenate %188, %189, %190, %191, %192, %193, %194, %195 in 1 : vector<1x16xf32>, vector<1x16xf32>, vector<1x16xf32>, vector<1x16xf32>, vector<1x16xf32>, vector<1x16xf32>, vector<1x16xf32>, vector<1x16xf32> -> vector<1x128xf32>
    %c0_52 = arith.constant 0 : index
    %c0_53 = arith.constant 0 : index
    %197 = vector.load %arg8[%c0_52, %c0_53] : memref<128x32xf32, #tpu.memory_space<vmem>>, vector<128x32xf32>
    %cst_54 = arith.constant dense<0.000000e+00> : vector<1x32xf32>
    %198 = tpu.matmul %196, %197, %cst_54 {dimension_numbers = #tpu.dot_dimension_numbers<[1], [0], [0], [1], [0, 0, 1, 1], [], []>} : vector<1x128xf32>, vector<128x32xf32>, vector<1x32xf32> -> vector<1x32xf32>
    %c0_55 = arith.constant 0 : index
    %c0_56 = arith.constant 0 : index
    %199 = vector.load %arg9[%c0_55, %c0_56] : memref<1x32xf32, #tpu.memory_space<vmem>>, vector<1x32xf32>
    %200 = arith.addf %198, %199 : vector<1x32xf32>
    %cst_57 = arith.constant 0.000000e+00 : f32
    %201 = vector.broadcast %cst_57 : f32 to vector<1x32xf32>
    %202 = arith.maximumf %200, %201 : vector<1x32xf32>
    %c0_58 = arith.constant 0 : index
    %c0_59 = arith.constant 0 : index
    %203 = vector.load %arg10[%c0_58, %c0_59] : memref<32x10xf32, #tpu.memory_space<vmem>>, vector<32x10xf32>
    %cst_60 = arith.constant dense<0.000000e+00> : vector<1x10xf32>
    %204 = tpu.matmul %202, %203, %cst_60 {dimension_numbers = #tpu.dot_dimension_numbers<[1], [0], [0], [1], [0, 0, 1, 1], [], []>} : vector<1x32xf32>, vector<32x10xf32>, vector<1x10xf32> -> vector<1x10xf32>
    %c0_61 = arith.constant 0 : index
    %c0_62 = arith.constant 0 : index
    %205 = vector.load %arg11[%c0_61, %c0_62] : memref<1x10xf32, #tpu.memory_space<vmem>>, vector<1x10xf32>
    %206 = arith.addf %204, %205 : vector<1x10xf32>
    %207 = vector.shape_cast %206 : vector<1x10xf32> to vector<10xf32>
    %c0_63 = arith.constant 0 : index
    %c0_64 = arith.constant 0 : index
    %c0_65 = arith.constant 0 : index
    %208 = vector.load %arg12[%c0_63, %c0_64, %c0_65] : memref<1x4x10xf32, #tpu.memory_space<vmem>>, vector<1x1x10xf32>
    %209 = vector.shape_cast %208 : vector<1x1x10xf32> to vector<10xf32>
    %210 = vector.shape_cast %207 : vector<10xf32> to vector<1x1x10xf32>
    tpu.vector_store %arg12[%c0_63, %c0_64, %c0_65], %210 {strides = array<i32>} : memref<1x4x10xf32, #tpu.memory_space<vmem>>, vector<1x1x10xf32>,
    %c1 = arith.constant 1 : index
    %c0_66 = arith.constant 0 : index
    %c0_67 = arith.constant 0 : index
    %211 = vector.load %arg1[%c1, %c0_66, %c0_67] : memref<4x8x256xf32, #tpu.memory_space<vmem>>, vector<1x8x256xf32>
    %212 = vector.shape_cast %211 : vector<1x8x256xf32> to vector<8x256xf32>
    %c17_i32_68 = arith.constant 17 : i32
    %213 = tpu.dynamic_rotate %212 by %c17_i32_68 dim 1 : vector<8x256xf32>, i32 -> vector<8x256xf32>
    %cst_69 = arith.constant 0.000000e+00 : f32
    %214 = vector.shape_cast %25 : vector<1x256xi1> to vector<1x256xi1>
    %215 = vector.broadcast %214 : vector<1x256xi1> to vector<8x256xi1>
    %216 = vector.broadcast %cst_69 : f32 to vector<8x256xf32>
    %217 = arith.select %215, %213, %216 : vector<8x256xi1>, vector<8x256xf32>
    %c16_i32_70 = arith.constant 16 : i32
    %218 = tpu.dynamic_rotate %212 by %c16_i32_70 dim 1 : vector<8x256xf32>, i32 -> vector<8x256xf32>
    %cst_71 = arith.constant 0.000000e+00 : f32
    %219 = vector.shape_cast %18 : vector<1x256xi1> to vector<1x256xi1>
    %220 = vector.broadcast %219 : vector<1x256xi1> to vector<8x256xi1>
    %221 = vector.broadcast %cst_71 : f32 to vector<8x256xf32>
    %222 = arith.select %220, %218, %221 : vector<8x256xi1>, vector<8x256xf32>
    %c15_i32_72 = arith.constant 15 : i32
    %223 = tpu.dynamic_rotate %212 by %c15_i32_72 dim 1 : vector<8x256xf32>, i32 -> vector<8x256xf32>
    %cst_73 = arith.constant 0.000000e+00 : f32
    %224 = vector.shape_cast %26 : vector<1x256xi1> to vector<1x256xi1>
    %225 = vector.broadcast %224 : vector<1x256xi1> to vector<8x256xi1>
    %226 = vector.broadcast %cst_73 : f32 to vector<8x256xf32>
    %227 = arith.select %225, %223, %226 : vector<8x256xi1>, vector<8x256xf32>
    %c1_i32_74 = arith.constant 1 : i32
    %228 = tpu.dynamic_rotate %212 by %c1_i32_74 dim 1 : vector<8x256xf32>, i32 -> vector<8x256xf32>
    %cst_75 = arith.constant 0.000000e+00 : f32
    %229 = vector.shape_cast %22 : vector<1x256xi1> to vector<1x256xi1>
    %230 = vector.broadcast %229 : vector<1x256xi1> to vector<8x256xi1>
    %231 = vector.broadcast %cst_75 : f32 to vector<8x256xf32>
    %232 = arith.select %230, %228, %231 : vector<8x256xi1>, vector<8x256xf32>
    %c255_i32_76 = arith.constant 255 : i32
    %233 = tpu.dynamic_rotate %212 by %c255_i32_76 dim 1 : vector<8x256xf32>, i32 -> vector<8x256xf32>
    %cst_77 = arith.constant 0.000000e+00 : f32
    %234 = vector.shape_cast %24 : vector<1x256xi1> to vector<1x256xi1>
    %235 = vector.broadcast %234 : vector<1x256xi1> to vector<8x256xi1>
    %236 = vector.broadcast %cst_77 : f32 to vector<8x256xf32>
    %237 = arith.select %235, %233, %236 : vector<8x256xi1>, vector<8x256xf32>
    %c241_i32_78 = arith.constant 241 : i32
    %238 = tpu.dynamic_rotate %212 by %c241_i32_78 dim 1 : vector<8x256xf32>, i32 -> vector<8x256xf32>
    %cst_79 = arith.constant 0.000000e+00 : f32
    %239 = vector.shape_cast %27 : vector<1x256xi1> to vector<1x256xi1>
    %240 = vector.broadcast %239 : vector<1x256xi1> to vector<8x256xi1>
    %241 = vector.broadcast %cst_79 : f32 to vector<8x256xf32>
    %242 = arith.select %240, %238, %241 : vector<8x256xi1>, vector<8x256xf32>
    %c240_i32_80 = arith.constant 240 : i32
    %243 = tpu.dynamic_rotate %212 by %c240_i32_80 dim 1 : vector<8x256xf32>, i32 -> vector<8x256xf32>
    %cst_81 = arith.constant 0.000000e+00 : f32
    %244 = vector.shape_cast %20 : vector<1x256xi1> to vector<1x256xi1>
    %245 = vector.broadcast %244 : vector<1x256xi1> to vector<8x256xi1>
    %246 = vector.broadcast %cst_81 : f32 to vector<8x256xf32>
    %247 = arith.select %245, %243, %246 : vector<8x256xi1>, vector<8x256xf32>
    %c239_i32_82 = arith.constant 239 : i32
    %248 = tpu.dynamic_rotate %212 by %c239_i32_82 dim 1 : vector<8x256xf32>, i32 -> vector<8x256xf32>
    %cst_83 = arith.constant 0.000000e+00 : f32
    %249 = vector.shape_cast %28 : vector<1x256xi1> to vector<1x256xi1>
    %250 = vector.broadcast %249 : vector<1x256xi1> to vector<8x256xi1>
    %251 = vector.broadcast %cst_83 : f32 to vector<8x256xf32>
    %252 = arith.select %250, %248, %251 : vector<8x256xi1>, vector<8x256xf32>
    %253 = tpu.concatenate %217, %222, %227, %232, %212, %237, %242, %247, %252 in 0 : vector<8x256xf32>, vector<8x256xf32>, vector<8x256xf32>, vector<8x256xf32>, vector<8x256xf32>, vector<8x256xf32>, vector<8x256xf32>, vector<8x256xf32>, vector<8x256xf32> -> vector<72x256xf32>
    %c0_84 = arith.constant 0 : index
    %c0_85 = arith.constant 0 : index
    %254 = vector.load %arg2[%c0_84, %c0_85] : memref<8x72xf32, #tpu.memory_space<vmem>>, vector<8x72xf32>
    %cst_86 = arith.constant dense<0.000000e+00> : vector<8x256xf32>
    %255 = tpu.matmul %254, %253, %cst_86 {dimension_numbers = #tpu.dot_dimension_numbers<[1], [0], [0], [1], [0, 0, 1, 1], [], []>} : vector<8x72xf32>, vector<72x256xf32>, vector<8x256xf32> -> vector<8x256xf32>
    %c0_87 = arith.constant 0 : index
    %c0_88 = arith.constant 0 : index
    %256 = vector.load %arg3[%c0_87, %c0_88] : memref<8x1xf32, #tpu.memory_space<vmem>>, vector<8x1xf32>
    %257 = vector.broadcast %256 : vector<8x1xf32> to vector<8x256xf32>
    %258 = arith.addf %255, %257 : vector<8x256xf32>
    %cst_89 = arith.constant 0.000000e+00 : f32
    %259 = vector.broadcast %cst_89 : f32 to vector<8x256xf32>
    %260 = arith.maximumf %258, %259 : vector<8x256xf32>
    %c255_i32_90 = arith.constant 255 : i32
    %261 = tpu.dynamic_rotate %260 by %c255_i32_90 dim 1 : vector<8x256xf32>, i32 -> vector<8x256xf32>
    %262 = arith.maximumf %260, %261 : vector<8x256xf32>
    %c240_i32_91 = arith.constant 240 : i32
    %263 = tpu.dynamic_rotate %262 by %c240_i32_91 dim 1 : vector<8x256xf32>, i32 -> vector<8x256xf32>
    %264 = arith.maximumf %262, %263 : vector<8x256xf32>
    %c0_92 = arith.constant 0 : index
    %c0_93 = arith.constant 0 : index
    %265 = vector.load %arg4[%c0_92, %c0_93] : memref<256x64xf32, #tpu.memory_space<vmem>>, vector<256x64xf32>
    %cst_94 = arith.constant dense<0.000000e+00> : vector<8x64xf32>
    %266 = tpu.matmul %264, %265, %cst_94 {dimension_numbers = #tpu.dot_dimension_numbers<[1], [0], [0], [1], [0, 0, 1, 1], [], []>} : vector<8x256xf32>, vector<256x64xf32>, vector<8x64xf32> -> vector<8x64xf32>
    %267 = vector.extract_strided_slice %266 {offsets = [0, 55], sizes = [8, 9], strides = [1, 1]} : vector<8x64xf32> to vector<8x9xf32>
    %268 = vector.extract_strided_slice %266 {offsets = [0, 0], sizes = [8, 55], strides = [1, 1]} : vector<8x64xf32> to vector<8x55xf32>
    %269 = tpu.concatenate %267, %268 in 1 : vector<8x9xf32>, vector<8x55xf32> -> vector<8x64xf32>
    %cst_95 = arith.constant 0.000000e+00 : f32
    %270 = vector.shape_cast %54 : vector<1x64xi1> to vector<1x64xi1>
    %271 = vector.broadcast %270 : vector<1x64xi1> to vector<8x64xi1>
    %272 = vector.broadcast %cst_95 : f32 to vector<8x64xf32>
    %273 = arith.select %271, %269, %272 : vector<8x64xi1>, vector<8x64xf32>
    %274 = vector.extract_strided_slice %266 {offsets = [0, 56], sizes = [8, 8], strides = [1, 1]} : vector<8x64xf32> to vector<8x8xf32>
    %275 = vector.extract_strided_slice %266 {offsets = [0, 0], sizes = [8, 56], strides = [1, 1]} : vector<8x64xf32> to vector<8x56xf32>
    %276 = tpu.concatenate %274, %275 in 1 : vector<8x8xf32>, vector<8x56xf32> -> vector<8x64xf32>
    %cst_96 = arith.constant 0.000000e+00 : f32
    %277 = vector.shape_cast %47 : vector<1x64xi1> to vector<1x64xi1>
    %278 = vector.broadcast %277 : vector<1x64xi1> to vector<8x64xi1>
    %279 = vector.broadcast %cst_96 : f32 to vector<8x64xf32>
    %280 = arith.select %278, %276, %279 : vector<8x64xi1>, vector<8x64xf32>
    %281 = vector.extract_strided_slice %266 {offsets = [0, 57], sizes = [8, 7], strides = [1, 1]} : vector<8x64xf32> to vector<8x7xf32>
    %282 = vector.extract_strided_slice %266 {offsets = [0, 0], sizes = [8, 57], strides = [1, 1]} : vector<8x64xf32> to vector<8x57xf32>
    %283 = tpu.concatenate %281, %282 in 1 : vector<8x7xf32>, vector<8x57xf32> -> vector<8x64xf32>
    %cst_97 = arith.constant 0.000000e+00 : f32
    %284 = vector.shape_cast %55 : vector<1x64xi1> to vector<1x64xi1>
    %285 = vector.broadcast %284 : vector<1x64xi1> to vector<8x64xi1>
    %286 = vector.broadcast %cst_97 : f32 to vector<8x64xf32>
    %287 = arith.select %285, %283, %286 : vector<8x64xi1>, vector<8x64xf32>
    %288 = vector.extract_strided_slice %266 {offsets = [0, 63], sizes = [8, 1], strides = [1, 1]} : vector<8x64xf32> to vector<8x1xf32>
    %289 = vector.extract_strided_slice %266 {offsets = [0, 0], sizes = [8, 63], strides = [1, 1]} : vector<8x64xf32> to vector<8x63xf32>
    %290 = tpu.concatenate %288, %289 in 1 : vector<8x1xf32>, vector<8x63xf32> -> vector<8x64xf32>
    %cst_98 = arith.constant 0.000000e+00 : f32
    %291 = vector.shape_cast %51 : vector<1x64xi1> to vector<1x64xi1>
    %292 = vector.broadcast %291 : vector<1x64xi1> to vector<8x64xi1>
    %293 = vector.broadcast %cst_98 : f32 to vector<8x64xf32>
    %294 = arith.select %292, %290, %293 : vector<8x64xi1>, vector<8x64xf32>
    %295 = vector.extract_strided_slice %266 {offsets = [0, 1], sizes = [8, 63], strides = [1, 1]} : vector<8x64xf32> to vector<8x63xf32>
    %296 = vector.extract_strided_slice %266 {offsets = [0, 0], sizes = [8, 1], strides = [1, 1]} : vector<8x64xf32> to vector<8x1xf32>
    %297 = tpu.concatenate %295, %296 in 1 : vector<8x63xf32>, vector<8x1xf32> -> vector<8x64xf32>
    %cst_99 = arith.constant 0.000000e+00 : f32
    %298 = vector.shape_cast %53 : vector<1x64xi1> to vector<1x64xi1>
    %299 = vector.broadcast %298 : vector<1x64xi1> to vector<8x64xi1>
    %300 = vector.broadcast %cst_99 : f32 to vector<8x64xf32>
    %301 = arith.select %299, %297, %300 : vector<8x64xi1>, vector<8x64xf32>
    %302 = vector.extract_strided_slice %266 {offsets = [0, 7], sizes = [8, 57], strides = [1, 1]} : vector<8x64xf32> to vector<8x57xf32>
    %303 = vector.extract_strided_slice %266 {offsets = [0, 0], sizes = [8, 7], strides = [1, 1]} : vector<8x64xf32> to vector<8x7xf32>
    %304 = tpu.concatenate %302, %303 in 1 : vector<8x57xf32>, vector<8x7xf32> -> vector<8x64xf32>
    %cst_100 = arith.constant 0.000000e+00 : f32
    %305 = vector.shape_cast %56 : vector<1x64xi1> to vector<1x64xi1>
    %306 = vector.broadcast %305 : vector<1x64xi1> to vector<8x64xi1>
    %307 = vector.broadcast %cst_100 : f32 to vector<8x64xf32>
    %308 = arith.select %306, %304, %307 : vector<8x64xi1>, vector<8x64xf32>
    %309 = vector.extract_strided_slice %266 {offsets = [0, 8], sizes = [8, 56], strides = [1, 1]} : vector<8x64xf32> to vector<8x56xf32>
    %310 = vector.extract_strided_slice %266 {offsets = [0, 0], sizes = [8, 8], strides = [1, 1]} : vector<8x64xf32> to vector<8x8xf32>
    %311 = tpu.concatenate %309, %310 in 1 : vector<8x56xf32>, vector<8x8xf32> -> vector<8x64xf32>
    %cst_101 = arith.constant 0.000000e+00 : f32
    %312 = vector.shape_cast %49 : vector<1x64xi1> to vector<1x64xi1>
    %313 = vector.broadcast %312 : vector<1x64xi1> to vector<8x64xi1>
    %314 = vector.broadcast %cst_101 : f32 to vector<8x64xf32>
    %315 = arith.select %313, %311, %314 : vector<8x64xi1>, vector<8x64xf32>
    %316 = vector.extract_strided_slice %266 {offsets = [0, 9], sizes = [8, 55], strides = [1, 1]} : vector<8x64xf32> to vector<8x55xf32>
    %317 = vector.extract_strided_slice %266 {offsets = [0, 0], sizes = [8, 9], strides = [1, 1]} : vector<8x64xf32> to vector<8x9xf32>
    %318 = tpu.concatenate %316, %317 in 1 : vector<8x55xf32>, vector<8x9xf32> -> vector<8x64xf32>
    %cst_102 = arith.constant 0.000000e+00 : f32
    %319 = vector.shape_cast %57 : vector<1x64xi1> to vector<1x64xi1>
    %320 = vector.broadcast %319 : vector<1x64xi1> to vector<8x64xi1>
    %321 = vector.broadcast %cst_102 : f32 to vector<8x64xf32>
    %322 = arith.select %320, %318, %321 : vector<8x64xi1>, vector<8x64xf32>
    %323 = tpu.concatenate %273, %280, %287, %294, %266, %301, %308, %315, %322 in 0 : vector<8x64xf32>, vector<8x64xf32>, vector<8x64xf32>, vector<8x64xf32>, vector<8x64xf32>, vector<8x64xf32>, vector<8x64xf32>, vector<8x64xf32>, vector<8x64xf32> -> vector<72x64xf32>
    %c0_103 = arith.constant 0 : index
    %c0_104 = arith.constant 0 : index
    %324 = vector.load %arg5[%c0_103, %c0_104] : memref<8x72xf32, #tpu.memory_space<vmem>>, vector<8x72xf32>
    %cst_105 = arith.constant dense<0.000000e+00> : vector<8x64xf32>
    %325 = tpu.matmul %324, %323, %cst_105 {dimension_numbers = #tpu.dot_dimension_numbers<[1], [0], [0], [1], [0, 0, 1, 1], [], []>} : vector<8x72xf32>, vector<72x64xf32>, vector<8x64xf32> -> vector<8x64xf32>
    %c0_106 = arith.constant 0 : index
    %c0_107 = arith.constant 0 : index
    %326 = vector.load %arg6[%c0_106, %c0_107] : memref<8x1xf32, #tpu.memory_space<vmem>>, vector<8x1xf32>
    %327 = vector.broadcast %326 : vector<8x1xf32> to vector<8x64xf32>
    %328 = arith.addf %325, %327 : vector<8x64xf32>
    %cst_108 = arith.constant 0.000000e+00 : f32
    %329 = vector.broadcast %cst_108 : f32 to vector<8x64xf32>
    %330 = arith.maximumf %328, %329 : vector<8x64xf32>
    %331 = vector.extract_strided_slice %330 {offsets = [0, 1], sizes = [8, 63], strides = [1, 1]} : vector<8x64xf32> to vector<8x63xf32>
    %332 = vector.extract_strided_slice %330 {offsets = [0, 0], sizes = [8, 1], strides = [1, 1]} : vector<8x64xf32> to vector<8x1xf32>
    %333 = tpu.concatenate %331, %332 in 1 : vector<8x63xf32>, vector<8x1xf32> -> vector<8x64xf32>
    %334 = arith.maximumf %330, %333 : vector<8x64xf32>
    %335 = vector.extract_strided_slice %334 {offsets = [0, 8], sizes = [8, 56], strides = [1, 1]} : vector<8x64xf32> to vector<8x56xf32>
    %336 = vector.extract_strided_slice %334 {offsets = [0, 0], sizes = [8, 8], strides = [1, 1]} : vector<8x64xf32> to vector<8x8xf32>
    %337 = tpu.concatenate %335, %336 in 1 : vector<8x56xf32>, vector<8x8xf32> -> vector<8x64xf32>
    %338 = arith.maximumf %334, %337 : vector<8x64xf32>
    %c0_109 = arith.constant 0 : index
    %c0_110 = arith.constant 0 : index
    %339 = vector.load %arg7[%c0_109, %c0_110] : memref<64x16xf32, #tpu.memory_space<vmem>>, vector<64x16xf32>
    %cst_111 = arith.constant dense<0.000000e+00> : vector<8x16xf32>
    %340 = tpu.matmul %338, %339, %cst_111 {dimension_numbers = #tpu.dot_dimension_numbers<[1], [0], [0], [1], [0, 0, 1, 1], [], []>} : vector<8x64xf32>, vector<64x16xf32>, vector<8x16xf32> -> vector<8x16xf32>
    %341 = vector.extract_strided_slice %340 {offsets = [0, 0], sizes = [1, 16], strides = [1, 1]} : vector<8x16xf32> to vector<1x16xf32>
    %342 = vector.extract_strided_slice %340 {offsets = [1, 0], sizes = [1, 16], strides = [1, 1]} : vector<8x16xf32> to vector<1x16xf32>
    %343 = vector.extract_strided_slice %340 {offsets = [2, 0], sizes = [1, 16], strides = [1, 1]} : vector<8x16xf32> to vector<1x16xf32>
    %344 = vector.extract_strided_slice %340 {offsets = [3, 0], sizes = [1, 16], strides = [1, 1]} : vector<8x16xf32> to vector<1x16xf32>
    %345 = vector.extract_strided_slice %340 {offsets = [4, 0], sizes = [1, 16], strides = [1, 1]} : vector<8x16xf32> to vector<1x16xf32>
    %346 = vector.extract_strided_slice %340 {offsets = [5, 0], sizes = [1, 16], strides = [1, 1]} : vector<8x16xf32> to vector<1x16xf32>
    %347 = vector.extract_strided_slice %340 {offsets = [6, 0], sizes = [1, 16], strides = [1, 1]} : vector<8x16xf32> to vector<1x16xf32>
    %348 = vector.extract_strided_slice %340 {offsets = [7, 0], sizes = [1, 16], strides = [1, 1]} : vector<8x16xf32> to vector<1x16xf32>
    %349 = tpu.concatenate %341, %342, %343, %344, %345, %346, %347, %348 in 1 : vector<1x16xf32>, vector<1x16xf32>, vector<1x16xf32>, vector<1x16xf32>, vector<1x16xf32>, vector<1x16xf32>, vector<1x16xf32>, vector<1x16xf32> -> vector<1x128xf32>
    %c0_112 = arith.constant 0 : index
    %c0_113 = arith.constant 0 : index
    %350 = vector.load %arg8[%c0_112, %c0_113] : memref<128x32xf32, #tpu.memory_space<vmem>>, vector<128x32xf32>
    %cst_114 = arith.constant dense<0.000000e+00> : vector<1x32xf32>
    %351 = tpu.matmul %349, %350, %cst_114 {dimension_numbers = #tpu.dot_dimension_numbers<[1], [0], [0], [1], [0, 0, 1, 1], [], []>} : vector<1x128xf32>, vector<128x32xf32>, vector<1x32xf32> -> vector<1x32xf32>
    %c0_115 = arith.constant 0 : index
    %c0_116 = arith.constant 0 : index
    %352 = vector.load %arg9[%c0_115, %c0_116] : memref<1x32xf32, #tpu.memory_space<vmem>>, vector<1x32xf32>
    %353 = arith.addf %351, %352 : vector<1x32xf32>
    %cst_117 = arith.constant 0.000000e+00 : f32
    %354 = vector.broadcast %cst_117 : f32 to vector<1x32xf32>
    %355 = arith.maximumf %353, %354 : vector<1x32xf32>
    %c0_118 = arith.constant 0 : index
    %c0_119 = arith.constant 0 : index
    %356 = vector.load %arg10[%c0_118, %c0_119] : memref<32x10xf32, #tpu.memory_space<vmem>>, vector<32x10xf32>
    %cst_120 = arith.constant dense<0.000000e+00> : vector<1x10xf32>
    %357 = tpu.matmul %355, %356, %cst_120 {dimension_numbers = #tpu.dot_dimension_numbers<[1], [0], [0], [1], [0, 0, 1, 1], [], []>} : vector<1x32xf32>, vector<32x10xf32>, vector<1x10xf32> -> vector<1x10xf32>
    %c0_121 = arith.constant 0 : index
    %c0_122 = arith.constant 0 : index
    %358 = vector.load %arg11[%c0_121, %c0_122] : memref<1x10xf32, #tpu.memory_space<vmem>>, vector<1x10xf32>
    %359 = arith.addf %357, %358 : vector<1x10xf32>
    %360 = vector.shape_cast %359 : vector<1x10xf32> to vector<10xf32>
    %c0_123 = arith.constant 0 : index
    %c1_124 = arith.constant 1 : index
    %c0_125 = arith.constant 0 : index
    %361 = vector.load %arg12[%c0_123, %c1_124, %c0_125] : memref<1x4x10xf32, #tpu.memory_space<vmem>>, vector<1x1x10xf32>
    %362 = vector.shape_cast %361 : vector<1x1x10xf32> to vector<10xf32>
    %363 = vector.shape_cast %360 : vector<10xf32> to vector<1x1x10xf32>
    tpu.vector_store %arg12[%c0_123, %c1_124, %c0_125], %363 {strides = array<i32>} : memref<1x4x10xf32, #tpu.memory_space<vmem>>, vector<1x1x10xf32>,
    %c2 = arith.constant 2 : index
    %c0_126 = arith.constant 0 : index
    %c0_127 = arith.constant 0 : index
    %364 = vector.load %arg1[%c2, %c0_126, %c0_127] : memref<4x8x256xf32, #tpu.memory_space<vmem>>, vector<1x8x256xf32>
    %365 = vector.shape_cast %364 : vector<1x8x256xf32> to vector<8x256xf32>
    %c17_i32_128 = arith.constant 17 : i32
    %366 = tpu.dynamic_rotate %365 by %c17_i32_128 dim 1 : vector<8x256xf32>, i32 -> vector<8x256xf32>
    %cst_129 = arith.constant 0.000000e+00 : f32
    %367 = vector.shape_cast %25 : vector<1x256xi1> to vector<1x256xi1>
    %368 = vector.broadcast %367 : vector<1x256xi1> to vector<8x256xi1>
    %369 = vector.broadcast %cst_129 : f32 to vector<8x256xf32>
    %370 = arith.select %368, %366, %369 : vector<8x256xi1>, vector<8x256xf32>
    %c16_i32_130 = arith.constant 16 : i32
    %371 = tpu.dynamic_rotate %365 by %c16_i32_130 dim 1 : vector<8x256xf32>, i32 -> vector<8x256xf32>
    %cst_131 = arith.constant 0.000000e+00 : f32
    %372 = vector.shape_cast %18 : vector<1x256xi1> to vector<1x256xi1>
    %373 = vector.broadcast %372 : vector<1x256xi1> to vector<8x256xi1>
    %374 = vector.broadcast %cst_131 : f32 to vector<8x256xf32>
    %375 = arith.select %373, %371, %374 : vector<8x256xi1>, vector<8x256xf32>
    %c15_i32_132 = arith.constant 15 : i32
    %376 = tpu.dynamic_rotate %365 by %c15_i32_132 dim 1 : vector<8x256xf32>, i32 -> vector<8x256xf32>
    %cst_133 = arith.constant 0.000000e+00 : f32
    %377 = vector.shape_cast %26 : vector<1x256xi1> to vector<1x256xi1>
    %378 = vector.broadcast %377 : vector<1x256xi1> to vector<8x256xi1>
    %379 = vector.broadcast %cst_133 : f32 to vector<8x256xf32>
    %380 = arith.select %378, %376, %379 : vector<8x256xi1>, vector<8x256xf32>
    %c1_i32_134 = arith.constant 1 : i32
    %381 = tpu.dynamic_rotate %365 by %c1_i32_134 dim 1 : vector<8x256xf32>, i32 -> vector<8x256xf32>
    %cst_135 = arith.constant 0.000000e+00 : f32
    %382 = vector.shape_cast %22 : vector<1x256xi1> to vector<1x256xi1>
    %383 = vector.broadcast %382 : vector<1x256xi1> to vector<8x256xi1>
    %384 = vector.broadcast %cst_135 : f32 to vector<8x256xf32>
    %385 = arith.select %383, %381, %384 : vector<8x256xi1>, vector<8x256xf32>
    %c255_i32_136 = arith.constant 255 : i32
    %386 = tpu.dynamic_rotate %365 by %c255_i32_136 dim 1 : vector<8x256xf32>, i32 -> vector<8x256xf32>
    %cst_137 = arith.constant 0.000000e+00 : f32
    %387 = vector.shape_cast %24 : vector<1x256xi1> to vector<1x256xi1>
    %388 = vector.broadcast %387 : vector<1x256xi1> to vector<8x256xi1>
    %389 = vector.broadcast %cst_137 : f32 to vector<8x256xf32>
    %390 = arith.select %388, %386, %389 : vector<8x256xi1>, vector<8x256xf32>
    %c241_i32_138 = arith.constant 241 : i32
    %391 = tpu.dynamic_rotate %365 by %c241_i32_138 dim 1 : vector<8x256xf32>, i32 -> vector<8x256xf32>
    %cst_139 = arith.constant 0.000000e+00 : f32
    %392 = vector.shape_cast %27 : vector<1x256xi1> to vector<1x256xi1>
    %393 = vector.broadcast %392 : vector<1x256xi1> to vector<8x256xi1>
    %394 = vector.broadcast %cst_139 : f32 to vector<8x256xf32>
    %395 = arith.select %393, %391, %394 : vector<8x256xi1>, vector<8x256xf32>
    %c240_i32_140 = arith.constant 240 : i32
    %396 = tpu.dynamic_rotate %365 by %c240_i32_140 dim 1 : vector<8x256xf32>, i32 -> vector<8x256xf32>
    %cst_141 = arith.constant 0.000000e+00 : f32
    %397 = vector.shape_cast %20 : vector<1x256xi1> to vector<1x256xi1>
    %398 = vector.broadcast %397 : vector<1x256xi1> to vector<8x256xi1>
    %399 = vector.broadcast %cst_141 : f32 to vector<8x256xf32>
    %400 = arith.select %398, %396, %399 : vector<8x256xi1>, vector<8x256xf32>
    %c239_i32_142 = arith.constant 239 : i32
    %401 = tpu.dynamic_rotate %365 by %c239_i32_142 dim 1 : vector<8x256xf32>, i32 -> vector<8x256xf32>
    %cst_143 = arith.constant 0.000000e+00 : f32
    %402 = vector.shape_cast %28 : vector<1x256xi1> to vector<1x256xi1>
    %403 = vector.broadcast %402 : vector<1x256xi1> to vector<8x256xi1>
    %404 = vector.broadcast %cst_143 : f32 to vector<8x256xf32>
    %405 = arith.select %403, %401, %404 : vector<8x256xi1>, vector<8x256xf32>
    %406 = tpu.concatenate %370, %375, %380, %385, %365, %390, %395, %400, %405 in 0 : vector<8x256xf32>, vector<8x256xf32>, vector<8x256xf32>, vector<8x256xf32>, vector<8x256xf32>, vector<8x256xf32>, vector<8x256xf32>, vector<8x256xf32>, vector<8x256xf32> -> vector<72x256xf32>
    %c0_144 = arith.constant 0 : index
    %c0_145 = arith.constant 0 : index
    %407 = vector.load %arg2[%c0_144, %c0_145] : memref<8x72xf32, #tpu.memory_space<vmem>>, vector<8x72xf32>
    %cst_146 = arith.constant dense<0.000000e+00> : vector<8x256xf32>
    %408 = tpu.matmul %407, %406, %cst_146 {dimension_numbers = #tpu.dot_dimension_numbers<[1], [0], [0], [1], [0, 0, 1, 1], [], []>} : vector<8x72xf32>, vector<72x256xf32>, vector<8x256xf32> -> vector<8x256xf32>
    %c0_147 = arith.constant 0 : index
    %c0_148 = arith.constant 0 : index
    %409 = vector.load %arg3[%c0_147, %c0_148] : memref<8x1xf32, #tpu.memory_space<vmem>>, vector<8x1xf32>
    %410 = vector.broadcast %409 : vector<8x1xf32> to vector<8x256xf32>
    %411 = arith.addf %408, %410 : vector<8x256xf32>
    %cst_149 = arith.constant 0.000000e+00 : f32
    %412 = vector.broadcast %cst_149 : f32 to vector<8x256xf32>
    %413 = arith.maximumf %411, %412 : vector<8x256xf32>
    %c255_i32_150 = arith.constant 255 : i32
    %414 = tpu.dynamic_rotate %413 by %c255_i32_150 dim 1 : vector<8x256xf32>, i32 -> vector<8x256xf32>
    %415 = arith.maximumf %413, %414 : vector<8x256xf32>
    %c240_i32_151 = arith.constant 240 : i32
    %416 = tpu.dynamic_rotate %415 by %c240_i32_151 dim 1 : vector<8x256xf32>, i32 -> vector<8x256xf32>
    %417 = arith.maximumf %415, %416 : vector<8x256xf32>
    %c0_152 = arith.constant 0 : index
    %c0_153 = arith.constant 0 : index
    %418 = vector.load %arg4[%c0_152, %c0_153] : memref<256x64xf32, #tpu.memory_space<vmem>>, vector<256x64xf32>
    %cst_154 = arith.constant dense<0.000000e+00> : vector<8x64xf32>
    %419 = tpu.matmul %417, %418, %cst_154 {dimension_numbers = #tpu.dot_dimension_numbers<[1], [0], [0], [1], [0, 0, 1, 1], [], []>} : vector<8x256xf32>, vector<256x64xf32>, vector<8x64xf32> -> vector<8x64xf32>
    %420 = vector.extract_strided_slice %419 {offsets = [0, 55], sizes = [8, 9], strides = [1, 1]} : vector<8x64xf32> to vector<8x9xf32>
    %421 = vector.extract_strided_slice %419 {offsets = [0, 0], sizes = [8, 55], strides = [1, 1]} : vector<8x64xf32> to vector<8x55xf32>
    %422 = tpu.concatenate %420, %421 in 1 : vector<8x9xf32>, vector<8x55xf32> -> vector<8x64xf32>
    %cst_155 = arith.constant 0.000000e+00 : f32
    %423 = vector.shape_cast %54 : vector<1x64xi1> to vector<1x64xi1>
    %424 = vector.broadcast %423 : vector<1x64xi1> to vector<8x64xi1>
    %425 = vector.broadcast %cst_155 : f32 to vector<8x64xf32>
    %426 = arith.select %424, %422, %425 : vector<8x64xi1>, vector<8x64xf32>
    %427 = vector.extract_strided_slice %419 {offsets = [0, 56], sizes = [8, 8], strides = [1, 1]} : vector<8x64xf32> to vector<8x8xf32>
    %428 = vector.extract_strided_slice %419 {offsets = [0, 0], sizes = [8, 56], strides = [1, 1]} : vector<8x64xf32> to vector<8x56xf32>
    %429 = tpu.concatenate %427, %428 in 1 : vector<8x8xf32>, vector<8x56xf32> -> vector<8x64xf32>
    %cst_156 = arith.constant 0.000000e+00 : f32
    %430 = vector.shape_cast %47 : vector<1x64xi1> to vector<1x64xi1>
    %431 = vector.broadcast %430 : vector<1x64xi1> to vector<8x64xi1>
    %432 = vector.broadcast %cst_156 : f32 to vector<8x64xf32>
    %433 = arith.select %431, %429, %432 : vector<8x64xi1>, vector<8x64xf32>
    %434 = vector.extract_strided_slice %419 {offsets = [0, 57], sizes = [8, 7], strides = [1, 1]} : vector<8x64xf32> to vector<8x7xf32>
    %435 = vector.extract_strided_slice %419 {offsets = [0, 0], sizes = [8, 57], strides = [1, 1]} : vector<8x64xf32> to vector<8x57xf32>
    %436 = tpu.concatenate %434, %435 in 1 : vector<8x7xf32>, vector<8x57xf32> -> vector<8x64xf32>
    %cst_157 = arith.constant 0.000000e+00 : f32
    %437 = vector.shape_cast %55 : vector<1x64xi1> to vector<1x64xi1>
    %438 = vector.broadcast %437 : vector<1x64xi1> to vector<8x64xi1>
    %439 = vector.broadcast %cst_157 : f32 to vector<8x64xf32>
    %440 = arith.select %438, %436, %439 : vector<8x64xi1>, vector<8x64xf32>
    %441 = vector.extract_strided_slice %419 {offsets = [0, 63], sizes = [8, 1], strides = [1, 1]} : vector<8x64xf32> to vector<8x1xf32>
    %442 = vector.extract_strided_slice %419 {offsets = [0, 0], sizes = [8, 63], strides = [1, 1]} : vector<8x64xf32> to vector<8x63xf32>
    %443 = tpu.concatenate %441, %442 in 1 : vector<8x1xf32>, vector<8x63xf32> -> vector<8x64xf32>
    %cst_158 = arith.constant 0.000000e+00 : f32
    %444 = vector.shape_cast %51 : vector<1x64xi1> to vector<1x64xi1>
    %445 = vector.broadcast %444 : vector<1x64xi1> to vector<8x64xi1>
    %446 = vector.broadcast %cst_158 : f32 to vector<8x64xf32>
    %447 = arith.select %445, %443, %446 : vector<8x64xi1>, vector<8x64xf32>
    %448 = vector.extract_strided_slice %419 {offsets = [0, 1], sizes = [8, 63], strides = [1, 1]} : vector<8x64xf32> to vector<8x63xf32>
    %449 = vector.extract_strided_slice %419 {offsets = [0, 0], sizes = [8, 1], strides = [1, 1]} : vector<8x64xf32> to vector<8x1xf32>
    %450 = tpu.concatenate %448, %449 in 1 : vector<8x63xf32>, vector<8x1xf32> -> vector<8x64xf32>
    %cst_159 = arith.constant 0.000000e+00 : f32
    %451 = vector.shape_cast %53 : vector<1x64xi1> to vector<1x64xi1>
    %452 = vector.broadcast %451 : vector<1x64xi1> to vector<8x64xi1>
    %453 = vector.broadcast %cst_159 : f32 to vector<8x64xf32>
    %454 = arith.select %452, %450, %453 : vector<8x64xi1>, vector<8x64xf32>
    %455 = vector.extract_strided_slice %419 {offsets = [0, 7], sizes = [8, 57], strides = [1, 1]} : vector<8x64xf32> to vector<8x57xf32>
    %456 = vector.extract_strided_slice %419 {offsets = [0, 0], sizes = [8, 7], strides = [1, 1]} : vector<8x64xf32> to vector<8x7xf32>
    %457 = tpu.concatenate %455, %456 in 1 : vector<8x57xf32>, vector<8x7xf32> -> vector<8x64xf32>
    %cst_160 = arith.constant 0.000000e+00 : f32
    %458 = vector.shape_cast %56 : vector<1x64xi1> to vector<1x64xi1>
    %459 = vector.broadcast %458 : vector<1x64xi1> to vector<8x64xi1>
    %460 = vector.broadcast %cst_160 : f32 to vector<8x64xf32>
    %461 = arith.select %459, %457, %460 : vector<8x64xi1>, vector<8x64xf32>
    %462 = vector.extract_strided_slice %419 {offsets = [0, 8], sizes = [8, 56], strides = [1, 1]} : vector<8x64xf32> to vector<8x56xf32>
    %463 = vector.extract_strided_slice %419 {offsets = [0, 0], sizes = [8, 8], strides = [1, 1]} : vector<8x64xf32> to vector<8x8xf32>
    %464 = tpu.concatenate %462, %463 in 1 : vector<8x56xf32>, vector<8x8xf32> -> vector<8x64xf32>
    %cst_161 = arith.constant 0.000000e+00 : f32
    %465 = vector.shape_cast %49 : vector<1x64xi1> to vector<1x64xi1>
    %466 = vector.broadcast %465 : vector<1x64xi1> to vector<8x64xi1>
    %467 = vector.broadcast %cst_161 : f32 to vector<8x64xf32>
    %468 = arith.select %466, %464, %467 : vector<8x64xi1>, vector<8x64xf32>
    %469 = vector.extract_strided_slice %419 {offsets = [0, 9], sizes = [8, 55], strides = [1, 1]} : vector<8x64xf32> to vector<8x55xf32>
    %470 = vector.extract_strided_slice %419 {offsets = [0, 0], sizes = [8, 9], strides = [1, 1]} : vector<8x64xf32> to vector<8x9xf32>
    %471 = tpu.concatenate %469, %470 in 1 : vector<8x55xf32>, vector<8x9xf32> -> vector<8x64xf32>
    %cst_162 = arith.constant 0.000000e+00 : f32
    %472 = vector.shape_cast %57 : vector<1x64xi1> to vector<1x64xi1>
    %473 = vector.broadcast %472 : vector<1x64xi1> to vector<8x64xi1>
    %474 = vector.broadcast %cst_162 : f32 to vector<8x64xf32>
    %475 = arith.select %473, %471, %474 : vector<8x64xi1>, vector<8x64xf32>
    %476 = tpu.concatenate %426, %433, %440, %447, %419, %454, %461, %468, %475 in 0 : vector<8x64xf32>, vector<8x64xf32>, vector<8x64xf32>, vector<8x64xf32>, vector<8x64xf32>, vector<8x64xf32>, vector<8x64xf32>, vector<8x64xf32>, vector<8x64xf32> -> vector<72x64xf32>
    %c0_163 = arith.constant 0 : index
    %c0_164 = arith.constant 0 : index
    %477 = vector.load %arg5[%c0_163, %c0_164] : memref<8x72xf32, #tpu.memory_space<vmem>>, vector<8x72xf32>
    %cst_165 = arith.constant dense<0.000000e+00> : vector<8x64xf32>
    %478 = tpu.matmul %477, %476, %cst_165 {dimension_numbers = #tpu.dot_dimension_numbers<[1], [0], [0], [1], [0, 0, 1, 1], [], []>} : vector<8x72xf32>, vector<72x64xf32>, vector<8x64xf32> -> vector<8x64xf32>
    %c0_166 = arith.constant 0 : index
    %c0_167 = arith.constant 0 : index
    %479 = vector.load %arg6[%c0_166, %c0_167] : memref<8x1xf32, #tpu.memory_space<vmem>>, vector<8x1xf32>
    %480 = vector.broadcast %479 : vector<8x1xf32> to vector<8x64xf32>
    %481 = arith.addf %478, %480 : vector<8x64xf32>
    %cst_168 = arith.constant 0.000000e+00 : f32
    %482 = vector.broadcast %cst_168 : f32 to vector<8x64xf32>
    %483 = arith.maximumf %481, %482 : vector<8x64xf32>
    %484 = vector.extract_strided_slice %483 {offsets = [0, 1], sizes = [8, 63], strides = [1, 1]} : vector<8x64xf32> to vector<8x63xf32>
    %485 = vector.extract_strided_slice %483 {offsets = [0, 0], sizes = [8, 1], strides = [1, 1]} : vector<8x64xf32> to vector<8x1xf32>
    %486 = tpu.concatenate %484, %485 in 1 : vector<8x63xf32>, vector<8x1xf32> -> vector<8x64xf32>
    %487 = arith.maximumf %483, %486 : vector<8x64xf32>
    %488 = vector.extract_strided_slice %487 {offsets = [0, 8], sizes = [8, 56], strides = [1, 1]} : vector<8x64xf32> to vector<8x56xf32>
    %489 = vector.extract_strided_slice %487 {offsets = [0, 0], sizes = [8, 8], strides = [1, 1]} : vector<8x64xf32> to vector<8x8xf32>
    %490 = tpu.concatenate %488, %489 in 1 : vector<8x56xf32>, vector<8x8xf32> -> vector<8x64xf32>
    %491 = arith.maximumf %487, %490 : vector<8x64xf32>
    %c0_169 = arith.constant 0 : index
    %c0_170 = arith.constant 0 : index
    %492 = vector.load %arg7[%c0_169, %c0_170] : memref<64x16xf32, #tpu.memory_space<vmem>>, vector<64x16xf32>
    %cst_171 = arith.constant dense<0.000000e+00> : vector<8x16xf32>
    %493 = tpu.matmul %491, %492, %cst_171 {dimension_numbers = #tpu.dot_dimension_numbers<[1], [0], [0], [1], [0, 0, 1, 1], [], []>} : vector<8x64xf32>, vector<64x16xf32>, vector<8x16xf32> -> vector<8x16xf32>
    %494 = vector.extract_strided_slice %493 {offsets = [0, 0], sizes = [1, 16], strides = [1, 1]} : vector<8x16xf32> to vector<1x16xf32>
    %495 = vector.extract_strided_slice %493 {offsets = [1, 0], sizes = [1, 16], strides = [1, 1]} : vector<8x16xf32> to vector<1x16xf32>
    %496 = vector.extract_strided_slice %493 {offsets = [2, 0], sizes = [1, 16], strides = [1, 1]} : vector<8x16xf32> to vector<1x16xf32>
    %497 = vector.extract_strided_slice %493 {offsets = [3, 0], sizes = [1, 16], strides = [1, 1]} : vector<8x16xf32> to vector<1x16xf32>
    %498 = vector.extract_strided_slice %493 {offsets = [4, 0], sizes = [1, 16], strides = [1, 1]} : vector<8x16xf32> to vector<1x16xf32>
    %499 = vector.extract_strided_slice %493 {offsets = [5, 0], sizes = [1, 16], strides = [1, 1]} : vector<8x16xf32> to vector<1x16xf32>
    %500 = vector.extract_strided_slice %493 {offsets = [6, 0], sizes = [1, 16], strides = [1, 1]} : vector<8x16xf32> to vector<1x16xf32>
    %501 = vector.extract_strided_slice %493 {offsets = [7, 0], sizes = [1, 16], strides = [1, 1]} : vector<8x16xf32> to vector<1x16xf32>
    %502 = tpu.concatenate %494, %495, %496, %497, %498, %499, %500, %501 in 1 : vector<1x16xf32>, vector<1x16xf32>, vector<1x16xf32>, vector<1x16xf32>, vector<1x16xf32>, vector<1x16xf32>, vector<1x16xf32>, vector<1x16xf32> -> vector<1x128xf32>
    %c0_172 = arith.constant 0 : index
    %c0_173 = arith.constant 0 : index
    %503 = vector.load %arg8[%c0_172, %c0_173] : memref<128x32xf32, #tpu.memory_space<vmem>>, vector<128x32xf32>
    %cst_174 = arith.constant dense<0.000000e+00> : vector<1x32xf32>
    %504 = tpu.matmul %502, %503, %cst_174 {dimension_numbers = #tpu.dot_dimension_numbers<[1], [0], [0], [1], [0, 0, 1, 1], [], []>} : vector<1x128xf32>, vector<128x32xf32>, vector<1x32xf32> -> vector<1x32xf32>
    %c0_175 = arith.constant 0 : index
    %c0_176 = arith.constant 0 : index
    %505 = vector.load %arg9[%c0_175, %c0_176] : memref<1x32xf32, #tpu.memory_space<vmem>>, vector<1x32xf32>
    %506 = arith.addf %504, %505 : vector<1x32xf32>
    %cst_177 = arith.constant 0.000000e+00 : f32
    %507 = vector.broadcast %cst_177 : f32 to vector<1x32xf32>
    %508 = arith.maximumf %506, %507 : vector<1x32xf32>
    %c0_178 = arith.constant 0 : index
    %c0_179 = arith.constant 0 : index
    %509 = vector.load %arg10[%c0_178, %c0_179] : memref<32x10xf32, #tpu.memory_space<vmem>>, vector<32x10xf32>
    %cst_180 = arith.constant dense<0.000000e+00> : vector<1x10xf32>
    %510 = tpu.matmul %508, %509, %cst_180 {dimension_numbers = #tpu.dot_dimension_numbers<[1], [0], [0], [1], [0, 0, 1, 1], [], []>} : vector<1x32xf32>, vector<32x10xf32>, vector<1x10xf32> -> vector<1x10xf32>
    %c0_181 = arith.constant 0 : index
    %c0_182 = arith.constant 0 : index
    %511 = vector.load %arg11[%c0_181, %c0_182] : memref<1x10xf32, #tpu.memory_space<vmem>>, vector<1x10xf32>
    %512 = arith.addf %510, %511 : vector<1x10xf32>
    %513 = vector.shape_cast %512 : vector<1x10xf32> to vector<10xf32>
    %c0_183 = arith.constant 0 : index
    %c2_184 = arith.constant 2 : index
    %c0_185 = arith.constant 0 : index
    %514 = vector.load %arg12[%c0_183, %c2_184, %c0_185] : memref<1x4x10xf32, #tpu.memory_space<vmem>>, vector<1x1x10xf32>
    %515 = vector.shape_cast %514 : vector<1x1x10xf32> to vector<10xf32>
    %516 = vector.shape_cast %513 : vector<10xf32> to vector<1x1x10xf32>
    tpu.vector_store %arg12[%c0_183, %c2_184, %c0_185], %516 {strides = array<i32>} : memref<1x4x10xf32, #tpu.memory_space<vmem>>, vector<1x1x10xf32>,
    %c3 = arith.constant 3 : index
    %c0_186 = arith.constant 0 : index
    %c0_187 = arith.constant 0 : index
    %517 = vector.load %arg1[%c3, %c0_186, %c0_187] : memref<4x8x256xf32, #tpu.memory_space<vmem>>, vector<1x8x256xf32>
    %518 = vector.shape_cast %517 : vector<1x8x256xf32> to vector<8x256xf32>
    %c17_i32_188 = arith.constant 17 : i32
    %519 = tpu.dynamic_rotate %518 by %c17_i32_188 dim 1 : vector<8x256xf32>, i32 -> vector<8x256xf32>
    %cst_189 = arith.constant 0.000000e+00 : f32
    %520 = vector.shape_cast %25 : vector<1x256xi1> to vector<1x256xi1>
    %521 = vector.broadcast %520 : vector<1x256xi1> to vector<8x256xi1>
    %522 = vector.broadcast %cst_189 : f32 to vector<8x256xf32>
    %523 = arith.select %521, %519, %522 : vector<8x256xi1>, vector<8x256xf32>
    %c16_i32_190 = arith.constant 16 : i32
    %524 = tpu.dynamic_rotate %518 by %c16_i32_190 dim 1 : vector<8x256xf32>, i32 -> vector<8x256xf32>
    %cst_191 = arith.constant 0.000000e+00 : f32
    %525 = vector.shape_cast %18 : vector<1x256xi1> to vector<1x256xi1>
    %526 = vector.broadcast %525 : vector<1x256xi1> to vector<8x256xi1>
    %527 = vector.broadcast %cst_191 : f32 to vector<8x256xf32>
    %528 = arith.select %526, %524, %527 : vector<8x256xi1>, vector<8x256xf32>
    %c15_i32_192 = arith.constant 15 : i32
    %529 = tpu.dynamic_rotate %518 by %c15_i32_192 dim 1 : vector<8x256xf32>, i32 -> vector<8x256xf32>
    %cst_193 = arith.constant 0.000000e+00 : f32
    %530 = vector.shape_cast %26 : vector<1x256xi1> to vector<1x256xi1>
    %531 = vector.broadcast %530 : vector<1x256xi1> to vector<8x256xi1>
    %532 = vector.broadcast %cst_193 : f32 to vector<8x256xf32>
    %533 = arith.select %531, %529, %532 : vector<8x256xi1>, vector<8x256xf32>
    %c1_i32_194 = arith.constant 1 : i32
    %534 = tpu.dynamic_rotate %518 by %c1_i32_194 dim 1 : vector<8x256xf32>, i32 -> vector<8x256xf32>
    %cst_195 = arith.constant 0.000000e+00 : f32
    %535 = vector.shape_cast %22 : vector<1x256xi1> to vector<1x256xi1>
    %536 = vector.broadcast %535 : vector<1x256xi1> to vector<8x256xi1>
    %537 = vector.broadcast %cst_195 : f32 to vector<8x256xf32>
    %538 = arith.select %536, %534, %537 : vector<8x256xi1>, vector<8x256xf32>
    %c255_i32_196 = arith.constant 255 : i32
    %539 = tpu.dynamic_rotate %518 by %c255_i32_196 dim 1 : vector<8x256xf32>, i32 -> vector<8x256xf32>
    %cst_197 = arith.constant 0.000000e+00 : f32
    %540 = vector.shape_cast %24 : vector<1x256xi1> to vector<1x256xi1>
    %541 = vector.broadcast %540 : vector<1x256xi1> to vector<8x256xi1>
    %542 = vector.broadcast %cst_197 : f32 to vector<8x256xf32>
    %543 = arith.select %541, %539, %542 : vector<8x256xi1>, vector<8x256xf32>
    %c241_i32_198 = arith.constant 241 : i32
    %544 = tpu.dynamic_rotate %518 by %c241_i32_198 dim 1 : vector<8x256xf32>, i32 -> vector<8x256xf32>
    %cst_199 = arith.constant 0.000000e+00 : f32
    %545 = vector.shape_cast %27 : vector<1x256xi1> to vector<1x256xi1>
    %546 = vector.broadcast %545 : vector<1x256xi1> to vector<8x256xi1>
    %547 = vector.broadcast %cst_199 : f32 to vector<8x256xf32>
    %548 = arith.select %546, %544, %547 : vector<8x256xi1>, vector<8x256xf32>
    %c240_i32_200 = arith.constant 240 : i32
    %549 = tpu.dynamic_rotate %518 by %c240_i32_200 dim 1 : vector<8x256xf32>, i32 -> vector<8x256xf32>
    %cst_201 = arith.constant 0.000000e+00 : f32
    %550 = vector.shape_cast %20 : vector<1x256xi1> to vector<1x256xi1>
    %551 = vector.broadcast %550 : vector<1x256xi1> to vector<8x256xi1>
    %552 = vector.broadcast %cst_201 : f32 to vector<8x256xf32>
    %553 = arith.select %551, %549, %552 : vector<8x256xi1>, vector<8x256xf32>
    %c239_i32_202 = arith.constant 239 : i32
    %554 = tpu.dynamic_rotate %518 by %c239_i32_202 dim 1 : vector<8x256xf32>, i32 -> vector<8x256xf32>
    %cst_203 = arith.constant 0.000000e+00 : f32
    %555 = vector.shape_cast %28 : vector<1x256xi1> to vector<1x256xi1>
    %556 = vector.broadcast %555 : vector<1x256xi1> to vector<8x256xi1>
    %557 = vector.broadcast %cst_203 : f32 to vector<8x256xf32>
    %558 = arith.select %556, %554, %557 : vector<8x256xi1>, vector<8x256xf32>
    %559 = tpu.concatenate %523, %528, %533, %538, %518, %543, %548, %553, %558 in 0 : vector<8x256xf32>, vector<8x256xf32>, vector<8x256xf32>, vector<8x256xf32>, vector<8x256xf32>, vector<8x256xf32>, vector<8x256xf32>, vector<8x256xf32>, vector<8x256xf32> -> vector<72x256xf32>
    %c0_204 = arith.constant 0 : index
    %c0_205 = arith.constant 0 : index
    %560 = vector.load %arg2[%c0_204, %c0_205] : memref<8x72xf32, #tpu.memory_space<vmem>>, vector<8x72xf32>
    %cst_206 = arith.constant dense<0.000000e+00> : vector<8x256xf32>
    %561 = tpu.matmul %560, %559, %cst_206 {dimension_numbers = #tpu.dot_dimension_numbers<[1], [0], [0], [1], [0, 0, 1, 1], [], []>} : vector<8x72xf32>, vector<72x256xf32>, vector<8x256xf32> -> vector<8x256xf32>
    %c0_207 = arith.constant 0 : index
    %c0_208 = arith.constant 0 : index
    %562 = vector.load %arg3[%c0_207, %c0_208] : memref<8x1xf32, #tpu.memory_space<vmem>>, vector<8x1xf32>
    %563 = vector.broadcast %562 : vector<8x1xf32> to vector<8x256xf32>
    %564 = arith.addf %561, %563 : vector<8x256xf32>
    %cst_209 = arith.constant 0.000000e+00 : f32
    %565 = vector.broadcast %cst_209 : f32 to vector<8x256xf32>
    %566 = arith.maximumf %564, %565 : vector<8x256xf32>
    %c255_i32_210 = arith.constant 255 : i32
    %567 = tpu.dynamic_rotate %566 by %c255_i32_210 dim 1 : vector<8x256xf32>, i32 -> vector<8x256xf32>
    %568 = arith.maximumf %566, %567 : vector<8x256xf32>
    %c240_i32_211 = arith.constant 240 : i32
    %569 = tpu.dynamic_rotate %568 by %c240_i32_211 dim 1 : vector<8x256xf32>, i32 -> vector<8x256xf32>
    %570 = arith.maximumf %568, %569 : vector<8x256xf32>
    %c0_212 = arith.constant 0 : index
    %c0_213 = arith.constant 0 : index
    %571 = vector.load %arg4[%c0_212, %c0_213] : memref<256x64xf32, #tpu.memory_space<vmem>>, vector<256x64xf32>
    %cst_214 = arith.constant dense<0.000000e+00> : vector<8x64xf32>
    %572 = tpu.matmul %570, %571, %cst_214 {dimension_numbers = #tpu.dot_dimension_numbers<[1], [0], [0], [1], [0, 0, 1, 1], [], []>} : vector<8x256xf32>, vector<256x64xf32>, vector<8x64xf32> -> vector<8x64xf32>
    %573 = vector.extract_strided_slice %572 {offsets = [0, 55], sizes = [8, 9], strides = [1, 1]} : vector<8x64xf32> to vector<8x9xf32>
    %574 = vector.extract_strided_slice %572 {offsets = [0, 0], sizes = [8, 55], strides = [1, 1]} : vector<8x64xf32> to vector<8x55xf32>
    %575 = tpu.concatenate %573, %574 in 1 : vector<8x9xf32>, vector<8x55xf32> -> vector<8x64xf32>
    %cst_215 = arith.constant 0.000000e+00 : f32
    %576 = vector.shape_cast %54 : vector<1x64xi1> to vector<1x64xi1>
    %577 = vector.broadcast %576 : vector<1x64xi1> to vector<8x64xi1>
    %578 = vector.broadcast %cst_215 : f32 to vector<8x64xf32>
    %579 = arith.select %577, %575, %578 : vector<8x64xi1>, vector<8x64xf32>
    %580 = vector.extract_strided_slice %572 {offsets = [0, 56], sizes = [8, 8], strides = [1, 1]} : vector<8x64xf32> to vector<8x8xf32>
    %581 = vector.extract_strided_slice %572 {offsets = [0, 0], sizes = [8, 56], strides = [1, 1]} : vector<8x64xf32> to vector<8x56xf32>
    %582 = tpu.concatenate %580, %581 in 1 : vector<8x8xf32>, vector<8x56xf32> -> vector<8x64xf32>
    %cst_216 = arith.constant 0.000000e+00 : f32
    %583 = vector.shape_cast %47 : vector<1x64xi1> to vector<1x64xi1>
    %584 = vector.broadcast %583 : vector<1x64xi1> to vector<8x64xi1>
    %585 = vector.broadcast %cst_216 : f32 to vector<8x64xf32>
    %586 = arith.select %584, %582, %585 : vector<8x64xi1>, vector<8x64xf32>
    %587 = vector.extract_strided_slice %572 {offsets = [0, 57], sizes = [8, 7], strides = [1, 1]} : vector<8x64xf32> to vector<8x7xf32>
    %588 = vector.extract_strided_slice %572 {offsets = [0, 0], sizes = [8, 57], strides = [1, 1]} : vector<8x64xf32> to vector<8x57xf32>
    %589 = tpu.concatenate %587, %588 in 1 : vector<8x7xf32>, vector<8x57xf32> -> vector<8x64xf32>
    %cst_217 = arith.constant 0.000000e+00 : f32
    %590 = vector.shape_cast %55 : vector<1x64xi1> to vector<1x64xi1>
    %591 = vector.broadcast %590 : vector<1x64xi1> to vector<8x64xi1>
    %592 = vector.broadcast %cst_217 : f32 to vector<8x64xf32>
    %593 = arith.select %591, %589, %592 : vector<8x64xi1>, vector<8x64xf32>
    %594 = vector.extract_strided_slice %572 {offsets = [0, 63], sizes = [8, 1], strides = [1, 1]} : vector<8x64xf32> to vector<8x1xf32>
    %595 = vector.extract_strided_slice %572 {offsets = [0, 0], sizes = [8, 63], strides = [1, 1]} : vector<8x64xf32> to vector<8x63xf32>
    %596 = tpu.concatenate %594, %595 in 1 : vector<8x1xf32>, vector<8x63xf32> -> vector<8x64xf32>
    %cst_218 = arith.constant 0.000000e+00 : f32
    %597 = vector.shape_cast %51 : vector<1x64xi1> to vector<1x64xi1>
    %598 = vector.broadcast %597 : vector<1x64xi1> to vector<8x64xi1>
    %599 = vector.broadcast %cst_218 : f32 to vector<8x64xf32>
    %600 = arith.select %598, %596, %599 : vector<8x64xi1>, vector<8x64xf32>
    %601 = vector.extract_strided_slice %572 {offsets = [0, 1], sizes = [8, 63], strides = [1, 1]} : vector<8x64xf32> to vector<8x63xf32>
    %602 = vector.extract_strided_slice %572 {offsets = [0, 0], sizes = [8, 1], strides = [1, 1]} : vector<8x64xf32> to vector<8x1xf32>
    %603 = tpu.concatenate %601, %602 in 1 : vector<8x63xf32>, vector<8x1xf32> -> vector<8x64xf32>
    %cst_219 = arith.constant 0.000000e+00 : f32
    %604 = vector.shape_cast %53 : vector<1x64xi1> to vector<1x64xi1>
    %605 = vector.broadcast %604 : vector<1x64xi1> to vector<8x64xi1>
    %606 = vector.broadcast %cst_219 : f32 to vector<8x64xf32>
    %607 = arith.select %605, %603, %606 : vector<8x64xi1>, vector<8x64xf32>
    %608 = vector.extract_strided_slice %572 {offsets = [0, 7], sizes = [8, 57], strides = [1, 1]} : vector<8x64xf32> to vector<8x57xf32>
    %609 = vector.extract_strided_slice %572 {offsets = [0, 0], sizes = [8, 7], strides = [1, 1]} : vector<8x64xf32> to vector<8x7xf32>
    %610 = tpu.concatenate %608, %609 in 1 : vector<8x57xf32>, vector<8x7xf32> -> vector<8x64xf32>
    %cst_220 = arith.constant 0.000000e+00 : f32
    %611 = vector.shape_cast %56 : vector<1x64xi1> to vector<1x64xi1>
    %612 = vector.broadcast %611 : vector<1x64xi1> to vector<8x64xi1>
    %613 = vector.broadcast %cst_220 : f32 to vector<8x64xf32>
    %614 = arith.select %612, %610, %613 : vector<8x64xi1>, vector<8x64xf32>
    %615 = vector.extract_strided_slice %572 {offsets = [0, 8], sizes = [8, 56], strides = [1, 1]} : vector<8x64xf32> to vector<8x56xf32>
    %616 = vector.extract_strided_slice %572 {offsets = [0, 0], sizes = [8, 8], strides = [1, 1]} : vector<8x64xf32> to vector<8x8xf32>
    %617 = tpu.concatenate %615, %616 in 1 : vector<8x56xf32>, vector<8x8xf32> -> vector<8x64xf32>
    %cst_221 = arith.constant 0.000000e+00 : f32
    %618 = vector.shape_cast %49 : vector<1x64xi1> to vector<1x64xi1>
    %619 = vector.broadcast %618 : vector<1x64xi1> to vector<8x64xi1>
    %620 = vector.broadcast %cst_221 : f32 to vector<8x64xf32>
    %621 = arith.select %619, %617, %620 : vector<8x64xi1>, vector<8x64xf32>
    %622 = vector.extract_strided_slice %572 {offsets = [0, 9], sizes = [8, 55], strides = [1, 1]} : vector<8x64xf32> to vector<8x55xf32>
    %623 = vector.extract_strided_slice %572 {offsets = [0, 0], sizes = [8, 9], strides = [1, 1]} : vector<8x64xf32> to vector<8x9xf32>
    %624 = tpu.concatenate %622, %623 in 1 : vector<8x55xf32>, vector<8x9xf32> -> vector<8x64xf32>
    %cst_222 = arith.constant 0.000000e+00 : f32
    %625 = vector.shape_cast %57 : vector<1x64xi1> to vector<1x64xi1>
    %626 = vector.broadcast %625 : vector<1x64xi1> to vector<8x64xi1>
    %627 = vector.broadcast %cst_222 : f32 to vector<8x64xf32>
    %628 = arith.select %626, %624, %627 : vector<8x64xi1>, vector<8x64xf32>
    %629 = tpu.concatenate %579, %586, %593, %600, %572, %607, %614, %621, %628 in 0 : vector<8x64xf32>, vector<8x64xf32>, vector<8x64xf32>, vector<8x64xf32>, vector<8x64xf32>, vector<8x64xf32>, vector<8x64xf32>, vector<8x64xf32>, vector<8x64xf32> -> vector<72x64xf32>
    %c0_223 = arith.constant 0 : index
    %c0_224 = arith.constant 0 : index
    %630 = vector.load %arg5[%c0_223, %c0_224] : memref<8x72xf32, #tpu.memory_space<vmem>>, vector<8x72xf32>
    %cst_225 = arith.constant dense<0.000000e+00> : vector<8x64xf32>
    %631 = tpu.matmul %630, %629, %cst_225 {dimension_numbers = #tpu.dot_dimension_numbers<[1], [0], [0], [1], [0, 0, 1, 1], [], []>} : vector<8x72xf32>, vector<72x64xf32>, vector<8x64xf32> -> vector<8x64xf32>
    %c0_226 = arith.constant 0 : index
    %c0_227 = arith.constant 0 : index
    %632 = vector.load %arg6[%c0_226, %c0_227] : memref<8x1xf32, #tpu.memory_space<vmem>>, vector<8x1xf32>
    %633 = vector.broadcast %632 : vector<8x1xf32> to vector<8x64xf32>
    %634 = arith.addf %631, %633 : vector<8x64xf32>
    %cst_228 = arith.constant 0.000000e+00 : f32
    %635 = vector.broadcast %cst_228 : f32 to vector<8x64xf32>
    %636 = arith.maximumf %634, %635 : vector<8x64xf32>
    %637 = vector.extract_strided_slice %636 {offsets = [0, 1], sizes = [8, 63], strides = [1, 1]} : vector<8x64xf32> to vector<8x63xf32>
    %638 = vector.extract_strided_slice %636 {offsets = [0, 0], sizes = [8, 1], strides = [1, 1]} : vector<8x64xf32> to vector<8x1xf32>
    %639 = tpu.concatenate %637, %638 in 1 : vector<8x63xf32>, vector<8x1xf32> -> vector<8x64xf32>
    %640 = arith.maximumf %636, %639 : vector<8x64xf32>
    %641 = vector.extract_strided_slice %640 {offsets = [0, 8], sizes = [8, 56], strides = [1, 1]} : vector<8x64xf32> to vector<8x56xf32>
    %642 = vector.extract_strided_slice %640 {offsets = [0, 0], sizes = [8, 8], strides = [1, 1]} : vector<8x64xf32> to vector<8x8xf32>
    %643 = tpu.concatenate %641, %642 in 1 : vector<8x56xf32>, vector<8x8xf32> -> vector<8x64xf32>
    %644 = arith.maximumf %640, %643 : vector<8x64xf32>
    %c0_229 = arith.constant 0 : index
    %c0_230 = arith.constant 0 : index
    %645 = vector.load %arg7[%c0_229, %c0_230] : memref<64x16xf32, #tpu.memory_space<vmem>>, vector<64x16xf32>
    %cst_231 = arith.constant dense<0.000000e+00> : vector<8x16xf32>
    %646 = tpu.matmul %644, %645, %cst_231 {dimension_numbers = #tpu.dot_dimension_numbers<[1], [0], [0], [1], [0, 0, 1, 1], [], []>} : vector<8x64xf32>, vector<64x16xf32>, vector<8x16xf32> -> vector<8x16xf32>
    %647 = vector.extract_strided_slice %646 {offsets = [0, 0], sizes = [1, 16], strides = [1, 1]} : vector<8x16xf32> to vector<1x16xf32>
    %648 = vector.extract_strided_slice %646 {offsets = [1, 0], sizes = [1, 16], strides = [1, 1]} : vector<8x16xf32> to vector<1x16xf32>
    %649 = vector.extract_strided_slice %646 {offsets = [2, 0], sizes = [1, 16], strides = [1, 1]} : vector<8x16xf32> to vector<1x16xf32>
    %650 = vector.extract_strided_slice %646 {offsets = [3, 0], sizes = [1, 16], strides = [1, 1]} : vector<8x16xf32> to vector<1x16xf32>
    %651 = vector.extract_strided_slice %646 {offsets = [4, 0], sizes = [1, 16], strides = [1, 1]} : vector<8x16xf32> to vector<1x16xf32>
    %652 = vector.extract_strided_slice %646 {offsets = [5, 0], sizes = [1, 16], strides = [1, 1]} : vector<8x16xf32> to vector<1x16xf32>
    %653 = vector.extract_strided_slice %646 {offsets = [6, 0], sizes = [1, 16], strides = [1, 1]} : vector<8x16xf32> to vector<1x16xf32>
    %654 = vector.extract_strided_slice %646 {offsets = [7, 0], sizes = [1, 16], strides = [1, 1]} : vector<8x16xf32> to vector<1x16xf32>
    %655 = tpu.concatenate %647, %648, %649, %650, %651, %652, %653, %654 in 1 : vector<1x16xf32>, vector<1x16xf32>, vector<1x16xf32>, vector<1x16xf32>, vector<1x16xf32>, vector<1x16xf32>, vector<1x16xf32>, vector<1x16xf32> -> vector<1x128xf32>
    %c0_232 = arith.constant 0 : index
    %c0_233 = arith.constant 0 : index
    %656 = vector.load %arg8[%c0_232, %c0_233] : memref<128x32xf32, #tpu.memory_space<vmem>>, vector<128x32xf32>
    %cst_234 = arith.constant dense<0.000000e+00> : vector<1x32xf32>
    %657 = tpu.matmul %655, %656, %cst_234 {dimension_numbers = #tpu.dot_dimension_numbers<[1], [0], [0], [1], [0, 0, 1, 1], [], []>} : vector<1x128xf32>, vector<128x32xf32>, vector<1x32xf32> -> vector<1x32xf32>
    %c0_235 = arith.constant 0 : index
    %c0_236 = arith.constant 0 : index
    %658 = vector.load %arg9[%c0_235, %c0_236] : memref<1x32xf32, #tpu.memory_space<vmem>>, vector<1x32xf32>
    %659 = arith.addf %657, %658 : vector<1x32xf32>
    %cst_237 = arith.constant 0.000000e+00 : f32
    %660 = vector.broadcast %cst_237 : f32 to vector<1x32xf32>
    %661 = arith.maximumf %659, %660 : vector<1x32xf32>
    %c0_238 = arith.constant 0 : index
    %c0_239 = arith.constant 0 : index
    %662 = vector.load %arg10[%c0_238, %c0_239] : memref<32x10xf32, #tpu.memory_space<vmem>>, vector<32x10xf32>
    %cst_240 = arith.constant dense<0.000000e+00> : vector<1x10xf32>
    %663 = tpu.matmul %661, %662, %cst_240 {dimension_numbers = #tpu.dot_dimension_numbers<[1], [0], [0], [1], [0, 0, 1, 1], [], []>} : vector<1x32xf32>, vector<32x10xf32>, vector<1x10xf32> -> vector<1x10xf32>
    %c0_241 = arith.constant 0 : index
    %c0_242 = arith.constant 0 : index
    %664 = vector.load %arg11[%c0_241, %c0_242] : memref<1x10xf32, #tpu.memory_space<vmem>>, vector<1x10xf32>
    %665 = arith.addf %663, %664 : vector<1x10xf32>
    %666 = vector.shape_cast %665 : vector<1x10xf32> to vector<10xf32>
    %c0_243 = arith.constant 0 : index
    %c3_244 = arith.constant 3 : index
    %c0_245 = arith.constant 0 : index
    %667 = vector.load %arg12[%c0_243, %c3_244, %c0_245] : memref<1x4x10xf32, #tpu.memory_space<vmem>>, vector<1x1x10xf32>
    %668 = vector.shape_cast %667 : vector<1x1x10xf32> to vector<10xf32>
    %669 = vector.shape_cast %666 : vector<10xf32> to vector<1x1x10xf32>
    tpu.vector_store %arg12[%c0_243, %c3_244, %c0_245], %669 {strides = array<i32>} : memref<1x4x10xf32, #tpu.memory_space<vmem>>, vector<1x1x10xf32>,
    return
  }
  func.func @transform_0(%arg0: i32) -> (i32, i32, i32) {
    %c0_i32 = arith.constant 0 : i32
    %c0_i32_0 = arith.constant 0 : i32
    %c0_i32_1 = arith.constant 0 : i32
    return %arg0, %c0_i32, %c0_i32_0 : i32, i32, i32
  }
  func.func @transform_1(%arg0: i32) -> (i32, i32) {
    %c0_i32 = arith.constant 0 : i32
    %c0_i32_0 = arith.constant 0 : i32
    %c0_i32_1 = arith.constant 0 : i32
    return %c0_i32, %c0_i32_0 : i32, i32
  }
  func.func @transform_2(%arg0: i32) -> (i32, i32) {
    %c0_i32 = arith.constant 0 : i32
    %c0_i32_0 = arith.constant 0 : i32
    %c0_i32_1 = arith.constant 0 : i32
    return %c0_i32, %c0_i32_0 : i32, i32
  }
  func.func @transform_3(%arg0: i32) -> (i32, i32) {
    %c0_i32 = arith.constant 0 : i32
    %c0_i32_0 = arith.constant 0 : i32
    %c0_i32_1 = arith.constant 0 : i32
    return %c0_i32, %c0_i32_0 : i32, i32
  }
  func.func @transform_4(%arg0: i32) -> (i32, i32) {
    %c0_i32 = arith.constant 0 : i32
    %c0_i32_0 = arith.constant 0 : i32
    %c0_i32_1 = arith.constant 0 : i32
    return %c0_i32, %c0_i32_0 : i32, i32
  }
  func.func @transform_5(%arg0: i32) -> (i32, i32) {
    %c0_i32 = arith.constant 0 : i32
    %c0_i32_0 = arith.constant 0 : i32
    %c0_i32_1 = arith.constant 0 : i32
    return %c0_i32, %c0_i32_0 : i32, i32
  }
  func.func @transform_6(%arg0: i32) -> (i32, i32) {
    %c0_i32 = arith.constant 0 : i32
    %c0_i32_0 = arith.constant 0 : i32
    %c0_i32_1 = arith.constant 0 : i32
    return %c0_i32, %c0_i32_0 : i32, i32
  }
  func.func @transform_7(%arg0: i32) -> (i32, i32) {
    %c0_i32 = arith.constant 0 : i32
    %c0_i32_0 = arith.constant 0 : i32
    %c0_i32_1 = arith.constant 0 : i32
    return %c0_i32, %c0_i32_0 : i32, i32
  }
  func.func @transform_8(%arg0: i32) -> (i32, i32) {
    %c0_i32 = arith.constant 0 : i32
    %c0_i32_0 = arith.constant 0 : i32
    %c0_i32_1 = arith.constant 0 : i32
    return %c0_i32, %c0_i32_0 : i32, i32
  }
  func.func @transform_9(%arg0: i32) -> (i32, i32) {
    %c0_i32 = arith.constant 0 : i32
    %c0_i32_0 = arith.constant 0 : i32
    %c0_i32_1 = arith.constant 0 : i32
    return %c0_i32, %c0_i32_0 : i32, i32
  }
  func.func @transform_10(%arg0: i32) -> (i32, i32) {
    %c0_i32 = arith.constant 0 : i32
    %c0_i32_0 = arith.constant 0 : i32
    %c0_i32_1 = arith.constant 0 : i32
    return %c0_i32, %c0_i32_0 : i32, i32
  }
  func.func @transform_11(%arg0: i32) -> (i32, i32, i32) {
    %c0_i32 = arith.constant 0 : i32
    %c0_i32_0 = arith.constant 0 : i32
    %c0_i32_1 = arith.constant 0 : i32
    return %arg0, %c0_i32, %c0_i32_0 : i32, i32, i32
  }
}

</mosaic_0001>

<bundles_post_ra>
// kernel: custom_cnn_forward.1
= control target key start
LH: loop header
LB: loop body
LE: loop exit
PB: predicated region body
PF: predicated region fallthrough
CT: control target
= control target key end

     0   :  { %s6539_s0 = inlined_call_operand.vmem [shape: f32[8,8,256], index: 0, kind: input, shape index: {}]   ;;  %s6540_s1 = inlined_call_operand.vmem [shape: f32[8,72], index: 1, kind: input, shape index: {}]   ;;  %s6541_s2 = inlined_call_operand.vmem [shape: f32[8,1], index: 2, kind: input, shape index: {}]   ;;  %s6542_s3 = inlined_call_operand.vmem [shape: f32[256,64], index: 3, kind: input, shape index: {}]   ;;  %s6543_s4 = inlined_call_operand.vmem [shape: f32[8,72], index: 4, kind: input, shape index: {}]   ;;  %s6544_s5 = inlined_call_operand.vmem [shape: f32[8,1], index: 5, kind: input, shape index: {}]   ;;  %s6545_s6 = inlined_call_operand.vmem [shape: f32[64,16], index: 6, kind: input, shape index: {}]   ;;  %s6546_s7 = inlined_call_operand.vmem [shape: f32[128,32], index: 7, kind: input, shape index: {}]   ;;  %s6547_s8 = inlined_call_operand.vmem [shape: f32[1,32], index: 8, kind: input, shape index: {}]   ;;  %s6548_s9 = inlined_call_operand.vmem [shape: f32[32,10], index: 9, kind: input, shape index: {}]   ;;  %s6549_s10 = inlined_call_operand.vmem [shape: f32[1,10], index: 10, kind: input, shape index: {}]   ;;  %s6550_s11 = inlined_call_operand.hbm [shape: f32[2,4,10], index: 11, kind: output, shape index: {}]  }
   0x1   :  { %6754 = sst [smem:[#allocation50_spill]] %s6539_s0 }
   0x2   :  { %6755 = sst [smem:[#allocation51_spill]] %s6540_s1 }
   0x3   :  { %6756 = sst [smem:[#allocation52_spill]] %s6541_s2 }
   0x4   :  { %6757 = sst [smem:[#allocation53_spill]] %s6542_s3 }
   0x5   :  { %6758 = sst [smem:[#allocation54_spill]] %s6543_s4 }
   0x6   :  { %6759 = sst [smem:[#allocation55_spill]] %s6544_s5 }
   0x7   :  { %6760 = sst [smem:[#allocation56_spill]] %s6545_s6 }
   0x8   :  { %6761 = sst [smem:[#allocation57_spill]] %s6546_s7 }
   0x9   :  { %6762 = sst [smem:[#allocation58_spill]] %s6547_s8 }
   0xa   :  { %6763 = sst [smem:[#allocation59_spill]] %s6548_s9 }
   0xb   :  { %6764 = sst [smem:[#allocation60_spill]] %s6549_s10 }
   0xc   :  { %6765 = sst [smem:[#allocation61_spill]] %s6550_s11 }
   0xd   :  { %16 = vsyncpa [#allocation3], 0 }
   0xe   :  { %18 = vsyncpa [#allocation3 + $0x1], 0  ;;  %s4497_s17 = smov 0   ;;  %s4499_s18 = smov 0  }
   0xf   :  { %s4501_s19 = smov 0   ;;  %s4503_s20 = smov 0  }
  0x10 LB: > { %6766 = sst [smem:[#allocation5_spill]] %s4392_s17  ;;  %s4518_s21 = sadd.s32 4294967295, %s4404_s20   ;;  %s4404_s20 = sphi %s4503_s20, %s7147_s20   ;;  %s4400_s19 = sphi %s4501_s19, %s7150_s19   ;;  %s4396_s18 = sphi %s4499_s18, %s7149_s18   ;;  %s4392_s17 = sphi %s4497_s17, %s7148_s17  }
  0x11   : > { %6767 = sst [smem:[#allocation6_spill]] %s4396_s18  ;;  %s3462_s22 = sadd.s32 4294967294, %s4404_s20  }
  0x12   : > { %6768 = sst [smem:[#allocation7_spill]] %s4400_s19  ;;  %s4522_s23 = sadd.s32 1, %s4404_s20  }
  0x13   : > { %6769 = sst [smem:[#allocation8_spill]] %s4404_s20  ;;  %s267_s24 = sadd.s32 1, %s4400_s19 }
  0x14   : > { %6770 = sst [smem:[#allocation9_spill]] %s4518_s21  ;;  %s264_s25 = ssub.s32 %s4404_s20, %s4522_s23 }
  0x15   : > { %6771 = sst [smem:[#allocation10_spill]] %s4522_s23  ;;  %p277_p0 = scmp.ne.s32.totalorder %s4400_s19, %s4396_s18 }
  0x16   : > { %p265_p1 = scmp.eq.s32.totalorder %s264_s25, 0  ;;  %p278_p2 = scmp.eq.s32.totalorder %s4518_s21, 1 }
  0x17   : > { %p283_p3 = scmp.ne.s32.totalorder %s4396_s18, %s4392_s17  ;;  %p284_p4 = scmp.eq.s32.totalorder %s3462_s22, 1 }
  0x18   : > { %s4533_s26 = scalar_select %p265_p1, %s4400_s19, %s267_s24  }
  0x19   : > { %p4535_p5 = por %p278_p2, %p277_p0  ;;  %p4539_p6 = por %p284_p4, %p283_p3 }
  0x1a   : > { %6772 = sst [smem:[#allocation11_spill]] %s4533_s26  ;;  %p3465_p7 = scmp.ge.s32.totalorder %s4404_s20, 1 }
  0x1b   : > { %s6773_s27 = scalar_select %p4535_p5, 1, 0 }
  0x1c   : > { %s6775_s28 = scalar_select %p4539_p6, 1, 0 }
  0x1d   : > { %6774 = sst [smem:[#allocation12_spill]] %s6773_s27  ;;  %p342_p8 = scmp.lt.s32.totalorder %s4404_s20, 3 }
  0x1e   : > { %6776 = sst [smem:[#allocation13_spill]] %s6775_s28 }
  0x1f   : > { %p343_p9 = pnand %p3465_p7, %p342_p8 }
  0x21   : > { %346 = sbr.rel (%p343_p9) target bundleno = 7008 (0x1b60), region = 64 }
  0x26   : > { %s3467_s29 = sshll.u32 %s4518_s21, 2  ;;  %s6777_s0 = sld [smem:[#allocation50_spill]]  ;;  %v6624_v2 = vmov 0.0   ;;  %v4412_v3 = vmov 0   ;;  %v390_v5 = vlaneseq  ;;  %v6780_v11 = vmov 0 }
  0x27   : > { %p384_p10 = scmp.lt.s32.totalorder %s3467_s29, 7  ;;  %s6566_s15 = smov 112   ;;  %634 = vmatprep.mubr.f32.mxu0 %v6624_v2  ;;  %4302 = vset.pattern.permute.xlu0 %v4412_v3  ;;  %v6783_v13 = vmov 0  ;;  %v6786_v16 = vmov 0  ;;  %v6789_v17 = vmov 0  ;;  %v6792_v21 = vmov 0 }
  0x28   : > { %s6562_s16 = smov 111   ;;  %s6551_s22 = smov 113   ;;  %4323 = vset.pattern.permute.xlu1 %v4412_v3  ;;  %v4596_v6 = vand.u32 127, %v390_v5  ;;  %v6795_v25 = vmov 0  ;;  %v6798_v38 = vmov 0  ;;  %v6801_v47 = vmov 0 }
  0x29   : > { %s7152_s29 = smov (!%p384_p10, %s3467_s29), 7  ;;  %s6583_s24 = smov 127  }
  0x2a   : > { %s3584_s30 = sshll.u32 %s7152_s29, 4  ;;  %s6564_s25 = smov 1   ;;  %v4599_v7 = vadd.s32 128, %v4596_v6  ;;  %v397_v12 = vand.u32 15, %v4596_v6  ;;  %vm6594_vm2 = vcmp.lt.s32.totalorder %v4596_v6, 111  ;;  %vm6593_vm6 = vcmp.lt.s32.totalorder %v4596_v6, 112 }
  0x2b   : > { %s6560_s29 = smov 15   ;;  %s6556_s12 = smov 17   ;;  %vm6591_vm7 = vcmp.lt.s32.totalorder %v4596_v6, 113  ;;  %vm6590_vm10 = vcmp.lt.s32.totalorder %v4596_v6, 127  ;;  %vm6553_vm11 = vcmp.lt.s32.totalorder %v4596_v6, 1  ;;  %vm6589_vm12 = vcmp.ge.s32.totalorder %v4596_v6, 16 }
  0x2c   : > { %s4549_s14 = scalar_lea.vmem %s6777_s0, %s3584_s30  ;;  %s6558_s30 = smov 16   ;;  %6779 = vst [vmem:[#allocation14_spill] sm:$0xff] %v4599_v7  ;;  %v404_v8 = vand.u32 15, %v4599_v7  ;;  %vm6592_vm0 = vcmp.lt.s32.totalorder %v4599_v7, 240  ;;  %vm4621_vm5 = vcmp.le.s32.totalorder %v397_v12, 14  ;;  %vm4649_vm9 = vcmp.ge.s32.totalorder %v397_v12, 1 }
  0x2d   : > { %v4552_v0 = vld [vmem:[%s4549_s14] sm:$0xff]  ;;  %v4559_v1 = vld [vmem:[%s4549_s14 + $0x8] sm:$0xff]  ;;  %s6778_s2 = sld [smem:[#allocation52_spill]]  ;;  %v6790_v17 = vsel %vm4621_vm5, 4294967295, %v6789_v17  ;;  %v6796_v25 = vsel %vm4649_vm9, 4294967295, %v6795_v25  ;;  %vm6554_vm13 = vcmp.lt.s32.totalorder %v4596_v6, 15  ;;  %vm4687_vm14 = vmand %vm6589_vm12, %vm4621_vm5 }
  0x2e   : > { %533 = vrot.lane.b32.xlu1 %v4552_v0, %s6566_s15  ;;  %546 = vrot.lane.b32.xlu0 %v4552_v0, %s6562_s16  ;;  %vm4603_vm1 = vcmp.le.s32.totalorder %v404_v8, 14  ;;  %vm4617_vm4 = vcmp.ge.s32.totalorder %v404_v8, 1  ;;  %6791 = vst [vmem:[#allocation18_spill] sm:$0xff] %v6790_v17  ;;  %6797 = vst [vmem:[#allocation20_spill] sm:$0xff] %v6796_v25  ;;  %v6799_v38 = vsel %vm4687_vm14, 4294967295, %v6798_v38  ;;  %vm6555_vm15 = vcmp.lt.s32.totalorder %v4596_v6, 16 }
  0x2f   : > { %v6781_v11 = vsel %vm4603_vm1, 4294967295, %v6780_v11  ;;  %vm4613_vm3 = vmand %vm6592_vm0, %vm4603_vm1  ;;  %v6787_v16 = vsel %vm4617_vm4, 4294967295, %v6786_v16  ;;  %6800 = vst [vmem:[#allocation21_spill] sm:$0xff] %v6799_v38  ;;  %s6804_s1 = sld [smem:[#allocation51_spill]]  ;;  %s6587_s13 = smov 63  }
  0x30   : > { %6782 = vst [vmem:[#allocation15_spill] sm:$0xff] %v6781_v11  ;;  %v6784_v13 = vsel %vm4613_vm3, 4294967295, %v6783_v13  ;;  %6788 = vst [vmem:[#allocation17_spill] sm:$0xff] %v6787_v16  ;;  %s6805_s3 = sld [smem:[#allocation53_spill]]  ;;  %s6849_s0 = smov 16  }
  0x31   : > { %6785 = vst [vmem:[#allocation16_spill] sm:$0xff] %v6784_v13  ;;  %vm4641_vm8 = vmand %vm6592_vm0, %vm4617_vm4  ;;  %s6808_s5 = sld [smem:[#allocation55_spill]]  ;;  %s6850_s26 = smov 17  }
  0x32   : > { %535 = vrot.lane.b32.xlu1 %v4559_v1, %s6566_s15  ;;  %548 = vrot.lane.b32.xlu0 %v4559_v1, %s6562_s16  ;;  %v6793_v21 = vsel %vm4641_vm8, 4294967295, %v6792_v21  ;;  %s6568_s16 = smov 119   ;;  %s6577_s15 = smov 120  }
  0x33   : > { %v4593_v4 = vld [vmem:[%s6778_s2] sm:$0xff]  ;;  %6794 = vst [vmem:[#allocation19_spill] sm:$0xff] %v6793_v21  ;;  %s6828_s4 = sld [smem:[#allocation54_spill]]  ;;  %s6687_s17 = smov 32  }
  0x34   : > { %s6832_s6 = sld [smem:[#allocation56_spill]]  ;;  %s6685_s28 = smov 64  }
  0x35   : > { %v4722_v50 = vld [vmem:[%s6804_s1] sm:$0xff]  ;;  %s6872_s7 = sld [smem:[#allocation57_spill]]  ;;  %s6683_s11 = smov 48  }
  0x36   : > { %522 = vrot.lane.b32.xlu1 %v4559_v1, %s6551_s22  ;;  %520 = vrot.lane.b32.xlu0 %v4552_v0, %s6551_s22  ;;  %v4738_v56 = vld [vmem:[%s6805_s3 + $0xf8] sm:$0xff]  ;;  %v4748_v58 = vld [vmem:[%s6805_s3 + $0xf0] sm:$0xff]  ;;  %s6573_s22 = smov 121   ;;  %s6681_s20 = smov 96  }
  0x37   : > { %v4743_v57 = vld [vmem:[%s6805_s3 + $0x78] sm:$0xff]  ;;  %3585 = vmatprep.subr.mxu1 %v4738_v56  ;;  %v4754_v59 = vld [vmem:[%s6805_s3 + $0x70] sm:$0xff]  ;;  %v4762_v62 = vld [vmem:[%s6805_s3 + $0xe8] sm:$0xff]  ;;  %s6679_s19 = smov 80   ;;  %s6874_s9 = sld [smem:[#allocation59_spill]] }
  0x38   : > { %3586 = vmatpush3.msra.mxu1 %v4743_v57  ;;  %v4768_v63 = vld [vmem:[%s6805_s3 + $0x68] sm:$0xff]  ;;  %v4784_v3 = vld [vmem:[%s6805_s3 + $0x60] sm:$0xff]  ;;  %v4791_v5 = vld [vmem:[%s6805_s3 + $0xd8] sm:$0xff]  ;;  %s6881_s8 = sld [smem:[#allocation58_spill]]  ;;  %s6887_s27 = smov 119  }
  0x39   : > { %3587 = vmatprep.subr.mxu1 %v4748_v58  ;;  %v4797_v8 = vld [vmem:[%s6805_s3 + $0x58] sm:$0xff]  ;;  %v4815_v12 = vld [vmem:[%s6805_s3 + $0xc8] sm:$0xff]  ;;  %s6884_s10 = sld [smem:[#allocation60_spill]]  ;;  %s6889_s23 = smov 121  }
  0x3a   : > { %509 = vrot.lane.b32.xlu1 %v4559_v1, %s6583_s24  ;;  %507 = vrot.lane.b32.xlu0 %v4552_v0, %s6583_s24  ;;  %s6893_s21 = smov 8  }
  0x3b   : > { %3588 = vmatpush3.msra.mxu1 %v4754_v59  ;;  %v5318_v38 = vld [vmem:[%s6872_s7 + $0x10] sm:$0xff]  ;;  %v5323_v16 = vld [vmem:[%s6872_s7 + $0x8] sm:$0xff]  ;;  %v5332_v17 = vld [vmem:[%s6872_s7] sm:$0xff] }
  0x3c   : > { %3589 = vmatprep.subr.mxu1 %v4762_v62 }
  0x3d   : > { %3590 = vmatpush3.msra.mxu1 %v4768_v63 }
  0x3e   : > { %496 = vrot.lane.b32.xlu1 %v4559_v1, %s6564_s25  ;;  %494 = vrot.lane.b32.xlu0 %v4552_v0, %s6564_s25  ;;  %s6575_s25 = smov 57  }
  0x42   : > { %483 = vrot.lane.b32.xlu1 %v4559_v1, %s6560_s29  ;;  %481 = vrot.lane.b32.xlu0 %v4552_v0, %s6560_s29  ;;  %s6581_s29 = smov 56  }
  0x46   : > { %470 = vrot.lane.b32.xlu1 %v4559_v1, %s6558_s30  ;;  %468 = vrot.lane.b32.xlu0 %v4552_v0, %s6558_s30  ;;  %s6806_s30 = smov 112  }
  0x4a   : > { %457 = vrot.lane.b32.xlu1 %v4559_v1, %s6556_s12  ;;  %455 = vrot.lane.b32.xlu0 %v4552_v0, %s6556_s12  ;;  %s6570_s12 = smov 55  }
  0x4e   : > { %563 = vperm.xlu0 %4302, %v4593_v4  }
  0xa0   : > { %v534_v9 = vpop.permute.xlu1 %533  ;;  %v547_v10 = vpop.permute.xlu0 %546 }
  0xa4   : > { %v536_v14 = vpop.permute.xlu1 %535  ;;  %v549_v15 = vpop.permute.xlu0 %548 }
  0xa5   : > { %v552_v18 = vsel %vm6594_vm2, %v549_v15, %v547_v10  ;;  %v551_v19 = vsel %vm6594_vm2, %v547_v10, %v549_v15  ;;  %v539_v20 = vsel %vm6593_vm6, %v536_v14, %v534_v9  ;;  %v538_v24 = vsel %vm6593_vm6, %v534_v9, %v536_v14  ;;  %v4803_v9 = vld [vmem:[%s6805_s3 + $0xd0] sm:$0xff]  ;;  %v4821_v14 = vld [vmem:[%s6805_s3 + $0x48] sm:$0xff]  ;;  %v4827_v15 = vld [vmem:[%s6805_s3 + $0xc0] sm:$0xff] }
  0xa6   : > { %3470 = vmatprep.subr.msk.mxu0 %vm4613_vm3, %v552_v18  ;;  %v4809_v10 = vld [vmem:[%s6805_s3 + $0x50] sm:$0xff]  ;;  %v4833_v18 = vld [vmem:[%s6805_s3 + $0x40] sm:$0xff] }
  0xa7   : > { %3471 = vmatpush1.msk.msra.mxu0 %vm4621_vm5, %v551_v19  ;;  %v4839_v19 = vld [vmem:[%s6805_s3 + $0xb8] sm:$0xff] }
  0xa8   : > { %v523_v22 = vpop.permute.xlu1 %522  ;;  %3472 = vmatprep.subr.msk.mxu0 %vm6592_vm0, %v539_v20  ;;  %v521_v23 = vpop.permute.xlu0 %520  ;;  %v4845_v20 = vld [vmem:[%s6805_s3 + $0x38] sm:$0xff] }
  0xa9   : > { %587 = vmatpush1.msra.mxu0 %v538_v24  ;;  %v526_v26 = vsel %vm6591_vm7, %v523_v22, %v521_v23  ;;  %v525_v27 = vsel %vm6591_vm7, %v521_v23, %v523_v22  ;;  %v4851_v22 = vld [vmem:[%s6805_s3 + $0xb0] sm:$0xff]  ;;  %v4863_v24 = vld [vmem:[%s6805_s3 + $0xa8] sm:$0xff]  ;;  %vm6597_vm7 = vcmask 449536  }
  0xaa   : > { %3473 = vmatprep.subr.msk.mxu0 %vm4641_vm8, %v526_v26  ;;  %v4857_v23 = vld [vmem:[%s6805_s3 + $0x30] sm:$0xff]  ;;  %v4869_v26 = vld [vmem:[%s6805_s3 + $0x28] sm:$0xff] }
  0xab   : > { %3474 = vmatpush1.msk.msra.mxu0 %vm4649_vm9, %v525_v27  ;;  %v4875_v27 = vld [vmem:[%s6805_s3 + $0xa0] sm:$0xff] }
  0xac   : > { %v510_v28 = vpop.permute.xlu1 %509  ;;  %v508_v29 = vpop.permute.xlu0 %507 }
  0xad   : > { %v513_v30 = vsel %vm6590_vm10, %v510_v28, %v508_v29  ;;  %v512_v31 = vsel %vm6590_vm10, %v508_v29, %v510_v28  ;;  %v4881_v28 = vld [vmem:[%s6805_s3 + $0x20] sm:$0xff]  ;;  %v4887_v29 = vld [vmem:[%s6805_s3 + $0x98] sm:$0xff] }
  0xae   : > { %3475 = vmatprep.subr.msk.mxu0 %vm4603_vm1, %v513_v30  ;;  %v4893_v30 = vld [vmem:[%s6805_s3 + $0x18] sm:$0xff] }
  0xaf   : > { %3476 = vmatpush1.msk.msra.mxu0 %vm4621_vm5, %v512_v31  ;;  %v4901_v31 = vld [vmem:[%s6805_s3 + $0x90] sm:$0xff] }
  0xb0   : > { %v497_v32 = vpop.permute.xlu1 %496  ;;  %592 = vmatprep.subr.mxu0 %v4559_v1  ;;  %v495_v33 = vpop.permute.xlu0 %494  ;;  %v4778_v1 = vld [vmem:[%s6805_s3 + $0xe0] sm:$0xff] }
  0xb1   : > { %593 = vmatpush1.msra.mxu0 %v4552_v0  ;;  %v499_v34 = vsel %vm6553_vm11, %v495_v33, %v497_v32  ;;  %v500_v35 = vsel %vm6553_vm11, %v497_v32, %v495_v33  ;;  %vm6572_vm11 = vcmp.lt.s32.totalorder %v4596_v6, 17  ;;  %3591 = vmatprep.subr.mxu1 %v4778_v1  ;;  %v4907_v32 = vld [vmem:[%s6805_s3 + $0x10] sm:$0xff]  ;;  %v4912_v33 = vld [vmem:[%s6805_s3 + $0x88] sm:$0xff] }
  0xb2   : > { %3477 = vmatprep.subr.msk.mxu0 %vm4617_vm4, %v499_v34  ;;  %3592 = vmatpush3.msra.mxu1 %v4784_v3  ;;  %v4917_v34 = vld [vmem:[%s6805_s3 + $0x8] sm:$0xff] }
  0xb3   : > { %3478 = vmatpush1.msk.msra.mxu0 %vm4649_vm9, %v500_v35  ;;  %3593 = vmatprep.subr.mxu1 %v4791_v5  ;;  %v4923_v35 = vld [vmem:[%s6805_s3 + $0x80] sm:$0xff] }
  0xb4   : > { %v484_v36 = vpop.permute.xlu1 %483  ;;  %v482_v37 = vpop.permute.xlu0 %481  ;;  %3594 = vmatpush3.msra.mxu1 %v4797_v8 }
  0xb5   : > { %v486_v39 = vsel %vm6554_vm13, %v482_v37, %v484_v36  ;;  %v487_v40 = vsel %vm6554_vm13, %v484_v36, %v482_v37  ;;  %vm4711_vm13 = vmand %vm6589_vm12, %vm4649_vm9  ;;  %3595 = vmatprep.subr.mxu1 %v4803_v9  ;;  %v4929_v36 = vld [vmem:[%s6805_s3] sm:$0xff] }
  0xb6   : > { %3479 = vmatprep.subr.msk.mxu0 %vm4603_vm1, %v486_v39  ;;  %v6802_v47 = vsel %vm4711_vm13, 4294967295, %v6801_v47  ;;  %3596 = vmatpush3.msra.mxu1 %v4809_v10 }
  0xb7   : > { %3480 = vmatpush1.msk.msra.mxu0 %vm4687_vm14, %v487_v40  ;;  %6803 = vst [vmem:[#allocation22_spill] sm:$0xff] %v6802_v47  ;;  %3597 = vmatprep.subr.mxu1 %v4815_v12  ;;  %v5309_v47 = vld [vmem:[%s6872_s7 + $0x18] sm:$0xff] }
  0xb8   : > { %v471_v41 = vpop.permute.xlu1 %470  ;;  %v469_v42 = vpop.permute.xlu0 %468  ;;  %3598 = vmatpush3.msra.mxu1 %v4821_v14 }
  0xb9   : > { %v473_v43 = vsel %vm6555_vm15, %v469_v42, %v471_v41  ;;  %v474_v44 = vsel %vm6555_vm15, %v471_v41, %v469_v42  ;;  %vm6602_vm15 = vcmask 588800   ;;  %3599 = vmatprep.subr.mxu1 %v4827_v15 }
  0xba   : > { %598 = vmatprep.subr.mxu0 %v473_v43  ;;  %3600 = vmatpush3.msra.mxu1 %v4833_v18 }
  0xbb   : > { %3481 = vmatpush1.msk.msra.mxu0 %vm6589_vm12, %v474_v44  ;;  %3601 = vmatprep.subr.mxu1 %v4839_v19  ;;  %vm6599_vm12 = vcmp.lt.s32.totalorder %v4596_v6, 56 }
  0xbc   : > { %v458_v45 = vpop.permute.xlu1 %457  ;;  %v456_v46 = vpop.permute.xlu0 %455  ;;  %3602 = vmatpush3.msra.mxu1 %v4845_v20 }
  0xbd   : > { %v460_v48 = vsel %vm6572_vm11, %v456_v46, %v458_v45  ;;  %v461_v49 = vsel %vm6572_vm11, %v458_v45, %v456_v46  ;;  %3603 = vmatprep.subr.mxu1 %v4851_v22  ;;  %vm6595_vm11 = vmmov 0  }
  0xbe   : > { %3482 = vmatprep.subr.msk.mxu0 %vm4617_vm4, %v460_v48  ;;  %3604 = vmatpush3.msra.mxu1 %v4857_v23 }
  0xbf   : > { %3483 = vmatpush1.msk.msra.mxu0 %vm4711_vm13, %v461_v49  ;;  %3605 = vmatprep.subr.mxu1 %v4863_v24 }
  0xc0   : > { %3484 = vmatmul.mubr.msk.f32.vlgmr.msra.gmra.mxu0 %vm6602_vm15, %v4722_v50  ;;  %3889 = vmatprep.subr.mxu0 %v6624_v2 }
  0xc1   : > { %3606 = vmatpush3.msra.mxu1 %v4869_v26  ;;  %3907 = vmatprep.mubr.msk.f32.mxu0 %vm6595_vm11, %v6624_v2 }
  0xc2   : > { %3607 = vmatprep.subr.mxu1 %v4875_v27 }
  0xc3   : > { %3608 = vmatpush3.msra.mxu1 %v4881_v28 }
  0xc4   : > { %3609 = vmatprep.subr.mxu1 %v4887_v29 }
  0xc5   : > { %3610 = vmatpush3.msra.mxu1 %v4893_v30 }
  0xc6   : > { %3611 = vmatprep.subr.mxu1 %v4901_v31 }
  0xc7   : > { %3612 = vmatpush3.msra.mxu1 %v4907_v32 }
  0xc8   : > { %3613 = vmatprep.subr.mxu1 %v4912_v33 }
  0xc9   : > { %v564_v51 = vpop.permute.xlu0 %563  ;;  %3614 = vmatpush3.msra.mxu1 %v4917_v34 }
  0xca   : > { %3615 = vmatprep.subr.mxu1 %v4923_v35 }
  0xcb   : > { %3616 = vmatpush3.msra.mxu1 %v4929_v36 }
  0xcc   : > { %3910 = vmatprep.subr.mxu1 %v6624_v2 }
 0x180   : > { %v636_v52 = vpop.f32.mrf.mxu0 }
 0x181   : > { %v4731_v53 = vadd.f32 %v636_v52, %v564_v51 }
 0x182   : > { %v638_v54 = vpop.f32.mrf.mxu0 }
 0x183   : > { %v4733_v55 = vadd.f32 %v638_v54, %v564_v51  ;;  %v641_v60 = vmax.f32 %v4731_v53, 0.0 }
 0x185   : > { %v642_v61 = vmax.f32 %v4733_v55, 0.0 }
 0x187   : > { %v4303_v0 = vpack.i.bf16 %v642_v61, %v641_v60 }
 0x189   : > { %4304 = vrot.lane.b32.xlu1 %v4303_v0, %s6583_s24 }
 0x1fb   : > { %v4305_v37 = vpop.permute.xlu1 %4304 }
 0x1fc   : > { %v4307_v39 = vunpack.i.h.bf16 %v4305_v37  ;;  %v4306_v40 = vunpack.i.l.bf16 %v4305_v37  ;;  %v437_v37 = vand.u32 7, %v4596_v6 }
 0x1fe   : > { %v647_v41 = vsel %vm6590_vm10, %v4306_v40, %v4307_v39  ;;  %v648_v42 = vsel %vm6590_vm10, %v4307_v39, %v4306_v40  ;;  %vm4994_vm10 = vcmp.le.s32.totalorder %v437_v37, 6  ;;  %v6810_v39 = vmov 0 }
 0x1ff   : > { %v649_v43 = vmax.f32 %v641_v60, %v647_v41  ;;  %v650_v44 = vmax.f32 %v642_v61, %v648_v42  ;;  %v4989_v61 = vld [vmem:[%s6808_s5] sm:$0xff]  ;;  %v6811_v39 = vsel %vm4994_vm10, 4294967295, %v6810_v39  ;;  %vm5002_vm0 = vmand %vm6599_vm12, %vm4994_vm10  ;;  %v6813_v40 = vmov 0  ;;  %s6935_s5 = smov 64  }
 0x200   : > { %6809 = vst [vmem:[#allocation23_spill] sm:$0xff] %v4989_v61  ;;  %6812 = vst [vmem:[#allocation24_spill] sm:$0xff] %v6811_v39  ;;  %v6814_v40 = vsel %vm5002_vm0, 4294967295, %v6813_v40  ;;  %vm5010_vm2 = vcmp.ge.s32.totalorder %v437_v37, 1 }
 0x201   : > { %v4308_v45 = vpack.i.bf16 %v650_v44, %v649_v43  ;;  %6815 = vst [vmem:[#allocation25_spill] sm:$0xff] %v6814_v40 }
 0x203   : > { %4309 = vrot.lane.b32.xlu1 %v4308_v45, %s6806_s30 }
 0x275   : > { %v4310_v46 = vpop.permute.xlu1 %4309 }
 0x276   : > { %v4312_v48 = vunpack.i.h.bf16 %v4310_v46  ;;  %v4311_v49 = vunpack.i.l.bf16 %v4310_v46  ;;  %v6816_v46 = vmov 0 }
 0x277   : > { %v6817_v46 = vsel %vm5010_vm2, 4294967295, %v6816_v46 }
 0x278   : > { %v656_v51 = vsel %vm6593_vm6, %v4312_v48, %v4311_v49  ;;  %v655_v52 = vsel %vm6593_vm6, %v4311_v49, %v4312_v48  ;;  %vm6598_vm6 = vcmask 457728   ;;  %6818 = vst [vmem:[#allocation26_spill] sm:$0xff] %v6817_v46  ;;  %v6819_v49 = vmov 0 }
 0x279   : > { %v658_v54 = vmax.f32 %v650_v44, %v656_v51  ;;  %v657_v0 = vmax.f32 %v649_v43, %v655_v52 }
 0x27b   : > { %755 = vmatprep.mubr.f32.mxu1 %v658_v54 }
 0x27c   : > { %756 = vmatmul.mubr.f32.vlgmr.msra.gmra.mxu1 %v657_v0 }
 0x27d   : > { %3926 = vmatprep.mubr.msk.f32.mxu1 %vm6595_vm11, %v6624_v2  ;;  %vm6600_vm11 = vcmask 465920  }
 0x33c   : > { %v3617_v53 = vpop.f32.mrf.mxu1 }
 0x33e   : > { %v3618_v60 = vpop.f32.mrf.mxu1 }
 0x33f   : > { %v4948_v55 = vadd.f32 %v3618_v60, %v3617_v53 }
 0x341   : > { %842 = vrot.lane.b32.xlu1 %v4948_v55, %s6570_s12  ;;  %839 = vrot.lane.b32.xlu0 %v4948_v55, %s6568_s16  ;;  %s6807_s16 = smov 1   ;;  %s6579_s12 = smov 65  }
 0x345   : > { %831 = vrot.lane.b32.xlu1 %v4948_v55, %s6581_s29  ;;  %828 = vrot.lane.b32.xlu0 %v4948_v55, %s6577_s15  ;;  %s6615_s15 = smov 8   ;;  %s6611_s29 = smov 9  }
 0x349   : > { %820 = vrot.lane.b32.xlu1 %v4948_v55, %s6575_s25  ;;  %817 = vrot.lane.b32.xlu0 %v4948_v55, %s6573_s22  ;;  %s6585_s22 = smov 7   ;;  %s6619_s25 = smov 71  }
 0x34d   : > { %809 = vrot.lane.b32.xlu1 %v4948_v55, %s6587_s13  ;;  %806 = vrot.lane.b32.xlu0 %v4948_v55, %s6583_s24  ;;  %s6609_s24 = smov 73   ;;  %s6848_s13 = smov 15  }
 0x351   : > { %798 = vrot.lane.b32.xlu1 %v4948_v55, %s6807_s16  ;;  %795 = vrot.lane.b32.xlu0 %v4948_v55, %s6579_s12  ;;  %s6613_s12 = smov 72  }
 0x355   : > { %787 = vrot.lane.b32.xlu1 %v4948_v55, %s6585_s22  ;;  %784 = vrot.lane.b32.xlu0 %v4948_v55, %s6619_s25  ;;  %s6844_s25 = smov 56   ;;  %s6847_s22 = smov 113  }
 0x359   : > { %776 = vrot.lane.b32.xlu1 %v4948_v55, %s6615_s15  ;;  %773 = vrot.lane.b32.xlu0 %v4948_v55, %s6613_s12  ;;  %s6845_s12 = smov 120   ;;  %s6846_s15 = smov 111  }
 0x35d   : > { %765 = vrot.lane.b32.xlu1 %v4948_v55, %s6611_s29  ;;  %762 = vrot.lane.b32.xlu0 %v4948_v55, %s6609_s24  ;;  %s6839_s24 = smov 63   ;;  %s6840_s29 = smov 127  }
 0x361   : > { %854 = vperm.xlu0 %4302, %v4989_v61  }
 0x3b3   : > { %v843_v41 = vpop.permute.xlu1 %842  ;;  %v840_v42 = vpop.permute.xlu0 %839 }
 0x3b4   : > { %v846_v43 = vsel %vm6597_vm7, %v840_v42, %v843_v41  ;;  %vm5022_vm7 = vmand %vm6599_vm12, %vm5010_vm2 }
 0x3b5   : > { %3890 = vmatpush3.msk.msra.mxu0 %vm5002_vm0, %v846_v43  ;;  %v6820_v49 = vsel %vm5022_vm7, 4294967295, %v6819_v49  ;;  %v6822_v43 = vmov 0 }
 0x3b6   : > { %3891 = vmatprep.subr.mxu0 %v6624_v2  ;;  %6821 = vst [vmem:[#allocation27_spill] sm:$0xff] %v6820_v49 }
 0x3b7   : > { %v832_v44 = vpop.permute.xlu1 %831  ;;  %v829_v45 = vpop.permute.xlu0 %828 }
 0x3b8   : > { %v835_v48 = vsel %vm6598_vm6, %v829_v45, %v832_v44  ;;  %vm6601_vm6 = vcmask 515072  }
 0x3b9   : > { %3892 = vmatpush3.msk.msra.mxu0 %vm6599_vm12, %v835_v48  ;;  %vm6603_vm12 = vcmask 7168  }
 0x3ba   : > { %3893 = vmatprep.subr.mxu0 %v6624_v2 }
 0x3bb   : > { %v821_v51 = vpop.permute.xlu1 %820  ;;  %v818_v52 = vpop.permute.xlu0 %817 }
 0x3bc   : > { %v824_v54 = vsel %vm6600_vm11, %v818_v52, %v821_v51  ;;  %vm6608_vm11 = vcmp.ge.s32.totalorder %v4596_v6, 8 }
 0x3bd   : > { %3894 = vmatpush3.msk.msra.mxu0 %vm5022_vm7, %v824_v54  ;;  %vm5045_vm15 = vmand %vm6608_vm11, %vm4994_vm10  ;;  %v6825_v54 = vmov 0 }
 0x3be   : > { %3895 = vmatprep.subr.mxu0 %v6624_v2  ;;  %v6823_v43 = vsel %vm5045_vm15, 4294967295, %v6822_v43 }
 0x3bf   : > { %v810_v0 = vpop.permute.xlu1 %809  ;;  %v807_v53 = vpop.permute.xlu0 %806  ;;  %6824 = vst [vmem:[#allocation28_spill] sm:$0xff] %v6823_v43 }
 0x3c0   : > { %v813_v60 = vsel %vm6601_vm6, %v807_v53, %v810_v0  ;;  %vm6606_vm6 = vcmask 56320  }
 0x3c1   : > { %3896 = vmatpush3.msk.msra.mxu0 %vm4994_vm10, %v813_v60  ;;  %vm6623_vm10 = vcmask 72704   ;;  %v5068_v60 = vld [vmem:[%s6828_s4] sm:$0xff]  ;;  %s6934_s4 = smov 32  }
 0x3c2   : > { %3897 = vmatprep.subr.mxu0 %v6624_v2  ;;  %6829 = vst [vmem:[#allocation30_spill] sm:$0xff] %v5068_v60 }
 0x3c3   : > { %v799_v37 = vpop.permute.xlu1 %798  ;;  %3898 = vmatpush3.msra.mxu0 %v4948_v55  ;;  %v796_v41 = vpop.permute.xlu0 %795 }
 0x3c4   : > { %v802_v42 = vsel %vm6603_vm12, %v796_v41, %v799_v37  ;;  %3899 = vmatprep.subr.mxu0 %v6624_v2  ;;  %vm6607_vm12 = vcmask 64512   ;;  %v5081_v41 = vld [vmem:[%s6832_s6 + $0x38] sm:$0xff] }
 0x3c5   : > { %3900 = vmatpush3.msk.msra.mxu0 %vm5010_vm2, %v802_v42  ;;  %6833 = vst [vmem:[#allocation31_spill] sm:$0xff] %v5081_v41  ;;  %v5086_v42 = vld [vmem:[%s6832_s6 + $0x30] sm:$0xff]  ;;  %3911 = vmatpush3.msra.mxu1 %v5081_v41  ;;  %v6854_v41 = vmov 0.0  }
 0x3c6   : > { %3901 = vmatprep.subr.mxu0 %v6624_v2  ;;  %6834 = vst [vmem:[#allocation32_spill] sm:$0xff] %v5086_v42  ;;  %3912 = vmatprep.subr.mxu1 %v6624_v2 }
 0x3c7   : > { %v788_v55 = vpop.permute.xlu1 %787  ;;  %v785_v44 = vpop.permute.xlu0 %784  ;;  %3913 = vmatpush3.msra.mxu1 %v5086_v42 }
 0x3c8   : > { %v791_v45 = vsel %vm6606_vm6, %v785_v44, %v788_v55  ;;  %vm5061_vm6 = vmand %vm6608_vm11, %vm5010_vm2  ;;  %3914 = vmatprep.subr.mxu1 %v6624_v2  ;;  %v5095_v55 = vld [vmem:[%s6832_s6 + $0x28] sm:$0xff]  ;;  %v5100_v44 = vld [vmem:[%s6832_s6 + $0x20] sm:$0xff] }
 0x3c9   : > { %3902 = vmatpush3.msk.msra.mxu0 %vm5045_vm15, %v791_v45  ;;  %v6826_v54 = vsel %vm5061_vm6, 4294967295, %v6825_v54  ;;  %6835 = vst [vmem:[#allocation33_spill] sm:$0xff] %v5095_v55  ;;  %6836 = vst [vmem:[#allocation34_spill] sm:$0xff] %v5100_v44  ;;  %3915 = vmatpush3.msra.mxu1 %v5095_v55 }
 0x3ca   : > { %3903 = vmatprep.subr.mxu0 %v6624_v2  ;;  %6827 = vst [vmem:[#allocation29_spill] sm:$0xff] %v6826_v54  ;;  %3916 = vmatprep.subr.mxu1 %v6624_v2 }
 0x3cb   : > { %v777_v48 = vpop.permute.xlu1 %776  ;;  %v774_v51 = vpop.permute.xlu0 %773  ;;  %3917 = vmatpush3.msra.mxu1 %v5100_v44  ;;  %v3497_v44 = vld [vmem:[%s4549_s14 + $0x18] sm:$0xff] }
 0x3cc   : > { %v780_v52 = vsel %vm6607_vm12, %v774_v51, %v777_v48  ;;  %vm6830_vm12 = vcmask 588800   ;;  %3918 = vmatprep.subr.mxu1 %v6624_v2 }
 0x3cd   : > { %3904 = vmatpush3.msk.msra.mxu0 %vm6608_vm11, %v780_v52  ;;  %vm6831_vm11 = vmmov 0  }
 0x3ce   : > { %3905 = vmatprep.subr.mxu0 %v6624_v2 }
 0x3cf   : > { %v766_v0 = vpop.permute.xlu1 %765  ;;  %v763_v53 = vpop.permute.xlu0 %762 }
 0x3d0   : > { %v769_v37 = vsel %vm6623_vm10, %v763_v53, %v766_v0  ;;  %v5109_v53 = vld [vmem:[%s6832_s6 + $0x18] sm:$0xff]  ;;  %vm6634_vm10 = vcmask 523264  }
 0x3d1   : > { %3906 = vmatpush3.msk.msra.mxu0 %vm5061_vm6, %v769_v37  ;;  %6837 = vst [vmem:[#allocation35_spill] sm:$0xff] %v5109_v53  ;;  %3919 = vmatpush3.msra.mxu1 %v5109_v53  ;;  %v5115_v37 = vld [vmem:[%s6832_s6 + $0x10] sm:$0xff]  ;;  %vm6852_vm6 = vcmp.lt.s32.totalorder %v4596_v6, 111 }
 0x3d2   : > { %3908 = vmatmul.mubr.msk.f32.vlgmr.msra.gmra.mxu0 %vm6830_vm12, %v5068_v60  ;;  %3929 = vmatprep.subr.mxu0 %v6624_v2  ;;  %6838 = vst [vmem:[#allocation36_spill] sm:$0xff] %v5115_v37  ;;  %vm6843_vm12 = vcmask 515072   ;;  %vm6853_vm15 = vmmov %vm6852_vm6 }
 0x3d3   : > { %3961 = vmatprep.mubr.msk.f32.mxu0 %vm6831_vm11, %v6624_v2  ;;  %3920 = vmatprep.subr.mxu1 %v6624_v2 }
 0x3d4   : > { %3921 = vmatpush3.msra.mxu1 %v5115_v37 }
 0x3d5   : > { %3922 = vmatprep.subr.mxu1 %v6624_v2 }
 0x3dc   : > { %v855_v45 = vpop.permute.xlu0 %854 }
 0x492   : > { %v926_v48 = vpop.f32.mrf.mxu0 }
 0x493   : > { %v927_v51 = vadd.f32 %v926_v48, %v855_v45  ;;  %v5125_v45 = vld [vmem:[%s6832_s6 + $0x8] sm:$0xff]  ;;  %v5132_v48 = vld [vmem:[%s6832_s6] sm:$0xff]  ;;  %s6896_s6 = smov 73  }
 0x494   : > { %v3909_v52 = vpop.f32.mrf.mxu0  ;;  %6841 = vst [vmem:[#allocation37_spill] sm:$0xff] %v5125_v45  ;;  %3923 = vmatpush3.msra.mxu1 %v5125_v45  ;;  %6842 = vst [vmem:[#allocation38_spill] sm:$0xff] %v5132_v48  ;;  %v3496_v45 = vld [vmem:[%s4549_s14 + $0x10] sm:$0xff] }
 0x495   : > { %v930_v0 = vmax.f32 %v927_v51, 0.0  ;;  %3924 = vmatprep.subr.mxu1 %v6624_v2 }
 0x496   : > { %3925 = vmatpush3.msra.mxu1 %v5132_v48 }
 0x497   : > { %935 = vrot.lane.b32.xlu0 %v930_v0, %s6839_s24  ;;  %932 = vrot.lane.b32.xlu1 %v930_v0, %s6840_s29 }
 0x509   : > { %v936_v51 = vpop.permute.xlu0 %935  ;;  %v933_v52 = vpop.permute.xlu1 %932 }
 0x50a   : > { %v938_v37 = vsel %vm6843_vm12, %v933_v52, %v936_v51  ;;  %vm6851_vm12 = vcmask 457728  }
 0x50b   : > { %v939_v53 = vmax.f32 %v930_v0, %v938_v37 }
 0x50d   : > { %944 = vrot.lane.b32.xlu0 %v939_v53, %s6844_s25  ;;  %941 = vrot.lane.b32.xlu1 %v939_v53, %s6845_s12 }
 0x511   : > { %1302 = vrot.lane.b32.xlu0 %v3497_v44, %s6846_s15  ;;  %1300 = vrot.lane.b32.xlu1 %v3496_v45, %s6846_s15 }
 0x515   : > { %1294 = vrot.lane.b32.xlu0 %v3497_v44, %s6806_s30  ;;  %1292 = vrot.lane.b32.xlu1 %v3496_v45, %s6806_s30 }
 0x519   : > { %1286 = vrot.lane.b32.xlu0 %v3497_v44, %s6847_s22  ;;  %1284 = vrot.lane.b32.xlu1 %v3496_v45, %s6847_s22 }
 0x51d   : > { %1278 = vrot.lane.b32.xlu0 %v3497_v44, %s6840_s29  ;;  %1276 = vrot.lane.b32.xlu1 %v3496_v45, %s6840_s29 }
 0x521   : > { %1270 = vrot.lane.b32.xlu0 %v3497_v44, %s6807_s16  ;;  %1268 = vrot.lane.b32.xlu1 %v3496_v45, %s6807_s16 }
 0x525   : > { %1262 = vrot.lane.b32.xlu0 %v3497_v44, %s6848_s13  ;;  %1260 = vrot.lane.b32.xlu1 %v3496_v45, %s6848_s13 }
 0x529   : > { %1254 = vrot.lane.b32.xlu0 %v3497_v44, %s6849_s0  ;;  %1252 = vrot.lane.b32.xlu1 %v3496_v45, %s6849_s0 }
 0x52d   : > { %1246 = vrot.lane.b32.xlu0 %v3497_v44, %s6850_s26  ;;  %1244 = vrot.lane.b32.xlu1 %v3496_v45, %s6850_s26 }
 0x57f   : > { %v945_v0 = vpop.permute.xlu0 %944  ;;  %v942_v37 = vpop.permute.xlu1 %941 }
 0x580   : > { %v947_v51 = vsel %vm6851_vm12, %v942_v37, %v945_v0  ;;  %vm6855_vm12 = vcmp.lt.s32.totalorder %v4596_v6, 112 }
 0x581   : > { %v948_v52 = vmax.f32 %v939_v53, %v947_v51 }
 0x583   : > { %3927 = vmatmul.mubr.msk.f32.vlgmr.msra.gmra.mxu1 %vm6634_vm10, %v948_v52  ;;  %v1303_v2 = vpop.permute.xlu0 %1302  ;;  %v1301_v48 = vpop.permute.xlu1 %1300  ;;  %vm6856_vm10 = vmmov %vm6855_vm12 }
 0x584   : > { %v1304_v55 = vsel %vm6852_vm6, %v1301_v48, %v1303_v2  ;;  %v1305_v42 = vsel %vm6853_vm15, %v1303_v2, %v1301_v48  ;;  %1382 = vmatprep.mubr.f32.mxu1 %v6854_v41  ;;  %vm6857_vm6 = vcmp.lt.s32.totalorder %v4599_v7, 240  ;;  %vm6858_vm15 = vcmp.lt.s32.totalorder %v4596_v6, 113 }
 0x585   : > { %3498 = vmatprep.subr.msk.mxu1 %vm4613_vm3, %v1305_v42  ;;  %vm6859_vm3 = vmmov %vm6858_vm15 }
 0x586   : > { %3499 = vmatpush1.msk.msra.mxu1 %vm4621_vm5, %v1304_v55 }
 0x587   : > { %v1295_v0 = vpop.permute.xlu0 %1294  ;;  %v1293_v53 = vpop.permute.xlu1 %1292 }
 0x588   : > { %v1297_v37 = vsel %vm6855_vm12, %v1295_v0, %v1293_v53  ;;  %v1296_v51 = vsel %vm6856_vm10, %v1293_v53, %v1295_v0  ;;  %vm6860_vm10 = vcmp.lt.s32.totalorder %v4596_v6, 127 }
 0x589   : > { %3500 = vmatprep.subr.msk.mxu1 %vm6857_vm6, %v1297_v37  ;;  %vm6861_vm12 = vmmov %vm6860_vm10 }
 0x58a   : > { %1335 = vmatpush1.msra.mxu1 %v1296_v51 }
 0x58b   : > { %v1287_v2 = vpop.permute.xlu0 %1286  ;;  %v1285_v48 = vpop.permute.xlu1 %1284 }
 0x58c   : > { %v1288_v42 = vsel %vm6858_vm15, %v1285_v48, %v1287_v2  ;;  %v1289_v55 = vsel %vm6859_vm3, %v1287_v2, %v1285_v48  ;;  %vm6862_vm3 = vcmp.lt.s32.totalorder %v4596_v6, 1  ;;  %vm6864_vm15 = vcmp.lt.s32.totalorder %v4596_v6, 15 }
 0x58d   : > { %3501 = vmatprep.subr.msk.mxu1 %vm4641_vm8, %v1289_v55  ;;  %vm6863_vm6 = vmmov %vm6862_vm3 }
 0x58e   : > { %3502 = vmatpush1.msk.msra.mxu1 %vm4649_vm9, %v1288_v42 }
 0x58f   : > { %v1279_v52 = vpop.permute.xlu0 %1278  ;;  %v1277_v0 = vpop.permute.xlu1 %1276 }
 0x590   : > { %v1280_v53 = vsel %vm6860_vm10, %v1277_v0, %v1279_v52  ;;  %v1281_v37 = vsel %vm6861_vm12, %v1279_v52, %v1277_v0  ;;  %vm6865_vm10 = vmmov %vm6864_vm15  ;;  %vm6866_vm12 = vcmp.lt.s32.totalorder %v4596_v6, 16 }
 0x591   : > { %3503 = vmatprep.subr.msk.mxu1 %vm4603_vm1, %v1281_v37 }
 0x592   : > { %3504 = vmatpush1.msk.msra.mxu1 %vm4621_vm5, %v1280_v53 }
 0x593   : > { %v1271_v51 = vpop.permute.xlu0 %1270  ;;  %v1269_v2 = vpop.permute.xlu1 %1268  ;;  %1340 = vmatprep.subr.mxu1 %v3497_v44 }
 0x594   : > { %v1273_v48 = vsel %vm6862_vm3, %v1271_v51, %v1269_v2  ;;  %1341 = vmatpush1.msra.mxu1 %v3496_v45  ;;  %v1272_v42 = vsel %vm6863_vm6, %v1269_v2, %v1271_v51  ;;  %vm6867_vm3 = vmmov %vm6866_vm12  ;;  %vm6868_vm6 = vcmp.ge.s32.totalorder %v4596_v6, 16 }
 0x595   : > { %3505 = vmatprep.subr.msk.mxu1 %vm4617_vm4, %v1272_v42 }
 0x596   : > { %3506 = vmatpush1.msk.msra.mxu1 %vm4649_vm9, %v1273_v48 }
 0x597   : > { %v1263_v55 = vpop.permute.xlu0 %1262  ;;  %v1261_v52 = vpop.permute.xlu1 %1260 }
 0x598   : > { %v1265_v0 = vsel %vm6864_vm15, %v1263_v55, %v1261_v52  ;;  %v1264_v44 = vsel %vm6865_vm10, %v1261_v52, %v1263_v55  ;;  %vm6869_vm15 = vcmp.lt.s32.totalorder %v4596_v6, 17  ;;  %v5227_v52 = vld [vmem:[%s6872_s7 + $0x78] sm:$0xff] }
 0x599   : > { %3507 = vmatprep.subr.msk.mxu1 %vm4603_vm1, %v1264_v44  ;;  %vm6870_vm10 = vmmov %vm6869_vm15  ;;  %3930 = vmatpush3.msra.mxu0 %v5227_v52  ;;  %v5246_v44 = vld [vmem:[%s6872_s7 + $0x60] sm:$0xff] }
 0x59a   : > { %3508 = vmatpush1.msk.msra.mxu1 %vm4687_vm14, %v1265_v0  ;;  %v5232_v0 = vld [vmem:[%s6872_s7 + $0x70] sm:$0xff]  ;;  %3931 = vmatprep.subr.mxu0 %v6854_v41  ;;  %vm6689_vm14 = vcmask 916480  }
 0x59b   : > { %v1255_v45 = vpop.permute.xlu0 %1254  ;;  %v1253_v53 = vpop.permute.xlu1 %1252  ;;  %3932 = vmatpush3.msra.mxu0 %v5232_v0 }
 0x59c   : > { %v1257_v37 = vsel %vm6866_vm12, %v1255_v45, %v1253_v53  ;;  %v1256_v51 = vsel %vm6867_vm3, %v1253_v53, %v1255_v45  ;;  %vm6871_vm12 = vcmask 588800   ;;  %3933 = vmatprep.subr.mxu0 %v6854_v41  ;;  %v5253_v45 = vld [vmem:[%s6872_s7 + $0x58] sm:$0xff]  ;;  %v5260_v53 = vld [vmem:[%s6872_s7 + $0x50] sm:$0xff]  ;;  %vm6708_vm3 = vcmask 130048  }
 0x59d   : > { %1346 = vmatprep.subr.mxu1 %v1256_v51  ;;  %v5274_v51 = vld [vmem:[%s6872_s7 + $0x40] sm:$0xff] }
 0x59e   : > { %3509 = vmatpush1.msk.msra.mxu1 %vm6868_vm6, %v1257_v37  ;;  %v5267_v37 = vld [vmem:[%s6872_s7 + $0x48] sm:$0xff]  ;;  %vm6707_vm6 = vcmask 261120  }
 0x59f   : > { %v1247_v2 = vpop.permute.xlu0 %1246  ;;  %v1245_v48 = vpop.permute.xlu1 %1244 }
 0x5a0   : > { %v1249_v42 = vsel %vm6869_vm15, %v1247_v2, %v1245_v48  ;;  %v1248_v55 = vsel %vm6870_vm10, %v1245_v48, %v1247_v2  ;;  %v5281_v2 = vld [vmem:[%s6872_s7 + $0x38] sm:$0xff]  ;;  %v5290_v48 = vld [vmem:[%s6872_s7 + $0x30] sm:$0xff]  ;;  %vm6706_vm15 = vcmask 392192   ;;  %vm6705_vm10 = vcmask 654336  }
 0x5a1   : > { %3510 = vmatprep.subr.msk.mxu1 %vm4617_vm4, %v1248_v55  ;;  %v5304_v55 = vld [vmem:[%s6872_s7 + $0x20] sm:$0xff] }
 0x5a2   : > { %3511 = vmatpush1.msk.msra.mxu1 %vm4711_vm13, %v1249_v42  ;;  %v5295_v42 = vld [vmem:[%s6872_s7 + $0x28] sm:$0xff]  ;;  %vm6704_vm13 = vcmask 785408  }
 0x5a3   : > { %3512 = vmatmul.mubr.msk.f32.vlgmr.msra.gmra.mxu1 %vm6871_vm12, %v4722_v50  ;;  %3975 = vmatprep.subr.mxu1 %v6854_v41  ;;  %v5239_v50 = vld [vmem:[%s6872_s7 + $0x68] sm:$0xff]  ;;  %vm6873_vm12 = vcmask 523264   ;;  %s6895_s7 = smov 9  }
 0x5a4   : > { %3993 = vmatprep.mubr.msk.f32.mxu1 %vm6831_vm11, %v6854_v41  ;;  %3934 = vmatpush3.msra.mxu0 %v5239_v50 }
 0x5a5   : > { %3935 = vmatprep.subr.mxu0 %v6854_v41 }
 0x5a6   : > { %3936 = vmatpush3.msra.mxu0 %v5246_v44 }
 0x5a7   : > { %3937 = vmatprep.subr.mxu0 %v6854_v41 }
 0x5a8   : > { %3938 = vmatpush3.msra.mxu0 %v5253_v45 }
 0x5a9   : > { %3939 = vmatprep.subr.mxu0 %v6854_v41 }
 0x5aa   : > { %3940 = vmatpush3.msra.mxu0 %v5260_v53 }
 0x5ab   : > { %3941 = vmatprep.subr.mxu0 %v6854_v41 }
 0x5ac   : > { %3942 = vmatpush3.msra.mxu0 %v5267_v37 }
 0x5ad   : > { %3943 = vmatprep.subr.mxu0 %v6854_v41 }
 0x5ae   : > { %3944 = vmatpush3.msra.mxu0 %v5274_v51 }
 0x5af   : > { %3945 = vmatprep.subr.mxu0 %v6854_v41 }
 0x5b0   : > { %3946 = vmatpush3.msra.mxu0 %v5281_v2 }
 0x5b1   : > { %3947 = vmatprep.subr.mxu0 %v6854_v41 }
 0x5b2   : > { %3948 = vmatpush3.msra.mxu0 %v5290_v48 }
 0x5b3   : > { %3949 = vmatprep.subr.mxu0 %v6854_v41 }
 0x5b4   : > { %3950 = vmatpush3.msra.mxu0 %v5295_v42 }
 0x5b5   : > { %3951 = vmatprep.subr.mxu0 %v6854_v41 }
 0x5b6   : > { %3952 = vmatpush3.msra.mxu0 %v5304_v55 }
 0x5b7   : > { %3953 = vmatprep.subr.mxu0 %v6854_v41 }
 0x5b8   : > { %3954 = vmatpush3.msra.mxu0 %v5309_v47 }
 0x5b9   : > { %3955 = vmatprep.subr.mxu0 %v6854_v41 }
 0x5ba   : > { %3956 = vmatpush3.msra.mxu0 %v5318_v38 }
 0x5bb   : > { %3957 = vmatprep.subr.mxu0 %v6854_v41 }
 0x5bc   : > { %3958 = vmatpush3.msra.mxu0 %v5323_v16 }
 0x5bd   : > { %3959 = vmatprep.subr.mxu0 %v6854_v41 }
 0x5be   : > { %3960 = vmatpush3.msra.mxu0 %v5332_v17 }
 0x5bf   : > { %3964 = vmatprep.subr.mxu0 %v6854_v41 }
 0x643   : > { %v1027_v11 = vpop.f32.mrf.mxu1 }
 0x644   : > { %v1036_v25 = vrot.slane %v1027_v11, 2  ;;  %v1032_v21 = vrot.slane %v1027_v11, 1  ;;  %v1044_v13 = vrot.slane %v1027_v11, 4  ;;  %v1040_v60 = vrot.slane %v1027_v11, 3 }
 0x645   : > { %v3928_v7 = vpop.f32.mrf.mxu1  ;;  %v1048_v54 = vrot.slane %v1027_v11, 5 }
 0x646   : > { %1037 = vrot.lane.b32.xlu0 %v1036_v25, %s6687_s17  ;;  %1033 = vrot.lane.b32.xlu1 %v1032_v21, %s6849_s0  ;;  %v1052_v7 = vrot.slane %v1027_v11, 6  ;;  %v1056_v21 = vrot.slane %v1027_v11, 7 }
 0x64a   : > { %1045 = vrot.lane.b32.xlu0 %v1044_v13, %s6685_s28  ;;  %1041 = vrot.lane.b32.xlu1 %v1040_v60, %s6683_s11  ;;  %s6697_s11 = sand.u32 1, %s4396_s18   ;;  %s6886_s28 = smov 55  }
 0x64b   : > { %s6892_s18 = smov 71  }
 0x64e   : > { %1053 = vrot.lane.b32.xlu0 %v1052_v7, %s6681_s20  ;;  %1049 = vrot.lane.b32.xlu1 %v1048_v54, %s6679_s19  ;;  %s3466_s20 = sshll.u32 %s6697_s11, 2  ;;  %s6888_s19 = smov 57  }
 0x64f   : > { %s5466_s17 = scalar_lea.vmem [#allocation2], %s3466_s20  ;;  %s6890_s20 = smov 65  }
 0x650   : > { %6885 = sst [smem:[#allocation43_spill]] %s5466_s17  ;;  %s6891_s11 = smov 7  }
 0x652   : > { %1312 = vperm.xlu0 %4302, %v4593_v4   ;;  %1057 = vrot.lane.b32.xlu1 %v1056_v21, %s6806_s30 }
 0x6b8   : > { %v1038_v25 = vpop.permute.xlu0 %1037  ;;  %v1034_v43 = vpop.permute.xlu1 %1033 }
 0x6b9   : > { %v1061_v13 = vsel %vm6708_vm3, %v1027_v11, %v1034_v43  ;;  %vm6918_vm3 = vcmask 588800  }
 0x6ba   : > { %v1063_v46 = vsel %vm6707_vm6, %v1061_v13, %v1038_v25  ;;  %v1384_v25 = vpop.f32.mrf.mxu1 }
 0x6bc   : > { %v1046_v60 = vpop.permute.xlu0 %1045  ;;  %v1042_v39 = vpop.permute.xlu1 %1041 }
 0x6bd   : > { %v1065_v7 = vsel %vm6706_vm15, %v1063_v46, %v1042_v39  ;;  %v1386_v39 = vpop.f32.mrf.mxu1  ;;  %vm6912_vm15 = vcmask 64512  }
 0x6be   : > { %v1066_v54 = vsel %vm6873_vm12, %v1065_v7, %v1046_v60  ;;  %vm6879_vm12 = vcmp.lt.s32.totalorder %v4596_v6, 127 }
 0x6c0   : > { %v1050_v49 = vpop.permute.xlu1 %1049  ;;  %v1054_v4 = vpop.permute.xlu0 %1053 }
 0x6c1   : > { %v1068_v21 = vsel %vm6705_vm10, %v1066_v54, %v1050_v49  ;;  %v5356_v49 = vld [vmem:[%s6874_s9 + $0x18] sm:$0xff]  ;;  %vm6902_vm10 = vcmask 465920  }
 0x6c2   : > { %v1070_v40 = vsel %vm6704_vm13, %v1068_v21, %v1054_v4  ;;  %6875 = vst [vmem:[#allocation39_spill] sm:$0xff] %v5356_v49  ;;  %v5364_v4 = vld [vmem:[%s6874_s9 + $0x10] sm:$0xff]  ;;  %v5371_v21 = vld [vmem:[%s6874_s9 + $0x8] sm:$0xff]  ;;  %vm6901_vm13 = vcmp.lt.s32.totalorder %v4596_v6, 56 }
 0x6c3   : > { %6876 = vst [vmem:[#allocation40_spill] sm:$0xff] %v5364_v4  ;;  %6877 = vst [vmem:[#allocation41_spill] sm:$0xff] %v5371_v21 }
 0x6c4   : > { %v1058_v11 = vpop.permute.xlu1 %1057 }
 0x6c5   : > { %v1072_v43 = vsel %vm6689_vm14, %v1070_v40, %v1058_v11  ;;  %v5377_v11 = vld [vmem:[%s6874_s9] sm:$0xff]  ;;  %vm6880_vm14 = vmmov %vm6879_vm12  ;;  %s6894_s9 = smov 72  }
 0x6c6   : > { %3962 = vmatmul.mubr.f32.vlgmr.msra.gmra.mxu0 %v1072_v43  ;;  %6878 = vst [vmem:[#allocation42_spill] sm:$0xff] %v5377_v11 }
 0x6c7   : > { %3972 = vmatprep.mubr.msk.f32.mxu0 %vm6831_vm11, %v6854_v41  ;;  %3965 = vmatpush3.msra.mxu0 %v5356_v49 }
 0x6c8   : > { %3966 = vmatprep.subr.mxu0 %v6854_v41 }
 0x6c9   : > { %3967 = vmatpush3.msra.mxu0 %v5364_v4 }
 0x6ca   : > { %3968 = vmatprep.subr.mxu0 %v6854_v41 }
 0x6cb   : > { %3969 = vmatpush3.msra.mxu0 %v5371_v21 }
 0x6cc   : > { %3970 = vmatprep.subr.mxu0 %v6854_v41 }
 0x6cd   : > { %v1313_v46 = vpop.permute.xlu0 %1312  ;;  %3971 = vmatpush3.msra.mxu0 %v5377_v11  ;;  %v1089_v11 = vld [vmem:[%s6881_s8] sm:$0x1] }
 0x6ce   : > { %v1385_v13 = vadd.f32 %v1384_v25, %v1313_v46  ;;  %v1387_v60 = vadd.f32 %v1386_v39, %v1313_v46  ;;  %3661 = vmatprep.subr.mxu0 %v4738_v56 }
 0x6d0   : > { %v1389_v7 = vmax.f32 %v1385_v13, 0.0  ;;  %v1390_v54 = vmax.f32 %v1387_v60, 0.0 }
 0x6d2   : > { %v4313_v40 = vpack.i.bf16 %v1390_v54, %v1389_v7 }
 0x6d4   : > { %4314 = vrot.lane.b32.xlu1 %v4313_v40, %s6840_s29 }
 0x746   : > { %v4315_v43 = vpop.permute.xlu1 %4314 }
 0x747   : > { %v4317_v25 = vunpack.i.h.bf16 %v4315_v43  ;;  %v4316_v39 = vunpack.i.l.bf16 %v4315_v43 }
 0x749   : > { %v1395_v46 = vsel %vm6879_vm12, %v4316_v39, %v4317_v25  ;;  %v1396_v13 = vsel %vm6880_vm14, %v4317_v25, %v4316_v39  ;;  %vm6882_vm14 = vcmp.lt.s32.totalorder %v4596_v6, 112 }
 0x74a   : > { %v1397_v60 = vmax.f32 %v1389_v7, %v1395_v46  ;;  %v1398_v40 = vmax.f32 %v1390_v54, %v1396_v13  ;;  %vm6883_vm12 = vmmov %vm6882_vm14  ;;  %v6922_v7 = vld [vmem:[#allocation34_spill] sm:$0xff]  ;;  %v6923_v54 = vld [vmem:[#allocation35_spill] sm:$0xff] }
 0x74c   : > { %v4318_v21 = vpack.i.bf16 %v1398_v40, %v1397_v60 }
 0x74e   : > { %4319 = vrot.lane.b32.xlu0 %v4318_v21, %s6806_s30  ;;  %v6925_v21 = vld [vmem:[#allocation37_spill] sm:$0xff] }
 0x786   : > { %v1156_v4 = vpop.f32.mrf.mxu0 }
 0x787   : > { %v1157_v56 = vadd.f32 %v1156_v4, %v1089_v11  ;;  %v6924_v4 = vld [vmem:[#allocation36_spill] sm:$0xff]  ;;  %v6926_v11 = vld [vmem:[#allocation38_spill] sm:$0xff] }
 0x788   : > { %v3963_v49 = vpop.f32.mrf.mxu0 }
 0x789   : > { %v1160_v61 = vmax.f32 %v1157_v56, 0.0  ;;  %v6921_v49 = vld [vmem:[#allocation33_spill] sm:$0xff] }
 0x78b   : > { %3973 = vmatmul.mubr.msk.f32.vlgmr.msra.gmra.mxu0 %vm6707_vm6, %v1160_v61  ;;  %vm6914_vm6 = vcmask 72704  }
 0x78c   : > { %3662 = vmatpush3.msra.mxu0 %v4743_v57 }
 0x78d   : > { %3663 = vmatprep.subr.mxu0 %v4748_v58 }
 0x78e   : > { %3664 = vmatpush3.msra.mxu0 %v4754_v59 }
 0x78f   : > { %3665 = vmatprep.subr.mxu0 %v4762_v62 }
 0x790   : > { %3666 = vmatpush3.msra.mxu0 %v4768_v63 }
 0x791   : > { %3667 = vmatprep.subr.mxu0 %v4778_v1 }
 0x792   : > { %3668 = vmatpush3.msra.mxu0 %v4784_v3 }
 0x793   : > { %3669 = vmatprep.subr.mxu0 %v4791_v5  ;;  %v1165_v5 = vld [vmem:[%s6884_s10] sm:$0x1] }
 0x794   : > { %3670 = vmatpush3.msra.mxu0 %v4797_v8 }
 0x795   : > { %3671 = vmatprep.subr.mxu0 %v4803_v9 }
 0x796   : > { %3672 = vmatpush3.msra.mxu0 %v4809_v10 }
 0x797   : > { %3673 = vmatprep.subr.mxu0 %v4815_v12 }
 0x798   : > { %3674 = vmatpush3.msra.mxu0 %v4821_v14 }
 0x799   : > { %3675 = vmatprep.subr.mxu0 %v4827_v15 }
 0x79a   : > { %3676 = vmatpush3.msra.mxu0 %v4833_v18 }
 0x79b   : > { %3677 = vmatprep.subr.mxu0 %v4839_v19 }
 0x79c   : > { %3678 = vmatpush3.msra.mxu0 %v4845_v20 }
 0x79d   : > { %3679 = vmatprep.subr.mxu0 %v4851_v22 }
 0x79e   : > { %3680 = vmatpush3.msra.mxu0 %v4857_v23 }
 0x79f   : > { %3681 = vmatprep.subr.mxu0 %v4863_v24 }
 0x7a0   : > { %3682 = vmatpush3.msra.mxu0 %v4869_v26 }
 0x7a1   : > { %3683 = vmatprep.subr.mxu0 %v4875_v27 }
 0x7a2   : > { %3684 = vmatpush3.msra.mxu0 %v4881_v28 }
 0x7a3   : > { %3685 = vmatprep.subr.mxu0 %v4887_v29 }
 0x7a4   : > { %3686 = vmatpush3.msra.mxu0 %v4893_v30 }
 0x7a5   : > { %3687 = vmatprep.subr.mxu0 %v4901_v31  ;;  %v6905_v31 = vld [vmem:[#allocation24_spill] sm:$0xff] }
 0x7a6   : > { %3688 = vmatpush3.msra.mxu0 %v4907_v32 }
 0x7a7   : > { %3689 = vmatprep.subr.mxu0 %v4912_v33 }
 0x7a8   : > { %3690 = vmatpush3.msra.mxu0 %v4917_v34 }
 0x7a9   : > { %3691 = vmatprep.subr.mxu0 %v4923_v35  ;;  %v6908_v35 = vld [vmem:[#allocation26_spill] sm:$0xff] }
 0x7aa   : > { %3692 = vmatpush3.msra.mxu0 %v4929_v36 }
 0x7ab   : > { %4015 = vmatprep.subr.mxu0 %v6854_v41 }
 0x7c0   : > { %v4320_v57 = vpop.permute.xlu0 %4319 }
 0x7c1   : > { %v4322_v58 = vunpack.i.h.bf16 %v4320_v57  ;;  %v4321_v59 = vunpack.i.l.bf16 %v4320_v57 }
 0x7c3   : > { %v1403_v62 = vsel %vm6882_vm14, %v4321_v59, %v4322_v58  ;;  %v1404_v63 = vsel %vm6883_vm12, %v4322_v58, %v4321_v59  ;;  %vm6703_vm14 = vcmask 73728   ;;  %vm6898_vm12 = vcmask 449536  }
 0x7c4   : > { %v1406_v1 = vmax.f32 %v1398_v40, %v1404_v63  ;;  %v1405_v3 = vmax.f32 %v1397_v60, %v1403_v62 }
 0x7c6   : > { %1503 = vmatprep.mubr.f32.mxu0 %v1406_v1  ;;  %v6930_v1 = vld [vmem:[#allocation39_spill] sm:$0xff] }
 0x7c7   : > { %1504 = vmatmul.mubr.f32.vlgmr.msra.gmra.mxu0 %v1405_v3  ;;  %v6931_v3 = vld [vmem:[#allocation40_spill] sm:$0xff] }
 0x7c8   : > { %4016 = vmatpush3.msra.mxu0 %v5227_v52  ;;  %4047 = vmatprep.mubr.msk.f32.mxu0 %vm6831_vm11, %v6854_v41 }
 0x7c9   : > { %4017 = vmatprep.subr.mxu0 %v6854_v41 }
 0x7ca   : > { %4018 = vmatpush3.msra.mxu0 %v5232_v0  ;;  %v6910_v0 = vld [vmem:[#allocation28_spill] sm:$0xff] }
 0x7cb   : > { %4019 = vmatprep.subr.mxu0 %v6854_v41 }
 0x7cc   : > { %4020 = vmatpush3.msra.mxu0 %v5239_v50 }
 0x7cd   : > { %4021 = vmatprep.subr.mxu0 %v6854_v41 }
 0x7ce   : > { %4022 = vmatpush3.msra.mxu0 %v5246_v44 }
 0x7cf   : > { %4023 = vmatprep.subr.mxu0 %v6854_v41 }
 0x7d0   : > { %4024 = vmatpush3.msra.mxu0 %v5253_v45 }
 0x7d1   : > { %4025 = vmatprep.subr.mxu0 %v6854_v41 }
 0x7d2   : > { %4026 = vmatpush3.msra.mxu0 %v5260_v53 }
 0x7d3   : > { %4027 = vmatprep.subr.mxu0 %v6854_v41 }
 0x7d4   : > { %4028 = vmatpush3.msra.mxu0 %v5267_v37 }
 0x7d5   : > { %4029 = vmatprep.subr.mxu0 %v6854_v41 }
 0x7d6   : > { %4030 = vmatpush3.msra.mxu0 %v5274_v51 }
 0x7d7   : > { %4031 = vmatprep.subr.mxu0 %v6854_v41 }
 0x7d8   : > { %4032 = vmatpush3.msra.mxu0 %v5281_v2  ;;  %v6915_v2 = vld [vmem:[#allocation29_spill] sm:$0xff] }
 0x7d9   : > { %4033 = vmatprep.subr.mxu0 %v6854_v41 }
 0x7da   : > { %4034 = vmatpush3.msra.mxu0 %v5290_v48  ;;  %v6917_v48 = vld [vmem:[#allocation30_spill] sm:$0xff] }
 0x7db   : > { %4035 = vmatprep.subr.mxu0 %v6854_v41 }
 0x7dc   : > { %4036 = vmatpush3.msra.mxu0 %v5295_v42  ;;  %v6919_v42 = vld [vmem:[#allocation31_spill] sm:$0xff] }
 0x7dd   : > { %4037 = vmatprep.subr.mxu0 %v6854_v41 }
 0x7de   : > { %4038 = vmatpush3.msra.mxu0 %v5304_v55  ;;  %v6920_v55 = vld [vmem:[#allocation32_spill] sm:$0xff] }
 0x7df   : > { %4039 = vmatprep.subr.mxu0 %v6854_v41 }
 0x7e0   : > { %4040 = vmatpush3.msra.mxu0 %v5309_v47 }
 0x7e1   : > { %4041 = vmatprep.subr.mxu0 %v6854_v41 }
 0x7e2   : > { %4042 = vmatpush3.msra.mxu0 %v5318_v38 }
 0x7e3   : > { %4043 = vmatprep.subr.mxu0 %v6854_v41 }
 0x7e4   : > { %4044 = vmatpush3.msra.mxu0 %v5323_v16 }
 0x7e5   : > { %4045 = vmatprep.subr.mxu0 %v6854_v41 }
 0x7e6   : > { %4046 = vmatpush3.msra.mxu0 %v5332_v17  ;;  %v6897_v17 = vld [vmem:[#allocation23_spill] sm:$0xff] }
 0x84b   : > { %v1235_v47 = vpop.f32.mrf.mxu0 }
 0x84c   : > { %v1236_v8 = vadd.f32 %v1235_v47, %v1165_v5  ;;  %v6932_v5 = vld [vmem:[#allocation41_spill] sm:$0xff]  ;;  %v6933_v47 = vld [vmem:[#allocation42_spill] sm:$0xff] }
 0x84d   : > { %v3974_v9 = vpop.f32.mrf.mxu0 }
 0x84e   : > { %1240 = vst.msk [vmem:[%s5466_s17] sm:$0x1] %vm6703_vm14, %v1236_v8  ;;  %vm6900_vm14 = vcmask 457728  }
 0x887   : > { %v3693_v16 = vpop.f32.mrf.mxu0 }
 0x889   : > { %v3694_v38 = vpop.f32.mrf.mxu0 }
 0x88a   : > { %v3695_v10 = vadd.f32 %v3694_v38, %v3693_v16 }
 0x88c   : > { %1569 = vrot.lane.b32.xlu0 %v3695_v10, %s6886_s28  ;;  %1566 = vrot.lane.b32.xlu1 %v3695_v10, %s6887_s27 }
 0x890   : > { %1561 = vrot.lane.b32.xlu0 %v3695_v10, %s6844_s25  ;;  %1558 = vrot.lane.b32.xlu1 %v3695_v10, %s6845_s12 }
 0x894   : > { %1553 = vrot.lane.b32.xlu0 %v3695_v10, %s6888_s19  ;;  %1550 = vrot.lane.b32.xlu1 %v3695_v10, %s6889_s23 }
 0x898   : > { %1545 = vrot.lane.b32.xlu0 %v3695_v10, %s6839_s24  ;;  %1542 = vrot.lane.b32.xlu1 %v3695_v10, %s6840_s29 }
 0x89c   : > { %1537 = vrot.lane.b32.xlu0 %v3695_v10, %s6807_s16  ;;  %1534 = vrot.lane.b32.xlu1 %v3695_v10, %s6890_s20 }
 0x8a0   : > { %1529 = vrot.lane.b32.xlu0 %v3695_v10, %s6891_s11  ;;  %1526 = vrot.lane.b32.xlu1 %v3695_v10, %s6892_s18 }
 0x8a4   : > { %1521 = vrot.lane.b32.xlu0 %v3695_v10, %s6893_s21  ;;  %1518 = vrot.lane.b32.xlu1 %v3695_v10, %s6894_s9  ;;  %s6938_s9 = smov 80  }
 0x8a8   : > { %1513 = vrot.lane.b32.xlu0 %v3695_v10, %s6895_s7  ;;  %1510 = vrot.lane.b32.xlu1 %v3695_v10, %s6896_s6  ;;  %s6936_s6 = smov 48   ;;  %s6937_s7 = smov 96  }
 0x8ac   : > { %1578 = vperm.xlu1 %4323, %v6897_v17  }
 0x8fe   : > { %v1570_v12 = vpop.permute.xlu0 %1569  ;;  %v1567_v14 = vpop.permute.xlu1 %1566 }
 0x8ff   : > { %v1572_v15 = vsel %vm6898_vm12, %v1567_v14, %v1570_v12  ;;  %vm6904_vm12 = vcmask 515072  }
 0x900   : > { %3976 = vmatpush3.msk.msra.mxu1 %vm5002_vm0, %v1572_v15  ;;  %v5563_v15 = vld [vmem:[%s4549_s14 + $0x20] sm:$0xff] }
 0x901   : > { %3977 = vmatprep.subr.mxu1 %v6854_v41 }
 0x902   : > { %v1562_v19 = vpop.permute.xlu0 %1561  ;;  %v1559_v20 = vpop.permute.xlu1 %1558 }
 0x903   : > { %v1564_v22 = vsel %vm6900_vm14, %v1559_v20, %v1562_v19  ;;  %vm6906_vm14 = vnez %v6905_v31  ;;  %v5581_v20 = vld [vmem:[%s4549_s14 + $0x28] sm:$0xff] }
 0x904   : > { %3978 = vmatpush3.msk.msra.mxu1 %vm6901_vm13, %v1564_v22  ;;  %vm6907_vm13 = vcmask 7168   ;;  %v5590_v22 = vld [vmem:[%s6778_s2] sm:$0xff]  ;;  %s7047_s2 = sld [smem:[#allocation58_spill]] }
 0x905   : > { %3979 = vmatprep.subr.mxu1 %v6854_v41 }
 0x906   : > { %v1554_v23 = vpop.permute.xlu0 %1553  ;;  %v1551_v24 = vpop.permute.xlu1 %1550 }
 0x907   : > { %v1556_v26 = vsel %vm6902_vm10, %v1551_v24, %v1554_v23  ;;  %vm6909_vm10 = vcmask 56320  }
 0x908   : > { %3980 = vmatpush3.msk.msra.mxu1 %vm5022_vm7, %v1556_v26 }
 0x909   : > { %3981 = vmatprep.subr.mxu1 %v6854_v41 }
 0x90a   : > { %v1546_v28 = vpop.permute.xlu0 %1545  ;;  %v1543_v29 = vpop.permute.xlu1 %1542 }
 0x90b   : > { %v1548_v30 = vsel %vm6904_vm12, %v1543_v29, %v1546_v28  ;;  %vm6911_vm12 = vnez %v6910_v0 }
 0x90c   : > { %3982 = vmatpush3.msk.msra.mxu1 %vm6906_vm14, %v1548_v30 }
 0x90d   : > { %3983 = vmatprep.subr.mxu1 %v6854_v41 }
 0x90e   : > { %v1538_v32 = vpop.permute.xlu0 %1537  ;;  %3984 = vmatpush3.msra.mxu1 %v3695_v10  ;;  %v1535_v33 = vpop.permute.xlu1 %1534 }
 0x90f   : > { %v1540_v34 = vsel %vm6907_vm13, %v1535_v33, %v1538_v32  ;;  %3985 = vmatprep.subr.mxu1 %v6854_v41  ;;  %vm6913_vm13 = vcmp.ge.s32.totalorder %v4596_v6, 8 }
 0x910   : > { %3986 = vmatpush3.msk.msra.mxu1 %vm5010_vm2, %v1540_v34  ;;  %vm6944_vm2 = vcmask 916480  }
 0x911   : > { %3987 = vmatprep.subr.mxu1 %v6854_v41 }
 0x912   : > { %v1530_v36 = vpop.permute.xlu0 %1529  ;;  %v1527_v61 = vpop.permute.xlu1 %1526 }
 0x913   : > { %v1532_v52 = vsel %vm6909_vm10, %v1527_v61, %v1530_v36  ;;  %vm6916_vm10 = vnez %v6915_v2 }
 0x914   : > { %3988 = vmatpush3.msk.msra.mxu1 %vm6911_vm12, %v1532_v52  ;;  %vm6943_vm12 = vcmask 785408  }
 0x915   : > { %3989 = vmatprep.subr.mxu1 %v6854_v41 }
 0x916   : > { %v1522_v50 = vpop.permute.xlu0 %1521  ;;  %v1519_v44 = vpop.permute.xlu1 %1518 }
 0x917   : > { %v1524_v45 = vsel %vm6912_vm15, %v1519_v44, %v1522_v50  ;;  %vm6929_vm15 = vcmask 523264  }
 0x918   : > { %3990 = vmatpush3.msk.msra.mxu1 %vm6913_vm13, %v1524_v45  ;;  %vm6939_vm13 = vcmask 130048  }
 0x919   : > { %3991 = vmatprep.subr.mxu1 %v6854_v41 }
 0x91a   : > { %v1514_v53 = vpop.permute.xlu0 %1513  ;;  %v1511_v37 = vpop.permute.xlu1 %1510 }
 0x91b   : > { %v1516_v51 = vsel %vm6914_vm6, %v1511_v37, %v1514_v53  ;;  %vm6928_vm6 = vcmask 457728  }
 0x91c   : > { %3992 = vmatpush3.msk.msra.mxu1 %vm6916_vm10, %v1516_v51  ;;  %vm6942_vm10 = vcmask 654336  }
 0x91d   : > { %3994 = vmatmul.mubr.msk.f32.vlgmr.msra.gmra.mxu1 %vm6918_vm3, %v6917_v48  ;;  %3996 = vmatprep.subr.mxu1 %v6854_v41  ;;  %vm6927_vm3 = vcmask 515072   ;;  %v6947_v48 = vld [vmem:[#allocation16_spill] sm:$0xff] }
 0x91e   : > { %3997 = vmatpush3.msra.mxu1 %v6919_v42  ;;  %4012 = vmatprep.mubr.msk.f32.mxu1 %vm6831_vm11, %v6854_v41 }
 0x91f   : > { %3998 = vmatprep.subr.mxu1 %v6854_v41 }
 0x920   : > { %3999 = vmatpush3.msra.mxu1 %v6920_v55 }
 0x921   : > { %4000 = vmatprep.subr.mxu1 %v6854_v41 }
 0x922   : > { %4001 = vmatpush3.msra.mxu1 %v6921_v49 }
 0x923   : > { %4002 = vmatprep.subr.mxu1 %v6854_v41 }
 0x924   : > { %4003 = vmatpush3.msra.mxu1 %v6922_v7 }
 0x925   : > { %4004 = vmatprep.subr.mxu1 %v6854_v41 }
 0x926   : > { %4005 = vmatpush3.msra.mxu1 %v6923_v54 }
 0x927   : > { %4006 = vmatprep.subr.mxu1 %v6854_v41  ;;  %v1579_v43 = vpop.permute.xlu1 %1578 }
 0x928   : > { %4007 = vmatpush3.msra.mxu1 %v6924_v4 }
 0x929   : > { %4008 = vmatprep.subr.mxu1 %v6854_v41 }
 0x92a   : > { %4009 = vmatpush3.msra.mxu1 %v6925_v21 }
 0x92b   : > { %4010 = vmatprep.subr.mxu1 %v6854_v41 }
 0x92c   : > { %4011 = vmatpush3.msra.mxu1 %v6926_v11  ;;  %v1806_v11 = vld [vmem:[%s6881_s8] sm:$0x1] }
 0x92d   : > { %4050 = vmatprep.subr.mxu1 %v6854_v41 }
 0x9dd   : > { %v1650_v25 = vpop.f32.mrf.mxu1 }
 0x9de   : > { %v1651_v39 = vadd.f32 %v1650_v25, %v1579_v43 }
 0x9df   : > { %v3995_v46 = vpop.f32.mrf.mxu1 }
 0x9e0   : > { %v1654_v13 = vmax.f32 %v1651_v39, 0.0 }
 0x9e2   : > { %1659 = vrot.lane.b32.xlu1 %v1654_v13, %s6839_s24  ;;  %1656 = vrot.lane.b32.xlu0 %v1654_v13, %s6840_s29 }
 0xa54   : > { %v1660_v60 = vpop.permute.xlu1 %1659  ;;  %v1657_v40 = vpop.permute.xlu0 %1656 }
 0xa55   : > { %v1662_v56 = vsel %vm6927_vm3, %v1657_v40, %v1660_v60  ;;  %vm6940_vm3 = vcmask 261120  }
 0xa56   : > { %v1663_v57 = vmax.f32 %v1654_v13, %v1662_v56 }
 0xa58   : > { %1668 = vrot.lane.b32.xlu1 %v1663_v57, %s6844_s25  ;;  %1665 = vrot.lane.b32.xlu0 %v1663_v57, %s6845_s12 }
 0xaca   : > { %v1669_v58 = vpop.permute.xlu1 %1668  ;;  %v1666_v59 = vpop.permute.xlu0 %1665 }
 0xacb   : > { %v1671_v62 = vsel %vm6928_vm6, %v1666_v59, %v1669_v58  ;;  %vm6941_vm6 = vcmask 392192   ;;  %v6953_v59 = vld [vmem:[#allocation14_spill] sm:$0xff] }
 0xacc   : > { %v1672_v63 = vmax.f32 %v1663_v57, %v1671_v62 }
 0xace   : > { %4013 = vmatmul.mubr.msk.f32.vlgmr.msra.gmra.mxu1 %vm6929_vm15, %v1672_v63 }
 0xacf   : > { %4051 = vmatpush3.msra.mxu1 %v6930_v1  ;;  %4058 = vmatprep.mubr.msk.f32.mxu1 %vm6831_vm11, %v6854_v41 }
 0xad0   : > { %4052 = vmatprep.subr.mxu1 %v6854_v41 }
 0xad1   : > { %4053 = vmatpush3.msra.mxu1 %v6931_v3 }
 0xad2   : > { %4054 = vmatprep.subr.mxu1 %v6854_v41 }
 0xad3   : > { %4055 = vmatpush3.msra.mxu1 %v6932_v5 }
 0xad4   : > { %4056 = vmatprep.subr.mxu1 %v6854_v41 }
 0xad5   : > { %4057 = vmatpush3.msra.mxu1 %v6933_v47 }
 0xb8e   : > { %v1750_v8 = vpop.f32.mrf.mxu1 }
 0xb8f   : > { %v1759_v9 = vrot.slane %v1750_v8, 2  ;;  %v1755_v16 = vrot.slane %v1750_v8, 1  ;;  %v1767_v10 = vrot.slane %v1750_v8, 4  ;;  %v1763_v17 = vrot.slane %v1750_v8, 3 }
 0xb90   : > { %v4014_v38 = vpop.f32.mrf.mxu1  ;;  %v1775_v12 = vrot.slane %v1750_v8, 6  ;;  %v1771_v14 = vrot.slane %v1750_v8, 5  ;;  %v1779_v19 = vrot.slane %v1750_v8, 7 }
 0xb91   : > { %1760 = vrot.lane.b32.xlu1 %v1759_v9, %s6934_s4  ;;  %1756 = vrot.lane.b32.xlu0 %v1755_v16, %s6849_s0 }
 0xb95   : > { %1768 = vrot.lane.b32.xlu1 %v1767_v10, %s6935_s5  ;;  %1764 = vrot.lane.b32.xlu0 %v1763_v17, %s6936_s6 }
 0xb99   : > { %1776 = vrot.lane.b32.xlu1 %v1775_v12, %s6937_s7  ;;  %1772 = vrot.lane.b32.xlu0 %v1771_v14, %s6938_s9  ;;  %s6987_s7 = smov 9   ;;  %s7002_s9 = sld [smem:[#allocation54_spill]] }
 0xb9d   : > { %2016 = vrot.lane.b32.xlu1 %v5563_v15, %s6846_s15  ;;  %1780 = vrot.lane.b32.xlu0 %v1779_v19, %s6806_s30 }
 0xba1   : > { %2008 = vrot.lane.b32.xlu1 %v5563_v15, %s6806_s30  ;;  %2018 = vrot.lane.b32.xlu0 %v5581_v20, %s6846_s15 }
 0xba5   : > { %2000 = vrot.lane.b32.xlu1 %v5563_v15, %s6847_s22  ;;  %2010 = vrot.lane.b32.xlu0 %v5581_v20, %s6806_s30 }
 0xba9   : > { %1992 = vrot.lane.b32.xlu1 %v5563_v15, %s6840_s29  ;;  %2002 = vrot.lane.b32.xlu0 %v5581_v20, %s6847_s22 }
 0xbad   : > { %1984 = vrot.lane.b32.xlu1 %v5563_v15, %s6807_s16  ;;  %1994 = vrot.lane.b32.xlu0 %v5581_v20, %s6840_s29 }
 0xbb1   : > { %1976 = vrot.lane.b32.xlu1 %v5563_v15, %s6848_s13  ;;  %1986 = vrot.lane.b32.xlu0 %v5581_v20, %s6807_s16 }
 0xbb5   : > { %1968 = vrot.lane.b32.xlu1 %v5563_v15, %s6849_s0  ;;  %1978 = vrot.lane.b32.xlu0 %v5581_v20, %s6848_s13 }
 0xbb9   : > { %1960 = vrot.lane.b32.xlu1 %v5563_v15, %s6850_s26  ;;  %1970 = vrot.lane.b32.xlu0 %v5581_v20, %s6849_s0 }
 0xbbd   : > { %2028 = vperm.xlu1 %4323, %v5590_v22   ;;  %1962 = vrot.lane.b32.xlu0 %v5581_v20, %s6850_s26  ;;  %s7031_s26 = smov 96  }
 0xc03   : > { %v1761_v23 = vpop.permute.xlu1 %1760  ;;  %v1757_v24 = vpop.permute.xlu0 %1756 }
 0xc04   : > { %v1783_v26 = vsel %vm6939_vm13, %v1750_v8, %v1757_v24  ;;  %vm6945_vm13 = vcmp.lt.s32.totalorder %v4596_v6, 111 }
 0xc05   : > { %v1784_v29 = vsel %vm6940_vm3, %v1783_v26, %v1761_v23  ;;  %vm6946_vm3 = vmmov %vm6945_vm13 }
 0xc07   : > { %v1769_v28 = vpop.permute.xlu1 %1768  ;;  %v1765_v30 = vpop.permute.xlu0 %1764 }
 0xc08   : > { %v1785_v32 = vsel %vm6941_vm6, %v1784_v29, %v1765_v30  ;;  %vm6948_vm6 = vnez %v6947_v48  ;;  %v5680_v29 = vld [vmem:[%s6804_s1] sm:$0xff]  ;;  %v6974_v30 = vld [vmem:[#allocation22_spill] sm:$0xff]  ;;  %s6986_s1 = smov 72  }
 0xc09   : > { %v1786_v33 = vsel %vm6929_vm15, %v1785_v32, %v1769_v28  ;;  %vm6954_vm15 = vcmp.lt.s32.totalorder %v6953_v59, 240  ;;  %v1882_v32 = vld [vmem:[%s6884_s10] sm:$0x1]  ;;  %s6988_s10 = smov 73  }
 0xc0b   : > { %v1773_v34 = vpop.permute.xlu0 %1772  ;;  %v1777_v36 = vpop.permute.xlu1 %1776 }
 0xc0c   : > { %v1787_v61 = vsel %vm6942_vm10, %v1786_v33, %v1773_v34 }
 0xc0d   : > { %v1788_v52 = vsel %vm6943_vm12, %v1787_v61, %v1777_v36  ;;  %vm6950_vm12 = vcmp.lt.s32.totalorder %v4596_v6, 112 }
 0xc0e   : > { %vm6952_vm10 = vmmov %vm6950_vm12 }
 0xc0f   : > { %v1781_v50 = vpop.permute.xlu0 %1780  ;;  %v2017_v45 = vpop.permute.xlu1 %2016 }
 0xc10   : > { %v1789_v44 = vsel %vm6944_vm2, %v1788_v52, %v1781_v50  ;;  %vm6949_vm2 = vcmask 261120  }
 0xc11   : > { %4048 = vmatmul.mubr.f32.vlgmr.msra.gmra.mxu0 %v1789_v44 }
 0xc13   : > { %v2019_v53 = vpop.permute.xlu0 %2018  ;;  %v2009_v55 = vpop.permute.xlu1 %2008 }
 0xc14   : > { %v2020_v37 = vsel %vm6945_vm13, %v2017_v45, %v2019_v53  ;;  %v2021_v51 = vsel %vm6946_vm3, %v2019_v53, %v2017_v45  ;;  %vm6955_vm13 = vcmp.lt.s32.totalorder %v4596_v6, 113  ;;  %v5703_v53 = vld [vmem:[%s6805_s3 + $0xf8] sm:$0xff] }
 0xc15   : > { %3526 = vmatprep.subr.msk.mxu1 %vm6948_vm6, %v2021_v51  ;;  %vm6956_vm3 = vmmov %vm6955_vm13  ;;  %v5713_v51 = vld [vmem:[%s6805_s3 + $0xf0] sm:$0xff]  ;;  %3737 = vmatprep.subr.mxu0 %v5703_v53 }
 0xc17   : > { %v2011_v42 = vpop.permute.xlu0 %2010  ;;  %v2001_v7 = vpop.permute.xlu1 %2000 }
 0xc18   : > { %v2013_v56 = vsel %vm6950_vm12, %v2011_v42, %v2009_v55  ;;  %v2012_v58 = vsel %vm6952_vm10, %v2009_v55, %v2011_v42  ;;  %vm6962_vm10 = vcmp.lt.s32.totalorder %v4596_v6, 1  ;;  %v5719_v42 = vld [vmem:[%s6805_s3 + $0x70] sm:$0xff] }
 0xc1b   : > { %v2003_v49 = vpop.permute.xlu0 %2002  ;;  %v1993_v4 = vpop.permute.xlu1 %1992 }
 0xc1c   : > { %v2005_v62 = vsel %vm6955_vm13, %v2003_v49, %v2001_v7  ;;  %v2004_v63 = vsel %vm6956_vm3, %v2001_v7, %v2003_v49  ;;  %vm6965_vm13 = vcmp.lt.s32.totalorder %v4596_v6, 15  ;;  %v5727_v7 = vld [vmem:[%s6805_s3 + $0xe8] sm:$0xff] }
 0xc1d   : > { %vm6966_vm3 = vmmov %vm6965_vm13 }
 0xc1f   : > { %v1995_v54 = vpop.permute.xlu0 %1994  ;;  %v1985_v43 = vpop.permute.xlu1 %1984 }
 0xc23   : > { %v1987_v21 = vpop.permute.xlu0 %1986  ;;  %v1977_v40 = vpop.permute.xlu1 %1976 }
 0xc24   : > { %v1988_v38 = vsel %vm6962_vm10, %v1985_v43, %v1987_v21 }
 0xc27   : > { %v1979_v60 = vpop.permute.xlu0 %1978  ;;  %v1969_v8 = vpop.permute.xlu1 %1968 }
 0xc28   : > { %v1980_v14 = vsel %vm6965_vm13, %v1977_v40, %v1979_v60 }
 0xc2b   : > { %v1971_v3 = vpop.permute.xlu0 %1970  ;;  %v1961_v19 = vpop.permute.xlu1 %1960 }
 0xc2f   : > { %v1963_v12 = vpop.permute.xlu0 %1962 }
 0xc38   : > { %v2029_v61 = vpop.permute.xlu1 %2028 }
 0xcd1   : > { %v1873_v25 = vpop.f32.mrf.mxu0 }
 0xcd2   : > { %v1874_v39 = vadd.f32 %v1873_v25, %v1806_v11  ;;  %v5749_v11 = vld [vmem:[%s6805_s3 + $0x60] sm:$0xff]  ;;  %v5762_v25 = vld [vmem:[%s6805_s3 + $0x58] sm:$0xff] }
 0xcd3   : > { %v4049_v46 = vpop.f32.mrf.mxu0 }
 0xcd4   : > { %v1877_v13 = vmax.f32 %v1874_v39, 0.0  ;;  %v5768_v39 = vld [vmem:[%s6805_s3 + $0xd0] sm:$0xff] }
 0xcd5   : > { %v5774_v46 = vld [vmem:[%s6805_s3 + $0x50] sm:$0xff] }
 0xcd6   : > { %4059 = vmatmul.mubr.msk.f32.vlgmr.msra.gmra.mxu1 %vm6949_vm2, %v1877_v13  ;;  %vm6958_vm2 = vcmp.lt.s32.totalorder %v4596_v6, 127  ;;  %v5780_v13 = vld [vmem:[%s6805_s3 + $0xc8] sm:$0xff] }
 0xcd7   : > { %3527 = vmatpush1.msk.msra.mxu1 %vm4621_vm5, %v2020_v37  ;;  %2098 = vmatprep.mubr.f32.mxu1 %v6854_v41  ;;  %v1997_v5 = vsel %vm6958_vm2, %v1995_v54, %v1993_v4  ;;  %vm6960_vm12 = vmmov %vm6958_vm2  ;;  %v5708_v37 = vld [vmem:[%s6805_s3 + $0x78] sm:$0xff] }
 0xcd8   : > { %3528 = vmatprep.subr.msk.mxu1 %vm6954_vm15, %v2013_v56  ;;  %v1996_v9 = vsel %vm6960_vm12, %v1993_v4, %v1995_v54  ;;  %vm6963_vm15 = vmmov %vm6962_vm10  ;;  %vm6969_vm12 = vcmp.lt.s32.totalorder %v4596_v6, 16  ;;  %vm6970_vm10 = vcmp.lt.s32.totalorder %v4596_v6, 17  ;;  %3738 = vmatpush3.msra.mxu0 %v5708_v37  ;;  %v5733_v54 = vld [vmem:[%s6805_s3 + $0x68] sm:$0xff]  ;;  %v5798_v56 = vld [vmem:[%s6805_s3 + $0x40] sm:$0xff] }
 0xcd9   : > { %2051 = vmatpush1.msra.mxu1 %v2012_v58  ;;  %v1989_v10 = vsel %vm6963_vm15, %v1987_v21, %v1985_v43  ;;  %v1972_v23 = vsel %vm6969_vm12, %v1969_v8, %v1971_v3  ;;  %v1964_v24 = vsel %vm6970_vm10, %v1961_v19, %v1963_v12  ;;  %vm6971_vm15 = vmmov %vm6969_vm12  ;;  %vm6975_vm12 = vnez %v6974_v30  ;;  %v5743_v21 = vld [vmem:[%s6805_s3 + $0xe0] sm:$0xff]  ;;  %v5756_v43 = vld [vmem:[%s6805_s3 + $0xd8] sm:$0xff] }
 0xcda   : > { %3529 = vmatprep.subr.msk.mxu1 %vm4641_vm8, %v2005_v62  ;;  %v1973_v26 = vsel %vm6971_vm15, %v1971_v3, %v1969_v8  ;;  %vm6972_vm13 = vmmov %vm6970_vm10  ;;  %vm6976_vm10 = vcmask 588800   ;;  %vm6977_vm15 = vcmask 73728   ;;  %3739 = vmatprep.subr.mxu0 %v5713_v51  ;;  %v5804_v58 = vld [vmem:[%s6805_s3 + $0xb8] sm:$0xff]  ;;  %v5822_v3 = vld [vmem:[%s6805_s3 + $0x30] sm:$0xff] }
 0xcdb   : > { %3530 = vmatpush1.msk.msra.mxu1 %vm4649_vm9, %v2004_v63  ;;  %v1965_v28 = vsel %vm6972_vm13, %v1963_v12, %v1961_v19  ;;  %3740 = vmatpush3.msra.mxu0 %v5719_v42  ;;  %v5810_v62 = vld [vmem:[%s6805_s3 + $0x38] sm:$0xff]  ;;  %v5816_v63 = vld [vmem:[%s6805_s3 + $0xb0] sm:$0xff]  ;;  %v5834_v8 = vld [vmem:[%s6805_s3 + $0x28] sm:$0xff]  ;;  %vm6982_vm13 = vcmp.lt.s32.totalorder %v4596_v6, 127 }
 0xcdc   : > { %3531 = vmatprep.subr.msk.mxu1 %vm4603_vm1, %v1997_v5  ;;  %3741 = vmatprep.subr.mxu0 %v5727_v7  ;;  %v5828_v5 = vld [vmem:[%s6805_s3 + $0xa8] sm:$0xff]  ;;  %v5858_v12 = vld [vmem:[%s6805_s3 + $0x18] sm:$0xff]  ;;  %v5872_v19 = vld [vmem:[%s6805_s3 + $0x10] sm:$0xff] }
 0xcdd   : > { %3532 = vmatpush1.msk.msra.mxu1 %vm4621_vm5, %v1996_v9  ;;  %3742 = vmatpush3.msra.mxu0 %v5733_v54  ;;  %v5840_v9 = vld [vmem:[%s6805_s3 + $0xa0] sm:$0xff] }
 0xcde   : > { %2056 = vmatprep.subr.mxu1 %v5581_v20  ;;  %v1981_v20 = vsel %vm6966_vm3, %v1979_v60, %v1977_v40  ;;  %vm6973_vm3 = vcmp.ge.s32.totalorder %v4596_v6, 16  ;;  %3743 = vmatprep.subr.mxu0 %v5743_v21  ;;  %v5786_v60 = vld [vmem:[%s6805_s3 + $0x48] sm:$0xff]  ;;  %v5792_v40 = vld [vmem:[%s6805_s3 + $0xc0] sm:$0xff] }
 0xcdf   : > { %2057 = vmatpush1.msra.mxu1 %v5563_v15  ;;  %v6967_v15 = vld [vmem:[#allocation21_spill] sm:$0xff]  ;;  %3744 = vmatpush3.msra.mxu0 %v5749_v11 }
 0xce0   : > { %3533 = vmatprep.subr.msk.mxu1 %vm4617_vm4, %v1988_v38  ;;  %vm6968_vm2 = vnez %v6967_v15  ;;  %3745 = vmatprep.subr.mxu0 %v5756_v43  ;;  %v5846_v38 = vld [vmem:[%s6805_s3 + $0x20] sm:$0xff] }
 0xce1   : > { %3534 = vmatpush1.msk.msra.mxu1 %vm4649_vm9, %v1989_v10  ;;  %3746 = vmatpush3.msra.mxu0 %v5762_v25  ;;  %v5852_v10 = vld [vmem:[%s6805_s3 + $0x98] sm:$0xff] }
 0xce2   : > { %3535 = vmatprep.subr.msk.mxu1 %vm4603_vm1, %v1980_v14  ;;  %3747 = vmatprep.subr.mxu0 %v5768_v39  ;;  %v5866_v14 = vld [vmem:[%s6805_s3 + $0x90] sm:$0xff] }
 0xce3   : > { %3536 = vmatpush1.msk.msra.mxu1 %vm6968_vm2, %v1981_v20  ;;  %3748 = vmatpush3.msra.mxu0 %v5774_v46  ;;  %v5878_v20 = vld [vmem:[%s6805_s3 + $0x88] sm:$0xff] }
 0xce4   : > { %2062 = vmatprep.subr.mxu1 %v1972_v23  ;;  %3749 = vmatprep.subr.mxu0 %v5780_v13  ;;  %6978 = vst [vmem:[#allocation23_spill] sm:$0xff] %v5878_v20  ;;  %v5884_v23 = vld [vmem:[%s6805_s3 + $0x8] sm:$0xff] }
 0xce5   : > { %3537 = vmatpush1.msk.msra.mxu1 %vm6973_vm3, %v1973_v26  ;;  %3750 = vmatpush3.msra.mxu0 %v5786_v60  ;;  %6979 = vst [vmem:[#allocation30_spill] sm:$0xff] %v5884_v23  ;;  %v5895_v26 = vld [vmem:[%s6805_s3] sm:$0xff]  ;;  %vm6983_vm3 = vmmov %vm6982_vm13 }
 0xce6   : > { %3538 = vmatprep.subr.msk.mxu1 %vm4617_vm4, %v1964_v24  ;;  %3751 = vmatprep.subr.mxu0 %v5792_v40  ;;  %v5890_v24 = vld [vmem:[%s6805_s3 + $0x80] sm:$0xff]  ;;  %6981 = vst [vmem:[#allocation32_spill] sm:$0xff] %v5895_v26  ;;  %s7007_s3 = sld [smem:[#allocation56_spill]] }
 0xce7   : > { %3539 = vmatpush1.msk.msra.mxu1 %vm6975_vm12, %v1965_v28  ;;  %3752 = vmatpush3.msra.mxu0 %v5798_v56  ;;  %6980 = vst [vmem:[#allocation31_spill] sm:$0xff] %v5890_v24 }
 0xce8   : > { %3540 = vmatmul.mubr.msk.f32.vlgmr.msra.gmra.mxu1 %vm6976_vm10, %v5680_v29  ;;  %4061 = vmatprep.subr.mxu1 %v6854_v41  ;;  %vm6984_vm10 = vcmp.lt.s32.totalorder %v4596_v6, 112 }
 0xce9   : > { %4079 = vmatprep.mubr.msk.f32.mxu1 %vm6831_vm11, %v6854_v41  ;;  %3753 = vmatprep.subr.mxu0 %v5804_v58 }
 0xcea   : > { %3754 = vmatpush3.msra.mxu0 %v5810_v62 }
 0xceb   : > { %3755 = vmatprep.subr.mxu0 %v5816_v63  ;;  %v7067_v16 = vld [vmem:[#allocation23_spill] sm:$0xff] }
 0xcec   : > { %3756 = vmatpush3.msra.mxu0 %v5822_v3  ;;  %v7068_v17 = vld [vmem:[#allocation30_spill] sm:$0xff] }
 0xced   : > { %3757 = vmatprep.subr.mxu0 %v5828_v5 }
 0xcee   : > { %3758 = vmatpush3.msra.mxu0 %v5834_v8  ;;  %v7069_v15 = vld [vmem:[#allocation31_spill] sm:$0xff] }
 0xcef   : > { %3759 = vmatprep.subr.mxu0 %v5840_v9 }
 0xcf0   : > { %3760 = vmatpush3.msra.mxu0 %v5846_v38 }
 0xcf1   : > { %3761 = vmatprep.subr.mxu0 %v5852_v10 }
 0xcf2   : > { %3762 = vmatpush3.msra.mxu0 %v5858_v12 }
 0xcf3   : > { %3763 = vmatprep.subr.mxu0 %v5866_v14 }
 0xcf4   : > { %3764 = vmatpush3.msra.mxu0 %v5872_v19 }
 0xcf5   : > { %3765 = vmatprep.subr.mxu0 %v5878_v20 }
 0xcf6   : > { %3766 = vmatpush3.msra.mxu0 %v5884_v23 }
 0xcf7   : > { %3767 = vmatprep.subr.mxu0 %v5890_v24 }
 0xcf8   : > { %3768 = vmatpush3.msra.mxu0 %v5895_v26 }
 0xcf9   : > { %4101 = vmatprep.subr.mxu0 %v6854_v41 }
 0xd96   : > { %v1952_v33 = vpop.f32.mrf.mxu1 }
 0xd97   : > { %v1953_v34 = vadd.f32 %v1952_v33, %v1882_v32 }
 0xd98   : > { %v4060_v36 = vpop.f32.mrf.mxu1 }
 0xd99   : > { %1956 = vst.msk [vmem:[%s5466_s17 + $0x1] sm:$0x1] %vm6977_vm15, %v1953_v34  ;;  %vm6985_vm15 = vmmov %vm6984_vm10  ;;  %s6989_s17 = sld [smem:[#allocation55_spill]] }
 0xda8   : > { %v2100_v52 = vpop.f32.mrf.mxu1 }
 0xda9   : > { %v5696_v50 = vadd.f32 %v2100_v52, %v2029_v61 }
 0xdaa   : > { %v2102_v44 = vpop.f32.mrf.mxu1 }
 0xdab   : > { %v5698_v45 = vadd.f32 %v2102_v44, %v2029_v61  ;;  %v2105_v55 = vmax.f32 %v5696_v50, 0.0 }
 0xdad   : > { %v2106_v49 = vmax.f32 %v5698_v45, 0.0 }
 0xdaf   : > { %v4324_v4 = vpack.i.bf16 %v2106_v49, %v2105_v55 }
 0xdb1   : > { %4325 = vrot.lane.b32.xlu0 %v4324_v4, %s6840_s29 }
 0xe23   : > { %v4326_v28 = vpop.permute.xlu0 %4325 }
 0xe24   : > { %v4328_v32 = vunpack.i.h.bf16 %v4326_v28  ;;  %v4327_v33 = vunpack.i.l.bf16 %v4326_v28 }
 0xe26   : > { %v2111_v34 = vsel %vm6982_vm13, %v4327_v33, %v4328_v32  ;;  %v2112_v36 = vsel %vm6983_vm3, %v4328_v32, %v4327_v33  ;;  %vm6991_vm13 = vcmask 449536   ;;  %vm6992_vm3 = vcmask 457728  }
 0xe27   : > { %v2113_v61 = vmax.f32 %v2105_v55, %v2111_v34  ;;  %v2114_v52 = vmax.f32 %v2106_v49, %v2112_v36  ;;  %v5934_v49 = vld [vmem:[%s6989_s17] sm:$0xff] }
 0xe28   : > { %6990 = vst [vmem:[#allocation33_spill] sm:$0xff] %v5934_v49 }
 0xe29   : > { %v4329_v44 = vpack.i.bf16 %v2114_v52, %v2113_v61 }
 0xe2b   : > { %4330 = vrot.lane.b32.xlu1 %v4329_v44, %s6806_s30 }
 0xe9d   : > { %v4331_v4 = vpop.permute.xlu1 %4330 }
 0xe9e   : > { %v4333_v26 = vunpack.i.h.bf16 %v4331_v4  ;;  %v4332_v28 = vunpack.i.l.bf16 %v4331_v4 }
 0xea0   : > { %v2119_v24 = vsel %vm6984_vm10, %v4332_v28, %v4333_v26  ;;  %v2120_v23 = vsel %vm6985_vm15, %v4333_v26, %v4332_v28  ;;  %vm6993_vm10 = vcmp.lt.s32.totalorder %v4596_v6, 56  ;;  %vm6994_vm15 = vcmask 465920  }
 0xea1   : > { %v2121_v20 = vmax.f32 %v2113_v61, %v2119_v24  ;;  %v2122_v32 = vmax.f32 %v2114_v52, %v2120_v23 }
 0xea3   : > { %2219 = vmatprep.mubr.f32.mxu0 %v2122_v32 }
 0xea4   : > { %2220 = vmatmul.mubr.f32.vlgmr.msra.gmra.mxu0 %v2121_v20 }
 0xea5   : > { %4133 = vmatprep.mubr.msk.f32.mxu0 %vm6831_vm11, %v6854_v41 }
 0xf64   : > { %v3769_v50 = vpop.f32.mrf.mxu0 }
 0xf66   : > { %v3770_v45 = vpop.f32.mrf.mxu0 }
 0xf67   : > { %v3771_v55 = vadd.f32 %v3770_v45, %v3769_v50 }
 0xf69   : > { %2285 = vrot.lane.b32.xlu1 %v3771_v55, %s6886_s28  ;;  %2282 = vrot.lane.b32.xlu0 %v3771_v55, %s6887_s27 }
 0xf6d   : > { %2277 = vrot.lane.b32.xlu1 %v3771_v55, %s6844_s25  ;;  %2274 = vrot.lane.b32.xlu0 %v3771_v55, %s6845_s12 }
 0xf71   : > { %2269 = vrot.lane.b32.xlu1 %v3771_v55, %s6888_s19  ;;  %2266 = vrot.lane.b32.xlu0 %v3771_v55, %s6889_s23 }
 0xf75   : > { %2261 = vrot.lane.b32.xlu1 %v3771_v55, %s6839_s24  ;;  %2258 = vrot.lane.b32.xlu0 %v3771_v55, %s6840_s29 }
 0xf79   : > { %2253 = vrot.lane.b32.xlu1 %v3771_v55, %s6807_s16  ;;  %2250 = vrot.lane.b32.xlu0 %v3771_v55, %s6890_s20 }
 0xf7d   : > { %2245 = vrot.lane.b32.xlu1 %v3771_v55, %s6891_s11  ;;  %2242 = vrot.lane.b32.xlu0 %v3771_v55, %s6892_s18 }
 0xf81   : > { %2237 = vrot.lane.b32.xlu1 %v3771_v55, %s6893_s21  ;;  %2234 = vrot.lane.b32.xlu0 %v3771_v55, %s6986_s1 }
 0xf85   : > { %2229 = vrot.lane.b32.xlu1 %v3771_v55, %s6987_s7  ;;  %2226 = vrot.lane.b32.xlu0 %v3771_v55, %s6988_s10  ;;  %s7033_s10 = sld [smem:[#allocation59_spill]] }
 0xf89   : > { %2294 = vperm.xlu0 %4302, %v5934_v49  }
 0xfdb   : > { %v2286_v20 = vpop.permute.xlu1 %2285  ;;  %v2283_v23 = vpop.permute.xlu0 %2282 }
 0xfdc   : > { %v2288_v24 = vsel %vm6991_vm13, %v2283_v23, %v2286_v20  ;;  %vm6995_vm13 = vcmask 515072  }
 0xfdd   : > { %4062 = vmatpush3.msk.msra.mxu1 %vm5002_vm0, %v2288_v24  ;;  %vm7044_vm0 = vcmask 916480  }
 0xfde   : > { %4063 = vmatprep.subr.mxu1 %v6854_v41 }
 0xfdf   : > { %v2278_v26 = vpop.permute.xlu1 %2277  ;;  %v2275_v33 = vpop.permute.xlu0 %2274 }
 0xfe0   : > { %v2280_v34 = vsel %vm6992_vm3, %v2275_v33, %v2278_v26  ;;  %vm6996_vm3 = vcmask 7168  }
 0xfe1   : > { %4064 = vmatpush3.msk.msra.mxu1 %vm6993_vm10, %v2280_v34  ;;  %vm6997_vm10 = vnez %v6908_v35 }
 0xfe2   : > { %4065 = vmatprep.subr.mxu1 %v6854_v41 }
 0xfe3   : > { %v2270_v36 = vpop.permute.xlu1 %2269  ;;  %v2267_v61 = vpop.permute.xlu0 %2266 }
 0xfe4   : > { %v2272_v52 = vsel %vm6994_vm15, %v2267_v61, %v2270_v36  ;;  %vm6998_vm15 = vcmask 56320   ;;  %v5969_v61 = vld [vmem:[%s7002_s9] sm:$0xff]  ;;  %s7019_s9 = sld [smem:[#allocation57_spill]] }
 0xfe5   : > { %4066 = vmatpush3.msk.msra.mxu1 %vm5022_vm7, %v2272_v52  ;;  %7003 = vst [vmem:[#allocation34_spill] sm:$0xff] %v5969_v61  ;;  %vm7043_vm7 = vcmask 785408  }
 0xfe6   : > { %4067 = vmatprep.subr.mxu1 %v6854_v41 }
 0xfe7   : > { %v2262_v44 = vpop.permute.xlu1 %2261  ;;  %v2259_v4 = vpop.permute.xlu0 %2258 }
 0xfe8   : > { %v2264_v28 = vsel %vm6995_vm13, %v2259_v4, %v2262_v44  ;;  %vm6999_vm13 = vnez %v6910_v0  ;;  %v5982_v44 = vld [vmem:[%s7007_s3 + $0x38] sm:$0xff]  ;;  %v5987_v4 = vld [vmem:[%s7007_s3 + $0x30] sm:$0xff] }
 0xfe9   : > { %4068 = vmatpush3.msk.msra.mxu1 %vm6906_vm14, %v2264_v28  ;;  %vm7000_vm14 = vcmask 64512   ;;  %7008 = vst [vmem:[#allocation35_spill] sm:$0xff] %v5982_v44  ;;  %7009 = vst [vmem:[#allocation36_spill] sm:$0xff] %v5987_v4  ;;  %v5994_v28 = vld [vmem:[%s7007_s3 + $0x28] sm:$0xff] }
 0xfea   : > { %4069 = vmatprep.subr.mxu1 %v6854_v41  ;;  %7010 = vst [vmem:[#allocation37_spill] sm:$0xff] %v5994_v28  ;;  %v6152_v31 = vld [vmem:[%s7019_s9] sm:$0xff] }
 0xfeb   : > { %v2254_v32 = vpop.permute.xlu1 %2253  ;;  %4070 = vmatpush3.msra.mxu1 %v3771_v55  ;;  %v2251_v50 = vpop.permute.xlu0 %2250  ;;  %7030 = vst [vmem:[#allocation45_spill] sm:$0xff] %v6152_v31 }
 0xfec   : > { %v2256_v45 = vsel %vm6996_vm3, %v2251_v50, %v2254_v32  ;;  %4071 = vmatprep.subr.mxu1 %v6854_v41  ;;  %vm7001_vm3 = vcmp.ge.s32.totalorder %v4596_v6, 8  ;;  %v6001_v32 = vld [vmem:[%s7007_s3 + $0x20] sm:$0xff] }
 0xfed   : > { %4072 = vmatpush3.msk.msra.mxu1 %vm6997_vm10, %v2256_v45  ;;  %vm7006_vm10 = vcmask 588800   ;;  %7011 = vst [vmem:[#allocation38_spill] sm:$0xff] %v6001_v32 }
 0xfee   : > { %4073 = vmatprep.subr.mxu1 %v6854_v41 }
 0xfef   : > { %v2246_v20 = vpop.permute.xlu1 %2245  ;;  %v2243_v23 = vpop.permute.xlu0 %2242 }
 0xff0   : > { %v2248_v24 = vsel %vm6998_vm15, %v2243_v23, %v2246_v20  ;;  %vm7004_vm15 = vcmask 72704   ;;  %v6008_v23 = vld [vmem:[%s7007_s3 + $0x18] sm:$0xff] }
 0xff1   : > { %4074 = vmatpush3.msk.msra.mxu1 %vm6999_vm13, %v2248_v24  ;;  %vm7005_vm13 = vnez %v6915_v2  ;;  %7012 = vst [vmem:[#allocation39_spill] sm:$0xff] %v6008_v23 }
 0xff2   : > { %4075 = vmatprep.subr.mxu1 %v6854_v41 }
 0xff3   : > { %v2238_v55 = vpop.permute.xlu1 %2237  ;;  %v2235_v26 = vpop.permute.xlu0 %2234 }
 0xff4   : > { %v2240_v33 = vsel %vm7000_vm14, %v2235_v26, %v2238_v55  ;;  %v6016_v26 = vld [vmem:[%s7007_s3 + $0x10] sm:$0xff]  ;;  %vm7016_vm14 = vcmask 515072  }
 0xff5   : > { %4076 = vmatpush3.msk.msra.mxu1 %vm7001_vm3, %v2240_v33  ;;  %7013 = vst [vmem:[#allocation40_spill] sm:$0xff] %v6016_v26  ;;  %v6026_v33 = vld [vmem:[%s7007_s3 + $0x8] sm:$0xff]  ;;  %vm7018_vm3 = vcmask 523264  }
 0xff6   : > { %4077 = vmatprep.subr.mxu1 %v6854_v41  ;;  %7014 = vst [vmem:[#allocation41_spill] sm:$0xff] %v6026_v33 }
 0xff7   : > { %v2230_v34 = vpop.permute.xlu1 %2229  ;;  %v2227_v36 = vpop.permute.xlu0 %2226 }
 0xff8   : > { %v2232_v52 = vsel %vm7004_vm15, %v2227_v36, %v2230_v34  ;;  %v6033_v34 = vld [vmem:[%s7007_s3] sm:$0xff]  ;;  %s7035_s3 = smov 17   ;;  %vm7039_vm15 = vcmask 130048  }
 0xff9   : > { %4078 = vmatpush3.msk.msra.mxu1 %vm7005_vm13, %v2232_v52  ;;  %7015 = vst [vmem:[#allocation42_spill] sm:$0xff] %v6033_v34  ;;  %vm7042_vm13 = vcmask 654336  }
 0xffa   : > { %4080 = vmatmul.mubr.msk.f32.vlgmr.msra.gmra.mxu1 %vm7006_vm10, %v5969_v61  ;;  %4082 = vmatprep.subr.mxu1 %v6854_v41  ;;  %vm7017_vm10 = vcmask 457728  }
 0xffb   : > { %4098 = vmatprep.mubr.msk.f32.mxu1 %vm6831_vm11, %v6854_v41  ;;  %4083 = vmatpush3.msra.mxu1 %v5982_v44  ;;  %v6143_v44 = vld [vmem:[%s7019_s9 + $0x8] sm:$0xff] }
 0xffc   : > { %4084 = vmatprep.subr.mxu1 %v6854_v41  ;;  %7029 = vst [vmem:[#allocation44_spill] sm:$0xff] %v6143_v44 }
 0xffd   : > { %4085 = vmatpush3.msra.mxu1 %v5987_v4  ;;  %v6138_v4 = vld [vmem:[%s7019_s9 + $0x10] sm:$0xff] }
 0xffe   : > { %4086 = vmatprep.subr.mxu1 %v6854_v41  ;;  %7028 = vst [vmem:[#allocation22_spill] sm:$0xff] %v6138_v4 }
 0xfff   : > { %4087 = vmatpush3.msra.mxu1 %v5994_v28  ;;  %v6129_v28 = vld [vmem:[%s7019_s9 + $0x18] sm:$0xff] }
0x1000   : > { %4088 = vmatprep.subr.mxu1 %v6854_v41  ;;  %7027 = vst [vmem:[#allocation21_spill] sm:$0xff] %v6129_v28 }
0x1001   : > { %4089 = vmatpush3.msra.mxu1 %v6001_v32  ;;  %v6124_v32 = vld [vmem:[%s7019_s9 + $0x20] sm:$0xff] }
0x1002   : > { %4090 = vmatprep.subr.mxu1 %v6854_v41  ;;  %7026 = vst [vmem:[#allocation17_spill] sm:$0xff] %v6124_v32 }
0x1003   : > { %4091 = vmatpush3.msra.mxu1 %v6008_v23  ;;  %v6115_v23 = vld [vmem:[%s7019_s9 + $0x28] sm:$0xff] }
0x1004   : > { %v2295_v50 = vpop.permute.xlu0 %2294  ;;  %4092 = vmatprep.subr.mxu1 %v6854_v41  ;;  %7025 = vst [vmem:[#allocation15_spill] sm:$0xff] %v6115_v23 }
0x1005   : > { %4093 = vmatpush3.msra.mxu1 %v6016_v26 }
0x1006   : > { %4094 = vmatprep.subr.mxu1 %v6854_v41 }
0x1007   : > { %4095 = vmatpush3.msra.mxu1 %v6026_v33 }
0x1008   : > { %4096 = vmatprep.subr.mxu1 %v6854_v41 }
0x1009   : > { %4097 = vmatpush3.msra.mxu1 %v6033_v34  ;;  %v6047_v34 = vld [vmem:[%s7019_s9 + $0x78] sm:$0xff] }
0x100a   : > { %4136 = vmatprep.subr.mxu1 %v6854_v41  ;;  %4102 = vmatpush3.msra.mxu0 %v6047_v34 }
0x100b   : > { %4103 = vmatprep.subr.mxu0 %v6854_v41 }
0x10ba   : > { %v2366_v45 = vpop.f32.mrf.mxu1 }
0x10bb   : > { %v2367_v20 = vadd.f32 %v2366_v45, %v2295_v50 }
0x10bc   : > { %v4081_v24 = vpop.f32.mrf.mxu1 }
0x10bd   : > { %v2370_v55 = vmax.f32 %v2367_v20, 0.0 }
0x10bf   : > { %2375 = vrot.lane.b32.xlu0 %v2370_v55, %s6839_s24  ;;  %2372 = vrot.lane.b32.xlu1 %v2370_v55, %s6840_s29 }
0x1131   : > { %v2376_v36 = vpop.permute.xlu0 %2375  ;;  %v2373_v52 = vpop.permute.xlu1 %2372 }
0x1132   : > { %v2378_v50 = vsel %vm7016_vm14, %v2373_v52, %v2376_v36  ;;  %v6073_v36 = vld [vmem:[%s7019_s9 + $0x58] sm:$0xff]  ;;  %v6080_v52 = vld [vmem:[%s7019_s9 + $0x50] sm:$0xff]  ;;  %vm7040_vm14 = vcmask 261120  }
0x1133   : > { %v2379_v45 = vmax.f32 %v2370_v55, %v2378_v50  ;;  %v6052_v55 = vld [vmem:[%s7019_s9 + $0x70] sm:$0xff]  ;;  %7020 = vst [vmem:[#allocation16_spill] sm:$0xff] %v6080_v52  ;;  %v6087_v50 = vld [vmem:[%s7019_s9 + $0x48] sm:$0xff] }
0x1134   : > { %4104 = vmatpush3.msra.mxu0 %v6052_v55  ;;  %7021 = vst [vmem:[#allocation18_spill] sm:$0xff] %v6087_v50 }
0x1135   : > { %2384 = vrot.lane.b32.xlu0 %v2379_v45, %s6844_s25  ;;  %2381 = vrot.lane.b32.xlu1 %v2379_v45, %s6845_s12 }
0x1136   : > { %4105 = vmatprep.subr.mxu0 %v6854_v41 }
0x11a7   : > { %v2385_v20 = vpop.permute.xlu0 %2384  ;;  %v2382_v24 = vpop.permute.xlu1 %2381 }
0x11a8   : > { %v2387_v33 = vsel %vm7017_vm10, %v2382_v24, %v2385_v20  ;;  %v6101_v20 = vld [vmem:[%s7019_s9 + $0x38] sm:$0xff]  ;;  %v6110_v24 = vld [vmem:[%s7019_s9 + $0x30] sm:$0xff]  ;;  %vm7041_vm10 = vcmask 392192  }
0x11a9   : > { %v2388_v26 = vmax.f32 %v2379_v45, %v2387_v33  ;;  %v6066_v33 = vld [vmem:[%s7019_s9 + $0x60] sm:$0xff]  ;;  %7023 = vst [vmem:[#allocation19_spill] sm:$0xff] %v6101_v20  ;;  %7024 = vst [vmem:[#allocation20_spill] sm:$0xff] %v6110_v24 }
0x11aa   : > { %v6094_v45 = vld [vmem:[%s7019_s9 + $0x40] sm:$0xff] }
0x11ab   : > { %4099 = vmatmul.mubr.msk.f32.vlgmr.msra.gmra.mxu1 %vm7018_vm3, %v2388_v26  ;;  %v6059_v26 = vld [vmem:[%s7019_s9 + $0x68] sm:$0xff]  ;;  %7022 = vst [vmem:[#allocation14_spill] sm:$0xff] %v6094_v45  ;;  %s7032_s9 = smov 80  }
0x11ac   : > { %4144 = vmatprep.mubr.msk.f32.mxu1 %vm6831_vm11, %v6854_v41  ;;  %4106 = vmatpush3.msra.mxu0 %v6059_v26 }
0x11ad   : > { %4107 = vmatprep.subr.mxu0 %v6854_v41 }
0x11ae   : > { %4108 = vmatpush3.msra.mxu0 %v6066_v33 }
0x11af   : > { %4109 = vmatprep.subr.mxu0 %v6854_v41 }
0x11b0   : > { %4110 = vmatpush3.msra.mxu0 %v6073_v36 }
0x11b1   : > { %4111 = vmatprep.subr.mxu0 %v6854_v41 }
0x11b2   : > { %4112 = vmatpush3.msra.mxu0 %v6080_v52 }
0x11b3   : > { %4113 = vmatprep.subr.mxu0 %v6854_v41 }
0x11b4   : > { %4114 = vmatpush3.msra.mxu0 %v6087_v50 }
0x11b5   : > { %4115 = vmatprep.subr.mxu0 %v6854_v41 }
0x11b6   : > { %4116 = vmatpush3.msra.mxu0 %v6094_v45 }
0x11b7   : > { %4117 = vmatprep.subr.mxu0 %v6854_v41 }
0x11b8   : > { %4118 = vmatpush3.msra.mxu0 %v6101_v20 }
0x11b9   : > { %4119 = vmatprep.subr.mxu0 %v6854_v41 }
0x11ba   : > { %4120 = vmatpush3.msra.mxu0 %v6110_v24 }
0x11bb   : > { %4121 = vmatprep.subr.mxu0 %v6854_v41 }
0x11bc   : > { %4122 = vmatpush3.msra.mxu0 %v6115_v23 }
0x11bd   : > { %4123 = vmatprep.subr.mxu0 %v6854_v41 }
0x11be   : > { %4124 = vmatpush3.msra.mxu0 %v6124_v32 }
0x11bf   : > { %4125 = vmatprep.subr.mxu0 %v6854_v41 }
0x11c0   : > { %4126 = vmatpush3.msra.mxu0 %v6129_v28 }
0x11c1   : > { %4127 = vmatprep.subr.mxu0 %v6854_v41 }
0x11c2   : > { %4128 = vmatpush3.msra.mxu0 %v6138_v4 }
0x11c3   : > { %4129 = vmatprep.subr.mxu0 %v6854_v41 }
0x11c4   : > { %4130 = vmatpush3.msra.mxu0 %v6143_v44 }
0x11c5   : > { %4131 = vmatprep.subr.mxu0 %v6854_v41 }
0x11c6   : > { %4132 = vmatpush3.msra.mxu0 %v6152_v31 }
0x11c7   : > { %4147 = vmatprep.subr.mxu0 %v6854_v41 }
0x126b   : > { %v2466_v61 = vpop.f32.mrf.mxu1 }
0x126c   : > { %v2475_v2 = vrot.slane %v2466_v61, 2  ;;  %v2471_v0 = vrot.slane %v2466_v61, 1  ;;  %v2483_v27 = vrot.slane %v2466_v61, 4  ;;  %v2479_v18 = vrot.slane %v2466_v61, 3 }
0x126d   : > { %v4100_v35 = vpop.f32.mrf.mxu1  ;;  %v2487_v49 = vrot.slane %v2466_v61, 5 }
0x126e   : > { %2476 = vrot.lane.b32.xlu0 %v2475_v2, %s6934_s4  ;;  %2472 = vrot.lane.b32.xlu1 %v2471_v0, %s6849_s0  ;;  %v2491_v35 = vrot.slane %v2466_v61, 6  ;;  %v6163_v2 = vld [vmem:[%s4549_s14 + $0x30] sm:$0xff]  ;;  %v2495_v0 = vrot.slane %v2466_v61, 7 }
0x1272   : > { %2484 = vrot.lane.b32.xlu0 %v2483_v27, %s6935_s5  ;;  %2480 = vrot.lane.b32.xlu1 %v2479_v18, %s6936_s6  ;;  %v6181_v18 = vld [vmem:[%s4549_s14 + $0x38] sm:$0xff]  ;;  %s7071_s14 = sld [smem:[#allocation60_spill]] }
0x1273   : > { %v6186_v27 = vld [vmem:[%s7033_s10 + $0x18] sm:$0xff] }
0x1274   : > { %7034 = vst [vmem:[#allocation46_spill] sm:$0xff] %v6186_v27  ;;  %4137 = vmatpush3.msra.mxu1 %v6186_v27 }
0x1275   : > { %4138 = vmatprep.subr.mxu1 %v6854_v41 }
0x1276   : > { %2492 = vrot.lane.b32.xlu0 %v2491_v35, %s7031_s26  ;;  %2488 = vrot.lane.b32.xlu1 %v2487_v49, %s7032_s9  ;;  %v6195_v49 = vld [vmem:[%s7033_s10 + $0x10] sm:$0xff]  ;;  %v6203_v35 = vld [vmem:[%s7033_s10 + $0x8] sm:$0xff] }
0x1277   : > { %7036 = vst [vmem:[#allocation47_spill] sm:$0xff] %v6195_v49  ;;  %4139 = vmatpush3.msra.mxu1 %v6195_v49  ;;  %7037 = vst [vmem:[#allocation48_spill] sm:$0xff] %v6203_v35 }
0x1278   : > { %4140 = vmatprep.subr.mxu1 %v6854_v41  ;;  %v2598_v30 = vld [vmem:[%s7071_s14] sm:$0x1] }
0x1279   : > { %4141 = vmatpush3.msra.mxu1 %v6203_v35 }
0x127a   : > { %2732 = vrot.lane.b32.xlu0 %v6163_v2, %s6846_s15  ;;  %2496 = vrot.lane.b32.xlu1 %v2495_v0, %s6806_s30  ;;  %v6212_v0 = vld [vmem:[%s7033_s10] sm:$0xff]  ;;  %s7066_s10 = sld [smem:[#allocation43_spill]] }
0x127b   : > { %7038 = vst [vmem:[#allocation49_spill] sm:$0xff] %v6212_v0  ;;  %4142 = vmatprep.subr.mxu1 %v6854_v41 }
0x127c   : > { %4143 = vmatpush3.msra.mxu1 %v6212_v0 }
0x127e   : > { %2724 = vrot.lane.b32.xlu0 %v6163_v2, %s6806_s30  ;;  %2734 = vrot.lane.b32.xlu1 %v6181_v18, %s6846_s15 }
0x1282   : > { %2716 = vrot.lane.b32.xlu0 %v6163_v2, %s6847_s22  ;;  %2726 = vrot.lane.b32.xlu1 %v6181_v18, %s6806_s30 }
0x1286   : > { %2708 = vrot.lane.b32.xlu0 %v6163_v2, %s6840_s29  ;;  %2718 = vrot.lane.b32.xlu1 %v6181_v18, %s6847_s22 }
0x128a   : > { %2700 = vrot.lane.b32.xlu0 %v6163_v2, %s6807_s16  ;;  %2710 = vrot.lane.b32.xlu1 %v6181_v18, %s6840_s29 }
0x128e   : > { %2692 = vrot.lane.b32.xlu0 %v6163_v2, %s6848_s13  ;;  %2702 = vrot.lane.b32.xlu1 %v6181_v18, %s6807_s16 }
0x1292   : > { %2684 = vrot.lane.b32.xlu0 %v6163_v2, %s6849_s0  ;;  %2694 = vrot.lane.b32.xlu1 %v6181_v18, %s6848_s13 }
0x1296   : > { %2676 = vrot.lane.b32.xlu0 %v6163_v2, %s7035_s3  ;;  %2686 = vrot.lane.b32.xlu1 %v6181_v18, %s6849_s0 }
0x129a   : > { %2744 = vperm.xlu0 %4302, %v5590_v22   ;;  %2678 = vrot.lane.b32.xlu1 %v6181_v18, %s7035_s3 }
0x12e0   : > { %v2477_v22 = vpop.permute.xlu0 %2476  ;;  %v2473_v35 = vpop.permute.xlu1 %2472 }
0x12e1   : > { %v2499_v49 = vsel %vm7039_vm15, %v2466_v61, %v2473_v35  ;;  %vm7045_vm15 = vcmp.lt.s32.totalorder %v4596_v6, 111 }
0x12e2   : > { %v2500_v27 = vsel %vm7040_vm14, %v2499_v49, %v2477_v22  ;;  %vm7046_vm14 = vmmov %vm7045_vm15 }
0x12e4   : > { %v2485_v0 = vpop.permute.xlu0 %2484  ;;  %v2481_v31 = vpop.permute.xlu1 %2480 }
0x12e5   : > { %v2501_v44 = vsel %vm7041_vm10, %v2500_v27, %v2481_v31  ;;  %v2522_v27 = vld [vmem:[%s7047_s2] sm:$0x1]  ;;  %vm7052_vm10 = vcmp.lt.s32.totalorder %v4596_v6, 113 }
0x12e6   : > { %v2502_v4 = vsel %vm7018_vm3, %v2501_v44, %v2485_v0  ;;  %vm7053_vm3 = vmmov %vm7052_vm10 }
0x12e8   : > { %v2489_v28 = vpop.permute.xlu1 %2488  ;;  %v2493_v32 = vpop.permute.xlu0 %2492 }
0x12e9   : > { %v2503_v23 = vsel %vm7042_vm13, %v2502_v4, %v2489_v28  ;;  %vm7051_vm13 = vcmp.lt.s32.totalorder %v6953_v59, 240 }
0x12ea   : > { %v2504_v24 = vsel %vm7043_vm7, %v2503_v23, %v2493_v32  ;;  %vm7049_vm7 = vcmp.lt.s32.totalorder %v4596_v6, 112 }
0x12ec   : > { %v2497_v20 = vpop.permute.xlu1 %2496  ;;  %v2733_v61 = vpop.permute.xlu0 %2732 }
0x12ed   : > { %v2505_v45 = vsel %vm7044_vm0, %v2504_v24, %v2497_v20  ;;  %vm7048_vm0 = vcmask 261120  }
0x12ee   : > { %4134 = vmatmul.mubr.f32.vlgmr.msra.gmra.mxu0 %v2505_v45 }
0x12ef   : > { %4165 = vmatprep.mubr.msk.f32.mxu0 %vm6831_vm11, %v6854_v41 }
0x12f0   : > { %v2735_v49 = vpop.permute.xlu1 %2734  ;;  %v2725_v28 = vpop.permute.xlu0 %2724 }
0x12f1   : > { %v2736_v31 = vsel %vm7045_vm15, %v2733_v61, %v2735_v49  ;;  %v2737_v44 = vsel %vm7046_vm14, %v2735_v49, %v2733_v61  ;;  %vm7054_vm15 = vcmp.lt.s32.totalorder %v4596_v6, 127 }
0x12f2   : > { %3554 = vmatprep.subr.msk.mxu1 %vm6948_vm6, %v2737_v44  ;;  %vm7050_vm6 = vmmov %vm7049_vm7 }
0x12f3   : > { %vm7055_vm14 = vmmov %vm7054_vm15 }
0x12f4   : > { %v2727_v4 = vpop.permute.xlu1 %2726  ;;  %v2717_v23 = vpop.permute.xlu0 %2716 }
0x12f5   : > { %v2729_v48 = vsel %vm7049_vm7, %v2727_v4, %v2725_v28  ;;  %v2728_v44 = vsel %vm7050_vm6, %v2725_v28, %v2727_v4  ;;  %vm7058_vm7 = vcmp.lt.s32.totalorder %v4596_v6, 15  ;;  %vm7060_vm6 = vcmp.lt.s32.totalorder %v4596_v6, 16 }
0x12f8   : > { %v2719_v32 = vpop.permute.xlu1 %2718  ;;  %v2709_v45 = vpop.permute.xlu0 %2708 }
0x12fc   : > { %v2711_v20 = vpop.permute.xlu1 %2710  ;;  %v2701_v35 = vpop.permute.xlu0 %2700 }
0x12fd   : > { %v2712_v59 = vsel %vm7055_vm14, %v2709_v45, %v2711_v20 }
0x1300   : > { %v2703_v24 = vpop.permute.xlu1 %2702  ;;  %v2693_v49 = vpop.permute.xlu0 %2692 }
0x1304   : > { %v2695_v61 = vpop.permute.xlu1 %2694  ;;  %v2685_v4 = vpop.permute.xlu0 %2684 }
0x1308   : > { %v2677_v57 = vpop.permute.xlu0 %2676 }
0x13ae   : > { %v2589_v0 = vpop.f32.mrf.mxu0 }
0x13af   : > { %v2590_v22 = vadd.f32 %v2589_v0, %v2522_v27  ;;  %v2687_v27 = vpop.permute.xlu1 %2686  ;;  %v7086_v0 = vld [vmem:[#allocation44_spill] sm:$0xff] }
0x13b0   : > { %v4135_v50 = vpop.f32.mrf.mxu0 }
0x13b1   : > { %v2593_v52 = vmax.f32 %v2590_v22, 0.0  ;;  %v2721_v50 = vsel %vm7052_vm10, %v2719_v32, %v2717_v23  ;;  %vm7062_vm10 = vmmov %vm7060_vm6  ;;  %v7087_v22 = vld [vmem:[#allocation45_spill] sm:$0xff] }
0x13b2   : > { %v2689_v47 = vsel %vm7062_vm10, %v2687_v27, %v2685_v4  ;;  %vm7098_vm10 = vcmask 515072  }
0x13b3   : > { %4145 = vmatmul.mubr.msk.f32.vlgmr.msra.gmra.mxu1 %vm7048_vm0, %v2593_v52  ;;  %v2720_v52 = vsel %vm7053_vm3, %v2717_v23, %v2719_v32  ;;  %v2679_v32 = vpop.permute.xlu1 %2678  ;;  %v2696_v23 = vsel %vm7058_vm7, %v2693_v49, %v2695_v61  ;;  %vm7064_vm3 = vcmp.ge.s32.totalorder %v4596_v6, 16 }
0x13b4   : > { %3555 = vmatpush1.msk.msra.mxu1 %vm4621_vm5, %v2736_v31  ;;  %2814 = vmatprep.mubr.f32.mxu1 %v6854_v41  ;;  %v2713_v31 = vsel %vm7054_vm15, %v2711_v20, %v2709_v45  ;;  %vm7075_vm15 = vcmp.lt.s32.totalorder %v4596_v6, 112 }
0x13b5   : > { %3556 = vmatprep.subr.msk.mxu1 %vm7051_vm13, %v2729_v48  ;;  %vm7061_vm13 = vcmp.lt.s32.totalorder %v4596_v6, 17 }
0x13b6   : > { %2767 = vmatpush1.msra.mxu1 %v2728_v44  ;;  %v2680_v20 = vsel %vm7061_vm13, %v2677_v57, %v2679_v32  ;;  %v7089_v44 = vld [vmem:[#allocation33_spill] sm:$0xff] }
0x13b7   : > { %3557 = vmatprep.subr.msk.mxu1 %vm4641_vm8, %v2721_v50  ;;  %vm7056_vm8 = vcmp.lt.s32.totalorder %v4596_v6, 1 }
0x13b8   : > { %3558 = vmatpush1.msk.msra.mxu1 %vm4649_vm9, %v2720_v52  ;;  %v2704_v1 = vsel %vm7056_vm8, %v2701_v35, %v2703_v24  ;;  %vm7057_vm0 = vmmov %vm7056_vm8  ;;  %vm7090_vm8 = vcmask 449536  }
0x13b9   : > { %3559 = vmatprep.subr.msk.mxu1 %vm4603_vm1, %v2713_v31  ;;  %v2705_v28 = vsel %vm7057_vm0, %v2703_v24, %v2701_v35  ;;  %v7084_v24 = vld [vmem:[#allocation21_spill] sm:$0xff]  ;;  %v7085_v35 = vld [vmem:[#allocation22_spill] sm:$0xff] }
0x13ba   : > { %3560 = vmatpush1.msk.msra.mxu1 %vm4621_vm5, %v2712_v59  ;;  %vm7059_vm5 = vmmov %vm7058_vm7  ;;  %v7091_v31 = vld [vmem:[#allocation25_spill] sm:$0xff]  ;;  %vm7093_vm7 = vcmask 457728  }
0x13bb   : > { %2772 = vmatprep.subr.mxu1 %v6181_v18  ;;  %v2697_v18 = vsel %vm7059_vm5, %v2695_v61, %v2693_v49  ;;  %vm7092_vm0 = vnez %v7091_v31  ;;  %vm7094_vm5 = vcmp.lt.s32.totalorder %v4596_v6, 56 }
0x13bc   : > { %2773 = vmatpush1.msra.mxu1 %v6163_v2  ;;  %v2688_v2 = vsel %vm7060_vm6, %v2685_v4, %v2687_v27  ;;  %vm7095_vm6 = vcmask 465920  }
0x13bd   : > { %3561 = vmatprep.subr.msk.mxu1 %vm4617_vm4, %v2704_v1 }
0x13be   : > { %3562 = vmatpush1.msk.msra.mxu1 %vm4649_vm9, %v2705_v28  ;;  %vm7063_vm9 = vmmov %vm7061_vm13 }
0x13bf   : > { %3563 = vmatprep.subr.msk.mxu1 %vm4603_vm1, %v2696_v23  ;;  %v2681_v45 = vsel %vm7063_vm9, %v2679_v32, %v2677_v57  ;;  %vm7065_vm1 = vcmask 588800   ;;  %v7096_v57 = vld [vmem:[#allocation27_spill] sm:$0xff] }
0x13c0   : > { %3564 = vmatpush1.msk.msra.mxu1 %vm6968_vm2, %v2697_v18  ;;  %vm7073_vm2 = vmmov %vm7055_vm14  ;;  %vm7097_vm13 = vnez %v7096_v57 }
0x13c1   : > { %2778 = vmatprep.subr.mxu1 %v2688_v2  ;;  %vm7076_vm14 = vmmov %vm7075_vm15 }
0x13c2   : > { %3565 = vmatpush1.msk.msra.mxu1 %vm7064_vm3, %v2689_v47  ;;  %v7099_v47 = vld [vmem:[#allocation24_spill] sm:$0xff]  ;;  %vm7101_vm3 = vcmask 7168  }
0x13c3   : > { %3566 = vmatprep.subr.msk.mxu1 %vm4617_vm4, %v2680_v20  ;;  %vm7072_vm4 = vcmask 73728   ;;  %vm7100_vm9 = vnez %v7099_v47 }
0x13c4   : > { %3567 = vmatpush1.msk.msra.mxu1 %vm6975_vm12, %v2681_v45  ;;  %vm7074_vm12 = vmmov %vm7073_vm2 }
0x13c5   : > { %3568 = vmatmul.mubr.msk.f32.vlgmr.msra.gmra.mxu1 %vm7065_vm1, %v5680_v29  ;;  %3813 = vmatprep.subr.mxu1 %v5703_v53  ;;  %v7070_v29 = vld [vmem:[#allocation32_spill] sm:$0xff] }
0x13c6   : > { %3814 = vmatpush3.msra.mxu1 %v5708_v37 }
0x13c7   : > { %3815 = vmatprep.subr.mxu1 %v5713_v51 }
0x13c8   : > { %3816 = vmatpush3.msra.mxu1 %v5719_v42  ;;  %v2745_v42 = vpop.permute.xlu0 %2744 }
0x13c9   : > { %3817 = vmatprep.subr.mxu1 %v5727_v7 }
0x13ca   : > { %3818 = vmatpush3.msra.mxu1 %v5733_v54 }
0x13cb   : > { %3819 = vmatprep.subr.mxu1 %v5743_v21 }
0x13cc   : > { %3820 = vmatpush3.msra.mxu1 %v5749_v11 }
0x13cd   : > { %3821 = vmatprep.subr.mxu1 %v5756_v43 }
0x13ce   : > { %3822 = vmatpush3.msra.mxu1 %v5762_v25 }
0x13cf   : > { %3823 = vmatprep.subr.mxu1 %v5768_v39 }
0x13d0   : > { %3824 = vmatpush3.msra.mxu1 %v5774_v46 }
0x13d1   : > { %3825 = vmatprep.subr.mxu1 %v5780_v13 }
0x13d2   : > { %3826 = vmatpush3.msra.mxu1 %v5786_v60 }
0x13d3   : > { %3827 = vmatprep.subr.mxu1 %v5792_v40 }
0x13d4   : > { %3828 = vmatpush3.msra.mxu1 %v5798_v56 }
0x13d5   : > { %3829 = vmatprep.subr.mxu1 %v5804_v58 }
0x13d6   : > { %3830 = vmatpush3.msra.mxu1 %v5810_v62 }
0x13d7   : > { %3831 = vmatprep.subr.mxu1 %v5816_v63 }
0x13d8   : > { %3832 = vmatpush3.msra.mxu1 %v5822_v3 }
0x13d9   : > { %3833 = vmatprep.subr.mxu1 %v5828_v5 }
0x13da   : > { %3834 = vmatpush3.msra.mxu1 %v5834_v8 }
0x13db   : > { %3835 = vmatprep.subr.mxu1 %v5840_v9 }
0x13dc   : > { %3836 = vmatpush3.msra.mxu1 %v5846_v38 }
0x13dd   : > { %3837 = vmatprep.subr.mxu1 %v5852_v10 }
0x13de   : > { %3838 = vmatpush3.msra.mxu1 %v5858_v12 }
0x13df   : > { %3839 = vmatprep.subr.mxu1 %v5866_v14  ;;  %v7077_v14 = vld [vmem:[#allocation16_spill] sm:$0xff] }
0x13e0   : > { %3840 = vmatpush3.msra.mxu1 %v5872_v19  ;;  %v7078_v19 = vld [vmem:[#allocation18_spill] sm:$0xff] }
0x13e1   : > { %3841 = vmatprep.subr.mxu1 %v7067_v16 }
0x13e2   : > { %3842 = vmatpush3.msra.mxu1 %v7068_v17 }
0x13e3   : > { %3843 = vmatprep.subr.mxu1 %v7069_v15  ;;  %v7102_v15 = vld [vmem:[#allocation26_spill] sm:$0xff] }
0x13e4   : > { %3844 = vmatpush3.msra.mxu1 %v7070_v29  ;;  %vm7103_vm1 = vnez %v7102_v15 }
0x13e5   : > { %4187 = vmatprep.subr.mxu1 %v6854_v41 }
0x1473   : > { %v2668_v53 = vpop.f32.mrf.mxu1 }
0x1474   : > { %v2669_v37 = vadd.f32 %v2668_v53, %v2598_v30 }
0x1475   : > { %v4146_v51 = vpop.f32.mrf.mxu1 }
0x1476   : > { %2672 = vst.msk [vmem:[%s7066_s10 + $0x2] sm:$0x1] %vm7072_vm4, %v2669_v37  ;;  %vm7104_vm4 = vcmask 56320   ;;  %v7105_v37 = vld [vmem:[#allocation28_spill] sm:$0xff] }
0x1485   : > { %v2816_v7 = vpop.f32.mrf.mxu1 }
0x1486   : > { %v2817_v54 = vadd.f32 %v2816_v7, %v2745_v42 }
0x1487   : > { %v2818_v21 = vpop.f32.mrf.mxu1 }
0x1488   : > { %v2819_v11 = vadd.f32 %v2818_v21, %v2745_v42  ;;  %v2821_v43 = vmax.f32 %v2817_v54, 0.0 }
0x148a   : > { %v2822_v25 = vmax.f32 %v2819_v11, 0.0 }
0x148c   : > { %v4334_v39 = vpack.i.bf16 %v2822_v25, %v2821_v43 }
0x148e   : > { %4335 = vrot.lane.b32.xlu1 %v4334_v39, %s6840_s29  ;;  %v7114_v39 = vld [vmem:[#allocation35_spill] sm:$0xff] }
0x1500   : > { %v4336_v46 = vpop.permute.xlu1 %4335 }
0x1501   : > { %v4338_v13 = vunpack.i.h.bf16 %v4336_v46  ;;  %v4337_v60 = vunpack.i.l.bf16 %v4336_v46  ;;  %v7116_v46 = vld [vmem:[#allocation37_spill] sm:$0xff] }
0x1503   : > { %v2827_v40 = vsel %vm7073_vm2, %v4337_v60, %v4338_v13  ;;  %v2828_v56 = vsel %vm7074_vm12, %v4338_v13, %v4337_v60  ;;  %vm7106_vm2 = vnez %v7105_v37  ;;  %vm7107_vm12 = vcmask 64512   ;;  %v7117_v13 = vld [vmem:[#allocation38_spill] sm:$0xff]  ;;  %v7118_v60 = vld [vmem:[#allocation39_spill] sm:$0xff] }
0x1504   : > { %v2829_v58 = vmax.f32 %v2821_v43, %v2827_v40  ;;  %v2830_v62 = vmax.f32 %v2822_v25, %v2828_v56  ;;  %v7110_v43 = vld [vmem:[#allocation29_spill] sm:$0xff]  ;;  %v7112_v25 = vld [vmem:[#allocation34_spill] sm:$0xff]  ;;  %v7119_v40 = vld [vmem:[#allocation40_spill] sm:$0xff] }
0x1505   : > { %v7120_v56 = vld [vmem:[#allocation41_spill] sm:$0xff] }
0x1506   : > { %v4339_v63 = vpack.i.bf16 %v2830_v62, %v2829_v58 }
0x1508   : > { %4340 = vrot.lane.b32.xlu0 %v4339_v63, %s6806_s30 }
0x157a   : > { %v4341_v3 = vpop.permute.xlu0 %4340 }
0x157b   : > { %v4343_v5 = vunpack.i.h.bf16 %v4341_v3  ;;  %v4342_v8 = vunpack.i.l.bf16 %v4341_v3 }
0x157d   : > { %v2835_v9 = vsel %vm7075_vm15, %v4342_v8, %v4343_v5  ;;  %v2836_v38 = vsel %vm7076_vm14, %v4343_v5, %v4342_v8  ;;  %vm7108_vm15 = vcmp.ge.s32.totalorder %v4596_v6, 8  ;;  %vm7109_vm14 = vcmask 72704   ;;  %v7115_v6 = vld [vmem:[#allocation36_spill] sm:$0xff] }
0x157e   : > { %v2837_v10 = vmax.f32 %v2829_v58, %v2835_v9  ;;  %v2838_v12 = vmax.f32 %v2830_v62, %v2836_v38  ;;  %v7121_v58 = vld [vmem:[#allocation42_spill] sm:$0xff] }
0x1580   : > { %2935 = vmatprep.mubr.f32.mxu1 %v2838_v12 }
0x1581   : > { %2936 = vmatmul.mubr.f32.vlgmr.msra.gmra.mxu1 %v2837_v10 }
0x1582   : > { %4188 = vmatpush3.msra.mxu1 %v6047_v34  ;;  %4219 = vmatprep.mubr.msk.f32.mxu1 %vm6831_vm11, %v6854_v41  ;;  %v7079_v34 = vld [vmem:[#allocation14_spill] sm:$0xff] }
0x1583   : > { %4189 = vmatprep.subr.mxu1 %v6854_v41 }
0x1584   : > { %4190 = vmatpush3.msra.mxu1 %v6052_v55  ;;  %v7080_v55 = vld [vmem:[#allocation19_spill] sm:$0xff] }
0x1585   : > { %4191 = vmatprep.subr.mxu1 %v6854_v41 }
0x1586   : > { %4192 = vmatpush3.msra.mxu1 %v6059_v26  ;;  %v7081_v26 = vld [vmem:[#allocation20_spill] sm:$0xff] }
0x1587   : > { %4193 = vmatprep.subr.mxu1 %v6854_v41 }
0x1588   : > { %4194 = vmatpush3.msra.mxu1 %v6066_v33  ;;  %v7082_v33 = vld [vmem:[#allocation15_spill] sm:$0xff] }
0x1589   : > { %4195 = vmatprep.subr.mxu1 %v6854_v41 }
0x158a   : > { %4196 = vmatpush3.msra.mxu1 %v6073_v36  ;;  %v7083_v36 = vld [vmem:[#allocation17_spill] sm:$0xff] }
0x158b   : > { %4197 = vmatprep.subr.mxu1 %v6854_v41 }
0x158c   : > { %4198 = vmatpush3.msra.mxu1 %v7077_v14 }
0x158d   : > { %4199 = vmatprep.subr.mxu1 %v6854_v41 }
0x158e   : > { %4200 = vmatpush3.msra.mxu1 %v7078_v19 }
0x158f   : > { %4201 = vmatprep.subr.mxu1 %v6854_v41 }
0x1590   : > { %4202 = vmatpush3.msra.mxu1 %v7079_v34 }
0x1591   : > { %4203 = vmatprep.subr.mxu1 %v6854_v41 }
0x1592   : > { %4204 = vmatpush3.msra.mxu1 %v7080_v55 }
0x1593   : > { %4205 = vmatprep.subr.mxu1 %v6854_v41 }
0x1594   : > { %4206 = vmatpush3.msra.mxu1 %v7081_v26  ;;  %v7125_v26 = vld [vmem:[#allocation46_spill] sm:$0xff] }
0x1595   : > { %4207 = vmatprep.subr.mxu1 %v6854_v41 }
0x1596   : > { %4208 = vmatpush3.msra.mxu1 %v7082_v33  ;;  %v7126_v33 = vld [vmem:[#allocation47_spill] sm:$0xff] }
0x1597   : > { %4209 = vmatprep.subr.mxu1 %v6854_v41 }
0x1598   : > { %4210 = vmatpush3.msra.mxu1 %v7083_v36  ;;  %v7127_v36 = vld [vmem:[#allocation48_spill] sm:$0xff] }
0x1599   : > { %4211 = vmatprep.subr.mxu1 %v6854_v41 }
0x159a   : > { %4212 = vmatpush3.msra.mxu1 %v7084_v24  ;;  %v7128_v24 = vld [vmem:[#allocation49_spill] sm:$0xff] }
0x159b   : > { %4213 = vmatprep.subr.mxu1 %v6854_v41 }
0x159c   : > { %4214 = vmatpush3.msra.mxu1 %v7085_v35 }
0x159d   : > { %4215 = vmatprep.subr.mxu1 %v6854_v41 }
0x159e   : > { %4216 = vmatpush3.msra.mxu1 %v7086_v0 }
0x159f   : > { %4217 = vmatprep.subr.mxu1 %v6854_v41 }
0x15a0   : > { %4218 = vmatpush3.msra.mxu1 %v7087_v22 }
0x1641   : > { %v3845_v61 = vpop.f32.mrf.mxu1 }
0x1643   : > { %v3846_v49 = vpop.f32.mrf.mxu1 }
0x1644   : > { %v3847_v48 = vadd.f32 %v3846_v49, %v3845_v61 }
0x1646   : > { %3001 = vrot.lane.b32.xlu0 %v3847_v48, %s6886_s28  ;;  %2998 = vrot.lane.b32.xlu1 %v3847_v48, %s6887_s27  ;;  %s7088_s27 = smov 73  }
0x164a   : > { %2993 = vrot.lane.b32.xlu0 %v3847_v48, %s6844_s25  ;;  %2990 = vrot.lane.b32.xlu1 %v3847_v48, %s6845_s12 }
0x164e   : > { %2985 = vrot.lane.b32.xlu0 %v3847_v48, %s6888_s19  ;;  %2982 = vrot.lane.b32.xlu1 %v3847_v48, %s6889_s23 }
0x1652   : > { %2977 = vrot.lane.b32.xlu0 %v3847_v48, %s6839_s24  ;;  %2974 = vrot.lane.b32.xlu1 %v3847_v48, %s6840_s29 }
0x1656   : > { %2969 = vrot.lane.b32.xlu0 %v3847_v48, %s6807_s16  ;;  %2966 = vrot.lane.b32.xlu1 %v3847_v48, %s6890_s20 }
0x165a   : > { %2961 = vrot.lane.b32.xlu0 %v3847_v48, %s6891_s11  ;;  %2958 = vrot.lane.b32.xlu1 %v3847_v48, %s6892_s18  ;;  %s7129_s18 = smov 80   ;;  %s7141_s11 = sld [smem:[#allocation61_spill]] }
0x165e   : > { %2953 = vrot.lane.b32.xlu0 %v3847_v48, %s6893_s21  ;;  %2950 = vrot.lane.b32.xlu1 %v3847_v48, %s6986_s1  ;;  %s4436_s1 = smov [#allocation2]  }
0x1662   : > { %2945 = vrot.lane.b32.xlu0 %v3847_v48, %s6987_s7  ;;  %2942 = vrot.lane.b32.xlu1 %v3847_v48, %s7088_s27  ;;  %s4348_s7 = sshll.u32 %s4436_s1, 4  ;;  %s4349_s7 = int_to_ptr.vmem [resolvable:$false] %s4348_s7 }
0x1666   : > { %3010 = vperm.xlu1 %4323, %v7089_v44  }
0x16b8   : > { %v3002_v50 = vpop.permute.xlu0 %3001  ;;  %v2999_v52 = vpop.permute.xlu1 %2998 }
0x16b9   : > { %v3004_v27 = vsel %vm7090_vm8, %v2999_v52, %v3002_v50  ;;  %vm7111_vm8 = vnez %v7110_v43 }
0x16ba   : > { %4148 = vmatpush3.msk.msra.mxu0 %vm7092_vm0, %v3004_v27  ;;  %vm7113_vm0 = vcmask 588800  }
0x16bb   : > { %4149 = vmatprep.subr.mxu0 %v6854_v41 }
0x16bc   : > { %v2994_v4 = vpop.permute.xlu0 %2993  ;;  %v2991_v59 = vpop.permute.xlu1 %2990 }
0x16bd   : > { %v2996_v1 = vsel %vm7093_vm7, %v2991_v59, %v2994_v4  ;;  %vm7122_vm7 = vmmov %vm7098_vm10 }
0x16be   : > { %4150 = vmatpush3.msk.msra.mxu0 %vm7094_vm5, %v2996_v1  ;;  %vm7123_vm5 = vcmask 457728  }
0x16bf   : > { %4151 = vmatprep.subr.mxu0 %v6854_v41 }
0x16c0   : > { %v2986_v28 = vpop.permute.xlu0 %2985  ;;  %v2983_v32 = vpop.permute.xlu1 %2982 }
0x16c1   : > { %v2988_v23 = vsel %vm7095_vm6, %v2983_v32, %v2986_v28  ;;  %vm7124_vm6 = vcmask 523264  }
0x16c2   : > { %4152 = vmatpush3.msk.msra.mxu0 %vm7097_vm13, %v2988_v23  ;;  %vm7131_vm13 = vcmask 261120  }
0x16c3   : > { %4153 = vmatprep.subr.mxu0 %v6854_v41 }
0x16c4   : > { %v2978_v18 = vpop.permute.xlu0 %2977  ;;  %v2975_v2 = vpop.permute.xlu1 %2974 }
0x16c5   : > { %v2980_v20 = vsel %vm7098_vm10, %v2975_v2, %v2978_v18  ;;  %vm7132_vm10 = vcmask 392192  }
0x16c6   : > { %4154 = vmatpush3.msk.msra.mxu0 %vm7100_vm9, %v2980_v20  ;;  %vm7133_vm9 = vmmov %vm7124_vm6 }
0x16c7   : > { %4155 = vmatprep.subr.mxu0 %v6854_v41 }
0x16c8   : > { %v2970_v45 = vpop.permute.xlu0 %2969  ;;  %4156 = vmatpush3.msra.mxu0 %v3847_v48  ;;  %v2967_v16 = vpop.permute.xlu1 %2966 }
0x16c9   : > { %v2972_v17 = vsel %vm7101_vm3, %v2967_v16, %v2970_v45  ;;  %4157 = vmatprep.subr.mxu0 %v6854_v41  ;;  %vm7135_vm3 = vcmask 654336   ;;  %v3238_v45 = vld [vmem:[%s7047_s2] sm:$0x1] }
0x16ca   : > { %4158 = vmatpush3.msk.msra.mxu0 %vm7103_vm1, %v2972_v17  ;;  %vm7136_vm1 = vcmask 785408  }
0x16cb   : > { %4159 = vmatprep.subr.mxu0 %v6854_v41 }
0x16cc   : > { %v2962_v29 = vpop.permute.xlu0 %2961  ;;  %v2959_v30 = vpop.permute.xlu1 %2958 }
0x16cd   : > { %v2964_v53 = vsel %vm7104_vm4, %v2959_v30, %v2962_v29  ;;  %vm7137_vm4 = vcmask 916480   ;;  %v3314_v30 = vld [vmem:[%s7071_s14] sm:$0x1] }
0x16ce   : > { %4160 = vmatpush3.msk.msra.mxu0 %vm7106_vm2, %v2964_v53  ;;  %vm7140_vm2 = vmmov %vm7131_vm13 }
0x16cf   : > { %4161 = vmatprep.subr.mxu0 %v6854_v41 }
0x16d0   : > { %v2954_v51 = vpop.permute.xlu0 %2953  ;;  %v2951_v42 = vpop.permute.xlu1 %2950 }
0x16d1   : > { %v2956_v7 = vsel %vm7107_vm12, %v2951_v42, %v2954_v51  ;;  %vm7142_vm12 = vcmask 73728  }
0x16d2   : > { %4162 = vmatpush3.msk.msra.mxu0 %vm7108_vm15, %v2956_v7 }
0x16d3   : > { %4163 = vmatprep.subr.mxu0 %v6854_v41 }
0x16d4   : > { %v2946_v54 = vpop.permute.xlu0 %2945  ;;  %v2943_v21 = vpop.permute.xlu1 %2942 }
0x16d5   : > { %v2948_v11 = vsel %vm7109_vm14, %v2943_v21, %v2946_v54 }
0x16d6   : > { %4164 = vmatpush3.msk.msra.mxu0 %vm7111_vm8, %v2948_v11 }
0x16d7   : > { %4166 = vmatmul.mubr.msk.f32.vlgmr.msra.gmra.mxu0 %vm7113_vm0, %v7112_v25  ;;  %4168 = vmatprep.subr.mxu0 %v6854_v41 }
0x16d8   : > { %4169 = vmatpush3.msra.mxu0 %v7114_v39  ;;  %4184 = vmatprep.mubr.msk.f32.mxu0 %vm6831_vm11, %v6854_v41 }
0x16d9   : > { %4170 = vmatprep.subr.mxu0 %v6854_v41 }
0x16da   : > { %4171 = vmatpush3.msra.mxu0 %v7115_v6 }
0x16db   : > { %4172 = vmatprep.subr.mxu0 %v6854_v41 }
0x16dc   : > { %4173 = vmatpush3.msra.mxu0 %v7116_v46 }
0x16dd   : > { %4174 = vmatprep.subr.mxu0 %v6854_v41 }
0x16de   : > { %4175 = vmatpush3.msra.mxu0 %v7117_v13 }
0x16df   : > { %4176 = vmatprep.subr.mxu0 %v6854_v41 }
0x16e0   : > { %4177 = vmatpush3.msra.mxu0 %v7118_v60 }
0x16e1   : > { %4178 = vmatprep.subr.mxu0 %v6854_v41  ;;  %v3011_v62 = vpop.permute.xlu1 %3010 }
0x16e2   : > { %4179 = vmatpush3.msra.mxu0 %v7119_v40 }
0x16e3   : > { %4180 = vmatprep.subr.mxu0 %v6854_v41 }
0x16e4   : > { %4181 = vmatpush3.msra.mxu0 %v7120_v56 }
0x16e5   : > { %4182 = vmatprep.subr.mxu0 %v6854_v41 }
0x16e6   : > { %4183 = vmatpush3.msra.mxu0 %v7121_v58 }
0x16e7   : > { %4222 = vmatprep.subr.mxu0 %v6854_v41 }
0x1797   : > { %v3082_v63 = vpop.f32.mrf.mxu0 }
0x1798   : > { %v3083_v3 = vadd.f32 %v3082_v63, %v3011_v62 }
0x1799   : > { %v4167_v5 = vpop.f32.mrf.mxu0 }
0x179a   : > { %v3086_v8 = vmax.f32 %v3083_v3, 0.0 }
0x179c   : > { %3091 = vrot.lane.b32.xlu1 %v3086_v8, %s6839_s24  ;;  %3088 = vrot.lane.b32.xlu0 %v3086_v8, %s6840_s29  ;;  %s3403_s24 = sshll.u32 %s7066_s10, 4  ;;  %s3404_s24 = int_to_ptr.vmem [resolvable:$true] %s3403_s24 }
0x179d   : > { %s4344_s20 = scalar_lea.vmem %s3404_s24, 64  ;;  %p4351_p0 = scmp.lt.s32.totalorder %s3404_s24, %s4349_s7 }
0x179e   : > { %p4345_p11 = scmp.ne.s32.totalorder %s3404_s24, %s4344_s20 }
0x17a0   : > { %p4346_p12 = pnand %p4345_p11, %p4535_p5 }
0x17a2   : > { %p4347_p13 = pneg %p4346_p12 }
0x180e   : > { %v3092_v9 = vpop.permute.xlu1 %3091  ;;  %v3089_v38 = vpop.permute.xlu0 %3088 }
0x180f   : > { %v3094_v10 = vsel %vm7122_vm7, %v3089_v38, %v3092_v9 }
0x1810   : > { %v3095_v12 = vmax.f32 %v3086_v8, %v3094_v10 }
0x1812   : > { %3100 = vrot.lane.b32.xlu1 %v3095_v12, %s6844_s25  ;;  %3097 = vrot.lane.b32.xlu0 %v3095_v12, %s6845_s12 }
0x1884   : > { %v3101_v14 = vpop.permute.xlu1 %3100  ;;  %v3098_v19 = vpop.permute.xlu0 %3097 }
0x1885   : > { %v3103_v34 = vsel %vm7123_vm5, %v3098_v19, %v3101_v14 }
0x1886   : > { %v3104_v55 = vmax.f32 %v3095_v12, %v3103_v34 }
0x1888   : > { %4185 = vmatmul.mubr.msk.f32.vlgmr.msra.gmra.mxu0 %vm7124_vm6, %v3104_v55 }
0x1889   : > { %4223 = vmatpush3.msra.mxu0 %v7125_v26  ;;  %4230 = vmatprep.mubr.msk.f32.mxu0 %vm6831_vm11, %v6854_v41  ;;  %vm7130_vm11 = vcmask 130048  }
0x188a   : > { %4224 = vmatprep.subr.mxu0 %v6854_v41 }
0x188b   : > { %4225 = vmatpush3.msra.mxu0 %v7126_v33 }
0x188c   : > { %4226 = vmatprep.subr.mxu0 %v6854_v41 }
0x188d   : > { %4227 = vmatpush3.msra.mxu0 %v7127_v36 }
0x188e   : > { %4228 = vmatprep.subr.mxu0 %v6854_v41 }
0x188f   : > { %4229 = vmatpush3.msra.mxu0 %v7128_v24 }
0x1948   : > { %v3182_v35 = vpop.f32.mrf.mxu0 }
0x1949   : > { %v3191_v0 = vrot.slane %v3182_v35, 2  ;;  %v3187_v22 = vrot.slane %v3182_v35, 1  ;;  %v3199_v49 = vrot.slane %v3182_v35, 4  ;;  %v3195_v48 = vrot.slane %v3182_v35, 3 }
0x194a   : > { %v4186_v61 = vpop.f32.mrf.mxu0  ;;  %v3207_v44 = vrot.slane %v3182_v35, 6  ;;  %v3203_v50 = vrot.slane %v3182_v35, 5  ;;  %v3211_v41 = vrot.slane %v3182_v35, 7 }
0x194b   : > { %3192 = vrot.lane.b32.xlu1 %v3191_v0, %s6934_s4  ;;  %3188 = vrot.lane.b32.xlu0 %v3187_v22, %s6849_s0  ;;  %s7134_s0 = sld [smem:[#allocation9_spill]] }
0x194f   : > { %3200 = vrot.lane.b32.xlu1 %v3199_v49, %s6935_s5  ;;  %3196 = vrot.lane.b32.xlu0 %v3195_v48, %s6936_s6  ;;  %s7138_s6 = sld [smem:[#allocation6_spill]] }
0x1951   : > { %s3581_s25 = sshll.u32 %s7134_s0, 6 }
0x1952   : > { %s6500_s28 = scalar_lea.hbm %s7141_s11, %s3581_s25 }
0x1953   : > { %3208 = vrot.lane.b32.xlu1 %v3207_v44, %s7031_s26  ;;  %3204 = vrot.lane.b32.xlu0 %v3203_v50, %s7129_s18  ;;  %s4350_s26 = scalar_lea.vmem %s4349_s7, 128 }
0x1954   : > { %p4352_p1 = scmp.lt.s32.totalorder %s4350_s26, %s4344_s20 }
0x1955   : > { %s7143_s19 = sand.u32 1, %s7138_s6  }
0x1956   : > { %s3390_s23 = scalar_lea.sflag [#allocation3], %s7143_s19  ;;  %p4353_p2 = por %p4352_p1, %p4351_p0 }
0x1957   : > { %3212 = vrot.lane.b32.xlu0 %v3211_v41, %s6806_s30 }
0x1958   : > { %p4354_p3 = pnand %p4353_p2, %p4347_p13 }
0x19bd   : > { %v3193_v52 = vpop.permute.xlu1 %3192  ;;  %v3189_v27 = vpop.permute.xlu0 %3188 }
0x19be   : > { %v3215_v31 = vsel %vm7130_vm11, %v3182_v35, %v3189_v27 }
0x19bf   : > { %v3216_v59 = vsel %vm7131_vm13, %v3215_v31, %v3193_v52 }
0x19c1   : > { %v3201_v4 = vpop.permute.xlu1 %3200  ;;  %v3197_v1 = vpop.permute.xlu0 %3196 }
0x19c2   : > { %v3217_v28 = vsel %vm7132_vm10, %v3216_v59, %v3197_v1 }
0x19c3   : > { %v3218_v32 = vsel %vm7133_vm9, %v3217_v28, %v3201_v4 }
0x19c5   : > { %v3205_v23 = vpop.permute.xlu0 %3204  ;;  %v3209_v57 = vpop.permute.xlu1 %3208 }
0x19c6   : > { %v3219_v18 = vsel %vm7135_vm3, %v3218_v32, %v3205_v23 }
0x19c7   : > { %v3220_v2 = vsel %vm7136_vm1, %v3219_v18, %v3209_v57 }
0x19c9   : > { %v3213_v20 = vpop.permute.xlu0 %3212 }
0x19ca   : > { %v3221_v47 = vsel %vm7137_vm4, %v3220_v2, %v3213_v20 }
0x19cb   : > { %4220 = vmatmul.mubr.f32.vlgmr.msra.gmra.mxu1 %v3221_v47 }
0x1a8b   : > { %v3305_v16 = vpop.f32.mrf.mxu1 }
0x1a8c   : > { %v3306_v17 = vadd.f32 %v3305_v16, %v3238_v45 }
0x1a8d   : > { %v4221_v15 = vpop.f32.mrf.mxu1 }
0x1a8e   : > { %v3309_v29 = vmax.f32 %v3306_v17, 0.0 }
0x1a90   : > { %4231 = vmatmul.mubr.msk.f32.vlgmr.msra.gmra.mxu0 %vm7140_vm2, %v3309_v29 }
0x1b50   : > { %v3384_v53 = vpop.f32.mrf.mxu0 }
0x1b51   : > { %v3385_v37 = vadd.f32 %v3384_v53, %v3314_v30 }
0x1b52   : > { %v4232_v51 = vpop.f32.mrf.mxu0 }
0x1b53   : > { %3388 = vst.msk [vmem:[%s7066_s10 + $0x3] sm:$0x1] %vm7142_vm12, %v3385_v37 }
0x1b54   : > { %4357 = shalt.err (!%p4354_p3)
}
0x1b55   : > { %s4358_s17 = scalar_lea.hbm %s6500_s28, 64  ;;  %s4362_s22 = scalar_lea.hbm %s7141_s11, 128 }
0x1b56   : > { %p4359_p4 = scmp.ne.s32.totalorder %s6500_s28, %s4358_s17  ;;  %p4363_p9 = scmp.lt.s32.totalorder %s6500_s28, %s7141_s11 }
0x1b57   : > { %p4364_p10 = scmp.lt.s32.totalorder %s4362_s22, %s4358_s17 }
0x1b58   : > { %p4360_p7 = pnand %p4359_p4, %p4535_p5 }
0x1b59   : > { %p4365_p11 = por %p4364_p10, %p4363_p9 }
0x1b5a   : > { %p4361_p8 = pneg %p4360_p7 }
0x1b5c   : > { %p4366_p12 = pnand %p4365_p11, %p4361_p8 }
0x1b5e   : > { %4369 = shalt.err (!%p4366_p12)
}
0x1b5f   : > { %4233 = dma.vmem_to_hbm [thread:$0]  (%p4535_p5), %s3404_s24, 64, %s6500_s28, %s3390_s23  }
0x1b60 PF: > { %s7144_s10 = sld [smem:[#allocation8_spill]] }
0x1b61   : > { %s7145_s3 = sld [smem:[#allocation5_spill]] }
0x1b66   : > { %p4239_p13 = scmp.ge.s32.totalorder %s7144_s10, 2 }
0x1b67   : > { %s3415_s14 = sand.u32 1, %s7145_s3  }
0x1b68   : > { %p4236_p0 = pnand %p4239_p13, %p4539_p6  ;;  %s3416_s27 = scalar_lea.sflag [#allocation3], %s3415_s14 }
0x1b6a   : > { %p4237_p1 = pneg %p4236_p0 }
0x1b6c   : > { %4387 = dma.done.wait (%p4237_p1), %s3416_s27, 64  }
0x1b6d   : > { %4389 = vsyncadd (%p4237_p1), %s3416_s27, 4294967232  ;;  %s7147_s20 = sld [smem:[#allocation10_spill]] }
0x1b6e   : > { %s7148_s17 = sld [smem:[#allocation6_spill]] }
0x1b6f   : > { %s7149_s18 = sld [smem:[#allocation7_spill]] }
0x1b70   : > { %s7150_s19 = sld [smem:[#allocation11_spill]] }
0x1b73   : > { %p21_p2 = scmp.ge.s32.totalorder %s7147_s20, 4  }
0x1b75   :  { %23 = sbr.rel (!%p21_p2) target bundleno = 16 (0x10), region = 102 }
0x1b7a   :  { %3421 = vsyncpa [#allocation3], 1 }
0x1b7b   :  { %3423 = vsyncpa [#allocation3 + $0x1], 1 }

</bundles_post_ra>
